<compile_context>
chip_gen: v7x
topology: tpu7x:2x2x1
jax: 0.10.0
libtpu: 0.0.40
codegen_flags: <defaults>
</compile_context>

<pallas_src>
import functools

import jax
import jax.numpy as jnp
from jax.experimental import pallas as pl
from jax.experimental.pallas import tpu as pltpu  # noqa: F401  (kept for completeness)

H = 32  # hidden size


# ---------------------------------------------------------------------------
# Single fused decoder-step kernel (no grid: whole arrays live in VMEM).
# ---------------------------------------------------------------------------
def _decoder_step_kernel(
        # --- data ---
        emb_ref,        # (B, H)       last_embedded
        lc_ref,         # (B, H)       last_context (squeezed)
        fh_ref,         # (T*B, H)     feed_hidden, row t*B+b (time-major flatten)
        enc_ref,        # (S*B, H)     encoder_outputs, row s*B+b
        mask_ref,       # (S*B, 1)     1.0 where masked
        sel_fh_ref,     # (B, T*B)     sel[b, t*B+b'] = (b == b')
        selT_fh_ref,    # (T*B, B)
        sel_enc_ref,    # (B, S*B)
        selT_enc_ref,   # (S*B, B)
        # --- packed weights ---
        mg_w1_ref,      # (5, 2H, 3H)  [[wi_p,0,0],[wi_c,wc_c,wz_x]] per gate
        mg_wcf_ref,     # (5, H, H)
        mg_wzc_ref,     # (5, H, H)
        mg_b_ref,       # (5, 1, 3H)   [bi | bc | bz]
        mg_ln_ref,      # (5, 1, 4H)   [g0 | be0 | g1 | be1]
        fuse_w_ref,     # (2H, H)      [wa ; wb]
        fuse_b_ref,     # (1, H)
        att_w_ref,      # (2, 2H, H)   [wh ; we] per attention
        att_b_ref,      # (2, 1, H)
        att_s_ref,      # (2, 1, H)    score row
        # --- outputs ---
        out_pack_ref,   # (B, 4H)      [output_l | output_r | context | new_hidden]
        fh_out_ref):    # ((T+1)*B, H) feed_hidden with new_hidden appended
    B, Hh = emb_ref.shape
    T = fh_ref.shape[0] // B
    S = enc_ref.shape[0] // B
    f32 = jnp.float32

    def layer_norm(x, gamma, beta):
        mu = jnp.mean(x, axis=-1, keepdims=True)
        var = jnp.mean((x - mu) ** 2, axis=-1, keepdims=True)
        return (x - mu) * jax.lax.rsqrt(var + 1e-5) * gamma + beta

    def minus_gate(gi, p, ctx):
        # one K=2H matmul whose 3H-wide output packs [p@wi_p+ctx@wi_c | ctx@wc_c | ctx@wz_x]
        m1 = jnp.dot(jnp.concatenate([p, ctx], axis=-1), mg_w1_ref[gi],
                     preferred_element_type=f32) + mg_b_ref[gi]          # (rows, 3H)
        ln = mg_ln_ref[gi]                                               # (1, 4H)
        ig = jax.nn.sigmoid(m1[:, :Hh])
        finput = layer_norm((1.0 - ig) * p, ln[:, :Hh], ln[:, Hh:2 * Hh])
        c = jnp.maximum(
            jnp.dot(finput, mg_wcf_ref[gi], preferred_element_type=f32)
            + m1[:, Hh:2 * Hh], 0.0)
        z = jax.nn.sigmoid(
            jnp.dot(c, mg_wzc_ref[gi], preferred_element_type=f32)
            + m1[:, 2 * Hh:])
        fu1 = layer_norm(c * z, ln[:, 2 * Hh:3 * Hh], ln[:, 3 * Hh:])
        return finput - fu1

    def attention(ai, hidden, keys_flat, L, sel, selT, mask):
        # keys_flat: (L*B, H), row l*B+b.  Single batched matmul; score via VPU reduce.
        hid_rep = jnp.concatenate([hidden] * L, axis=0)                   # (L*B, H)
        energy_in = jnp.concatenate([hid_rep, keys_flat], axis=-1)        # (L*B, 2H)
        t = jnp.tanh(jnp.dot(energy_in, att_w_ref[ai],
                             preferred_element_type=f32) + att_b_ref[ai])  # (L*B, H)
        e = jnp.sum(t * att_s_ref[ai], axis=-1, keepdims=True)            # (L*B, 1)
        if mask is not None:
            e = jnp.where(mask > 0.5, -1e12, e)
        # per-batch (row % B) max for a numerically-stable softmax
        m_rep = jnp.zeros_like(e)
        for bb in range(B):
            col = selT[:, bb:bb + 1]
            m_b = jnp.max(jnp.where(col > 0.5, e, -1e30), axis=0, keepdims=True)
            m_rep = m_rep + m_b * col
        p = jnp.exp(e - m_rep)                                            # (L*B, 1)
        num = jnp.dot(sel, p * keys_flat, preferred_element_type=f32)     # (B, H)
        den = jnp.dot(sel, p, preferred_element_type=f32)                 # (B, 1)
        return num / den

    emb = emb_ref[...]
    lc = lc_ref[...]
    fh = fh_ref[...]
    enc = enc_ref[...]
    mask = mask_ref[...]
    sel_fh = sel_fh_ref[...]
    selT_fh = selT_fh_ref[...]
    sel_enc = sel_enc_ref[...]
    selT_enc = selT_enc_ref[...]

    # g1(last_context, last_embedded)
    last_context_new = minus_gate(0, lc, emb)                             # (B, H)
    # remain gate on the last feed_hidden step
    remain0 = minus_gate(1, fh[(T - 1) * B:, :], emb)                     # (B, H)
    # remain = relu([remain0 | last_context_new] @ Wfuse + bfuse)   (merged K=2H matmul)
    remain = jnp.maximum(
        jnp.dot(jnp.concatenate([remain0, last_context_new], axis=-1),
                fuse_w_ref[...], preferred_element_type=f32)
        + fuse_b_ref[...], 0.0)                                           # (B, H)
    # gf over all T*B feed_hidden rows (remain broadcast over time)
    remain_rep = jnp.concatenate([remain] * T, axis=0)                    # (T*B, H)
    fhn = minus_gate(2, fh, remain_rep)                                   # (T*B, H)
    parent_fh = fhn[(T - 1) * B:, :]                                      # (B, H)
    # attention over feed_hidden (no mask) -> new_hidden
    new_hidden = attention(0, parent_fh, fhn, T, sel_fh, selT_fh, None)   # (B, H)
    # attention over encoder outputs (seq mask) -> context
    context = attention(1, new_hidden, enc, S, sel_enc, selT_enc, mask)   # (B, H)
    # output gates share (new_hidden, context)
    out_l = minus_gate(3, new_hidden, context)
    out_r = minus_gate(4, new_hidden, context)

    # lane-dense packed store (B, 4H = 128 lanes)
    out_pack_ref[...] = jnp.concatenate([out_l, out_r, context, new_hidden], axis=-1)
    # feed_hidden append done in-kernel
    fh_out_ref[...] = jnp.concatenate([fhn, new_hidden], axis=0)


def decoder_step(pp, last_embedded, last_context_bh, feed_hidden, encoder_outputs, seq_mask):
    T, B, Hh = feed_hidden.shape
    S = encoder_outputs.shape[0]
    fh_flat = feed_hidden.reshape(T * B, Hh)            # time-major flatten (no transpose)
    enc_flat = encoder_outputs.reshape(S * B, Hh)
    if seq_mask is None:
        mask_flat = jnp.zeros((S * B, 1), jnp.float32)
    else:
        mask_flat = jnp.transpose(seq_mask).astype(jnp.float32).reshape(S * B, 1)
    eye_b = jnp.eye(B, dtype=jnp.float32)
    sel_fh = jnp.tile(eye_b, (1, T))                    # (B, T*B)
    selT_fh = jnp.tile(eye_b, (T, 1))                   # (T*B, B)
    sel_enc = jnp.tile(eye_b, (1, S))                   # (B, S*B)
    selT_enc = jnp.tile(eye_b, (S, 1))                  # (S*B, B)

    out_pack, fh_out_flat = pl.pallas_call(
        _decoder_step_kernel,
        out_shape=(jax.ShapeDtypeStruct((B, 4 * Hh), jnp.float32),
                   jax.ShapeDtypeStruct(((T + 1) * B, Hh), jnp.float32)),
    )(last_embedded, last_context_bh, fh_flat, enc_flat, mask_flat,
      sel_fh, selT_fh, sel_enc, selT_enc,
      pp["mg_w1"], pp["mg_wcf"], pp["mg_wzc"], pp["mg_b"], pp["mg_ln"],
      pp["fuse_w"], pp["fuse_b"],
      pp["att_w"], pp["att_b"], pp["att_s"])

    out_l = out_pack[:, :Hh]
    out_r = out_pack[:, Hh:2 * Hh]
    context = out_pack[:, 2 * Hh:3 * Hh]
    new_hidden = out_pack[:, 3 * Hh:]
    feed_hidden_out = fh_out_flat.reshape(T + 1, B, Hh)
    return out_l, out_r, context, new_hidden, feed_hidden_out


# ---------------------------------------------------------------------------
# Parameters (same per-module init as before) + packing for the fused kernel.
# ---------------------------------------------------------------------------
def init_params(key):
    keys = iter(jax.random.split(key, 128))

    def lin(din, dout):
        lim = 1.0 / (din ** 0.5)
        return jax.random.uniform(next(keys), (din, dout), jnp.float32, -lim, lim)

    def vec(din, dout=H):
        lim = 1.0 / (din ** 0.5)
        return jax.random.uniform(next(keys), (1, dout), jnp.float32, -lim, lim)

    def minus_gate_params():
        return dict(
            wi_p=lin(H, H), wi_c=lin(H, H), bi=vec(2 * H),
            wc_f=lin(H, H), wc_c=lin(H, H), bc=vec(2 * H),
            wz_c=lin(H, H), wz_x=lin(H, H), bz=vec(2 * H),
            g0=jnp.ones((1, H), jnp.float32), be0=jnp.zeros((1, H), jnp.float32),
            g1=jnp.ones((1, H), jnp.float32), be1=jnp.zeros((1, H), jnp.float32),
        )

    def attn_params():
        return dict(wh=lin(H, H), we=lin(H, H), b=vec(2 * H), score=lin(H, 1))

    raw = dict(
        g1=minus_gate_params(),
        remain=minus_gate_params(),
        gf=minus_gate_params(),
        out_l=minus_gate_params(),
        out_r=minus_gate_params(),
        fuse=dict(wa=lin(H, H), wb=lin(H, H), b=vec(2 * H)),
        attn_feed=attn_params(),
        attn=attn_params(),
    )
    return dict(raw=raw, packed=pack_params(raw))


def pack_params(raw):
    zero = jnp.zeros((H, H), jnp.float32)

    def pack_gate(g):
        w1 = jnp.concatenate([
            jnp.concatenate([g["wi_p"], zero, zero], axis=1),
            jnp.concatenate([g["wi_c"], g["wc_c"], g["wz_x"]], axis=1)], axis=0)  # (2H, 3H)
        b3 = jnp.concatenate([g["bi"], g["bc"], g["bz"]], axis=1)                 # (1, 3H)
        ln = jnp.concatenate([g["g0"], g["be0"], g["g1"], g["be1"]], axis=1)      # (1, 4H)
        return w1, g["wc_f"], g["wz_c"], b3, ln

    gates = [raw[k] for k in ("g1", "remain", "gf", "out_l", "out_r")]
    packed = [pack_gate(g) for g in gates]
    atts = [raw["attn_feed"], raw["attn"]]
    return dict(
        mg_w1=jnp.stack([p[0] for p in packed]),
        mg_wcf=jnp.stack([p[1] for p in packed]),
        mg_wzc=jnp.stack([p[2] for p in packed]),
        mg_b=jnp.stack([p[3] for p in packed]),
        mg_ln=jnp.stack([p[4] for p in packed]),
        fuse_w=jnp.concatenate([raw["fuse"]["wa"], raw["fuse"]["wb"]], axis=0),
        fuse_b=raw["fuse"]["b"],
        att_w=jnp.stack([jnp.concatenate([a["wh"], a["we"]], axis=0) for a in atts]),
        att_b=jnp.stack([a["b"] for a in atts]),
        att_s=jnp.stack([jnp.transpose(a["score"]) for a in atts]),
    )


# ---------------------------------------------------------------------------
# Decoder forward (glue kept at JAX level, one fused kernel per step)
# ---------------------------------------------------------------------------
def decoder_forward(params, input_ids, nodes_word_dict_vector, parent_index, bool_parent,
                    last_context, feed_hidden, word_dict_vec, encoder_outputs, seq_mask,
                    operator_index, first_node=False):
    B = input_ids.shape[0]
    T = feed_hidden.shape[0]

    # embedding lookup: gather replaces one_hot.bmm(word_dict_vec)
    last_embedded = word_dict_vec[jnp.arange(B), input_ids]               # (B, H)
    lc = last_context[:, 0, :]                                            # (B, H)

    out_l, out_r, context, new_hidden, feed_hidden_out = decoder_step(
        params["packed"], last_embedded, lc, feed_hidden, encoder_outputs, seq_mask)
    del new_hidden  # already appended to feed_hidden_out inside the kernel

    if first_node:
        nodes_word_dict_vector = last_embedded[None]
    else:
        nodes_word_dict_vector = jnp.concatenate(
            [nodes_word_dict_vector, last_embedded[None]], axis=0)

    # TODO(synk): the data-dependent tree-reduction branch (Python lists of TreeNode
    # objects, combine_l/r/p over `.r_embedding`) has no Pallas equivalent; only the
    # `truth <= operator_index` path is implemented (inputs are built so it is taken).
    parent_index = jnp.full((B,), T - 1, dtype=jnp.int32)
    bool_parent = jnp.ones((B,), dtype=jnp.int32)

    return (out_l, out_r, context[:, None, :], feed_hidden_out,
            nodes_word_dict_vector, parent_index, bool_parent)


# ---------------------------------------------------------------------------
# Pure-JAX reference (unfused math) for a correctness cross-check
# ---------------------------------------------------------------------------
def _ref_minus_gate(g, p, ctx):
    def ln(x, gamma, beta):
        mu = jnp.mean(x, axis=-1, keepdims=True)
        var = jnp.mean((x - mu) ** 2, axis=-1, keepdims=True)
        return (x - mu) * jax.lax.rsqrt(var + 1e-5) * gamma + beta
    ig = jax.nn.sigmoid(p @ g["wi_p"] + ctx @ g["wi_c"] + g["bi"])
    finput = ln((1.0 - ig) * p, g["g0"], g["be0"])
    c = jnp.maximum(finput @ g["wc_f"] + ctx @ g["wc_c"] + g["bc"], 0.0)
    z = jax.nn.sigmoid(c @ g["wz_c"] + ctx @ g["wz_x"] + g["bz"])
    fu1 = ln(c * z, g["g1"], g["be1"])
    return finput - fu1


def _ref_attn(a, hidden_bh, enc_lbh, mask_bl):
    t = jnp.tanh(enc_lbh @ a["we"] + (hidden_bh @ a["wh"])[None] + a["b"])   # (L, B, H)
    e = (t @ a["score"])[..., 0]                                             # (L, B)
    if mask_bl is not None:
        e = jnp.where(mask_bl.T, -1e12, e)
    e = e - jnp.max(e, axis=0, keepdims=True)
    w = jnp.exp(e)
    w = w / jnp.sum(w, axis=0, keepdims=True)
    return jnp.einsum('lb,lbh->bh', w, enc_lbh)


def _ref_decoder_step(raw, last_embedded, lc, feed_hidden, encoder_outputs, seq_mask):
    T, B, Hh = feed_hidden.shape
    lcn = _ref_minus_gate(raw["g1"], lc, last_embedded)
    remain0 = _ref_minus_gate(raw["remain"], feed_hidden[-1], last_embedded)
    remain = jnp.maximum(
        remain0 @ raw["fuse"]["wa"] + lcn @ raw["fuse"]["wb"] + raw["fuse"]["b"], 0.0)
    fh_flat = feed_hidden.reshape(T * B, Hh)
    rep = jnp.broadcast_to(remain[None], (T, B, Hh)).reshape(T * B, Hh)
    fhn = _ref_minus_gate(raw["gf"], fh_flat, rep).reshape(T, B, Hh)
    new_hidden = _ref_attn(raw["attn_feed"], fhn[-1], fhn, None)
    context = _ref_attn(raw["attn"], new_hidden, encoder_outputs, seq_mask)
    out_l = _ref_minus_gate(raw["out_l"], new_hidden, context)
    out_r = _ref_minus_gate(raw["out_r"], new_hidden, context)
    fh_out = jnp.concatenate([fhn, new_hidden[None]], axis=0)
    return out_l, out_r, context, fh_out


# ---------------------------------------------------------------------------
if __name__ == "__main__":
    key = jax.random.PRNGKey(0)
    kp, kd = jax.random.split(key)
    params = init_params(kp)

    B, V, S, T, N = 2, 10, 8, 3, 2
    operator_index = 5
    ks = jax.random.split(kd, 8)

    input_ids = jnp.array([1, 3], dtype=jnp.int32)            # <= operator_index
    nodes_word_dict_vector = jax.random.normal(ks[0], (N, B, H), jnp.float32)
    last_context = jax.random.normal(ks[1], (B, 1, H), jnp.float32)
    feed_hidden = jax.random.normal(ks[2], (T, B, H), jnp.float32)
    word_dict_vec = jax.random.normal(ks[3], (B, V, H), jnp.float32)
    encoder_outputs = jax.random.normal(ks[4], (S, B, H), jnp.float32)
    seq_mask = jnp.zeros((B, S), dtype=jnp.bool_).at[1, 6:].set(True)
    parent_index = jnp.zeros((B,), jnp.int32)
    bool_parent = jnp.zeros((B,), jnp.int32)

    step_fn = jax.jit(decoder_forward, static_argnames=("first_node",))
    outs = step_fn(params, input_ids, nodes_word_dict_vector, parent_index,
                   bool_parent, last_context, feed_hidden, word_dict_vec,
                   encoder_outputs, seq_mask, operator_index, first_node=False)
    outs = jax.tree_util.tree_map(jax.block_until_ready, outs)

    # cross-check the fused kernel against the unfused pure-JAX reference
    last_embedded = word_dict_vec[jnp.arange(B), input_ids]
    r_out_l, r_out_r, r_ctx, r_fh = _ref_decoder_step(
        params["raw"], last_embedded, last_context[:, 0, :], feed_hidden,
        encoder_outputs, seq_mask)
    out_l, out_r, ctx3, fh_out = outs[0], outs[1], outs[2], outs[3]
    max_err = max(
        float(jnp.max(jnp.abs(out_l - r_out_l))),
        float(jnp.max(jnp.abs(out_r - r_out_r))),
        float(jnp.max(jnp.abs(ctx3[:, 0, :] - r_ctx))),
        float(jnp.max(jnp.abs(fh_out - r_fh))),
    )
    assert max_err < 5e-3, f"mismatch vs reference: {max_err}"
    print("KERNEL_OK")
</pallas_src>

<mosaic_0001>
module attributes {stable_mosaic.version = 11 : i64} {
  func.func @_decoder_step_kernel(%arg0: memref<2x32xf32, #tpu.memory_space<vmem>>, %arg1: memref<2x32xf32, #tpu.memory_space<vmem>>, %arg2: memref<6x32xf32, #tpu.memory_space<vmem>>, %arg3: memref<16x32xf32, #tpu.memory_space<vmem>>, %arg4: memref<16x1xf32, #tpu.memory_space<vmem>>, %arg5: memref<2x6xf32, #tpu.memory_space<vmem>>, %arg6: memref<6x2xf32, #tpu.memory_space<vmem>>, %arg7: memref<2x16xf32, #tpu.memory_space<vmem>>, %arg8: memref<16x2xf32, #tpu.memory_space<vmem>>, %arg9: memref<5x64x96xf32, #tpu.memory_space<vmem>>, %arg10: memref<5x32x32xf32, #tpu.memory_space<vmem>>, %arg11: memref<5x32x32xf32, #tpu.memory_space<vmem>>, %arg12: memref<5x1x96xf32, #tpu.memory_space<vmem>>, %arg13: memref<5x1x128xf32, #tpu.memory_space<vmem>>, %arg14: memref<64x32xf32, #tpu.memory_space<vmem>>, %arg15: memref<1x32xf32, #tpu.memory_space<vmem>>, %arg16: memref<2x64x32xf32, #tpu.memory_space<vmem>>, %arg17: memref<2x1x32xf32, #tpu.memory_space<vmem>>, %arg18: memref<2x1x32xf32, #tpu.memory_space<vmem>>, %arg19: memref<2x128xf32, #tpu.memory_space<vmem>>, %arg20: memref<8x32xf32, #tpu.memory_space<vmem>>) attributes {dimension_semantics = [], scalar_prefetch = 0 : i64, scratch_operands = 0 : i64, tpu.core_type = #tpu.core_type<tc>} {
    %c0 = arith.constant 0 : index
    %c0_0 = arith.constant 0 : index
    %0 = vector.load %arg0[%c0, %c0_0] : memref<2x32xf32, #tpu.memory_space<vmem>>, vector<2x32xf32>
    %c0_1 = arith.constant 0 : index
    %c0_2 = arith.constant 0 : index
    %1 = vector.load %arg1[%c0_1, %c0_2] : memref<2x32xf32, #tpu.memory_space<vmem>>, vector<2x32xf32>
    %c0_3 = arith.constant 0 : index
    %c0_4 = arith.constant 0 : index
    %2 = vector.load %arg2[%c0_3, %c0_4] : memref<6x32xf32, #tpu.memory_space<vmem>>, vector<6x32xf32>
    %c0_5 = arith.constant 0 : index
    %c0_6 = arith.constant 0 : index
    %3 = vector.load %arg3[%c0_5, %c0_6] : memref<16x32xf32, #tpu.memory_space<vmem>>, vector<16x32xf32>
    %c0_7 = arith.constant 0 : index
    %c0_8 = arith.constant 0 : index
    %4 = vector.load %arg4[%c0_7, %c0_8] : memref<16x1xf32, #tpu.memory_space<vmem>>, vector<16x1xf32>
    %c0_9 = arith.constant 0 : index
    %c0_10 = arith.constant 0 : index
    %5 = vector.load %arg5[%c0_9, %c0_10] : memref<2x6xf32, #tpu.memory_space<vmem>>, vector<2x6xf32>
    %c0_11 = arith.constant 0 : index
    %c0_12 = arith.constant 0 : index
    %6 = vector.load %arg6[%c0_11, %c0_12] : memref<6x2xf32, #tpu.memory_space<vmem>>, vector<6x2xf32>
    %c0_13 = arith.constant 0 : index
    %c0_14 = arith.constant 0 : index
    %7 = vector.load %arg7[%c0_13, %c0_14] : memref<2x16xf32, #tpu.memory_space<vmem>>, vector<2x16xf32>
    %c0_15 = arith.constant 0 : index
    %c0_16 = arith.constant 0 : index
    %8 = vector.load %arg8[%c0_15, %c0_16] : memref<16x2xf32, #tpu.memory_space<vmem>>, vector<16x2xf32>
    %9 = tpu.concatenate %1, %0 in 1 : vector<2x32xf32>, vector<2x32xf32> -> vector<2x64xf32>
    %c0_17 = arith.constant 0 : index
    %c0_18 = arith.constant 0 : index
    %c0_19 = arith.constant 0 : index
    %10 = vector.load %arg9[%c0_17, %c0_18, %c0_19] : memref<5x64x96xf32, #tpu.memory_space<vmem>>, vector<1x64x96xf32>
    %11 = vector.shape_cast %10 : vector<1x64x96xf32> to vector<64x96xf32>
    %cst = arith.constant dense<0.000000e+00> : vector<2x96xf32>
    %12 = tpu.matmul %9, %11, %cst {dimension_numbers = #tpu.dot_dimension_numbers<[1], [0], [0], [1], [0, 0, 1, 1], [], []>} : vector<2x64xf32>, vector<64x96xf32>, vector<2x96xf32> -> vector<2x96xf32>
    %c0_20 = arith.constant 0 : index
    %c0_21 = arith.constant 0 : index
    %c0_22 = arith.constant 0 : index
    %13 = vector.load %arg12[%c0_20, %c0_21, %c0_22] : memref<5x1x96xf32, #tpu.memory_space<vmem>>, vector<1x1x96xf32>
    %14 = vector.shape_cast %13 : vector<1x1x96xf32> to vector<1x96xf32>
    %15 = vector.broadcast %14 : vector<1x96xf32> to vector<2x96xf32>
    %16 = arith.addf %12, %15 : vector<2x96xf32>
    %c0_23 = arith.constant 0 : index
    %c0_24 = arith.constant 0 : index
    %c0_25 = arith.constant 0 : index
    %17 = vector.load %arg13[%c0_23, %c0_24, %c0_25] : memref<5x1x128xf32, #tpu.memory_space<vmem>>, vector<1x1x128xf32>
    %18 = vector.shape_cast %17 : vector<1x1x128xf32> to vector<1x128xf32>
    %19 = vector.extract_strided_slice %16 {offsets = [0, 0], sizes = [2, 32], strides = [1, 1]} : vector<2x96xf32> to vector<2x32xf32>
    %20 = arith.negf %19 : vector<2x32xf32>
    %21 = math.exp %20 : vector<2x32xf32>
    %cst_26 = arith.constant 1.000000e+00 : f32
    %22 = vector.broadcast %cst_26 : f32 to vector<2x32xf32>
    %23 = arith.addf %22, %21 : vector<2x32xf32>
    %24 = arith.divf %22, %23 : vector<2x32xf32>
    %cst_27 = arith.constant 1.000000e+00 : f32
    %25 = vector.broadcast %cst_27 : f32 to vector<2x32xf32>
    %26 = arith.subf %25, %24 : vector<2x32xf32>
    %27 = arith.mulf %26, %1 : vector<2x32xf32>
    %28 = vector.extract_strided_slice %18 {offsets = [0, 0], sizes = [1, 32], strides = [1, 1]} : vector<1x128xf32> to vector<1x32xf32>
    %29 = vector.extract_strided_slice %18 {offsets = [0, 32], sizes = [1, 32], strides = [1, 1]} : vector<1x128xf32> to vector<1x32xf32>
    %cst_28 = arith.constant dense<0.000000e+00> : vector<2xf32>
    %30 = vector.multi_reduction <add>, %27, %cst_28 [1] : vector<2x32xf32> to vector<2xf32>
    %31 = vector.shape_cast %30 : vector<2xf32> to vector<2x1xf32>
    %cst_29 = arith.constant 3.200000e+01 : f32
    %32 = vector.broadcast %cst_29 : f32 to vector<2x1xf32>
    %33 = arith.divf %31, %32 : vector<2x1xf32>
    %34 = vector.broadcast %33 : vector<2x1xf32> to vector<2x32xf32>
    %35 = arith.subf %27, %34 : vector<2x32xf32>
    %36 = arith.mulf %35, %35 : vector<2x32xf32>
    %cst_30 = arith.constant dense<0.000000e+00> : vector<2xf32>
    %37 = vector.multi_reduction <add>, %36, %cst_30 [1] : vector<2x32xf32> to vector<2xf32>
    %38 = vector.shape_cast %37 : vector<2xf32> to vector<2x1xf32>
    %cst_31 = arith.constant 3.200000e+01 : f32
    %39 = vector.broadcast %cst_31 : f32 to vector<2x1xf32>
    %40 = arith.divf %38, %39 : vector<2x1xf32>
    %41 = vector.broadcast %33 : vector<2x1xf32> to vector<2x32xf32>
    %42 = arith.subf %27, %41 : vector<2x32xf32>
    %cst_32 = arith.constant 9.99999974E-6 : f32
    %43 = vector.broadcast %cst_32 : f32 to vector<2x1xf32>
    %44 = arith.addf %40, %43 : vector<2x1xf32>
    %45 = math.rsqrt %44 : vector<2x1xf32>
    %46 = vector.broadcast %45 : vector<2x1xf32> to vector<2x32xf32>
    %47 = arith.mulf %42, %46 : vector<2x32xf32>
    %48 = vector.broadcast %28 : vector<1x32xf32> to vector<2x32xf32>
    %49 = arith.mulf %47, %48 : vector<2x32xf32>
    %50 = vector.broadcast %29 : vector<1x32xf32> to vector<2x32xf32>
    %51 = arith.addf %49, %50 : vector<2x32xf32>
    %c0_33 = arith.constant 0 : index
    %c0_34 = arith.constant 0 : index
    %c0_35 = arith.constant 0 : index
    %52 = vector.load %arg10[%c0_33, %c0_34, %c0_35] : memref<5x32x32xf32, #tpu.memory_space<vmem>>, vector<1x32x32xf32>
    %53 = vector.shape_cast %52 : vector<1x32x32xf32> to vector<32x32xf32>
    %cst_36 = arith.constant dense<0.000000e+00> : vector<2x32xf32>
    %54 = tpu.matmul %51, %53, %cst_36 {dimension_numbers = #tpu.dot_dimension_numbers<[1], [0], [0], [1], [0, 0, 1, 1], [], []>} : vector<2x32xf32>, vector<32x32xf32>, vector<2x32xf32> -> vector<2x32xf32>
    %55 = vector.extract_strided_slice %16 {offsets = [0, 32], sizes = [2, 32], strides = [1, 1]} : vector<2x96xf32> to vector<2x32xf32>
    %56 = arith.addf %54, %55 : vector<2x32xf32>
    %cst_37 = arith.constant 0.000000e+00 : f32
    %57 = vector.broadcast %cst_37 : f32 to vector<2x32xf32>
    %58 = arith.maximumf %56, %57 : vector<2x32xf32>
    %c0_38 = arith.constant 0 : index
    %c0_39 = arith.constant 0 : index
    %c0_40 = arith.constant 0 : index
    %59 = vector.load %arg11[%c0_38, %c0_39, %c0_40] : memref<5x32x32xf32, #tpu.memory_space<vmem>>, vector<1x32x32xf32>
    %60 = vector.shape_cast %59 : vector<1x32x32xf32> to vector<32x32xf32>
    %cst_41 = arith.constant dense<0.000000e+00> : vector<2x32xf32>
    %61 = tpu.matmul %58, %60, %cst_41 {dimension_numbers = #tpu.dot_dimension_numbers<[1], [0], [0], [1], [0, 0, 1, 1], [], []>} : vector<2x32xf32>, vector<32x32xf32>, vector<2x32xf32> -> vector<2x32xf32>
    %62 = vector.extract_strided_slice %16 {offsets = [0, 64], sizes = [2, 32], strides = [1, 1]} : vector<2x96xf32> to vector<2x32xf32>
    %63 = arith.addf %61, %62 : vector<2x32xf32>
    %64 = arith.negf %63 : vector<2x32xf32>
    %65 = math.exp %64 : vector<2x32xf32>
    %cst_42 = arith.constant 1.000000e+00 : f32
    %66 = vector.broadcast %cst_42 : f32 to vector<2x32xf32>
    %67 = arith.addf %66, %65 : vector<2x32xf32>
    %68 = arith.divf %66, %67 : vector<2x32xf32>
    %69 = arith.mulf %58, %68 : vector<2x32xf32>
    %70 = vector.extract_strided_slice %18 {offsets = [0, 64], sizes = [1, 32], strides = [1, 1]} : vector<1x128xf32> to vector<1x32xf32>
    %71 = vector.extract_strided_slice %18 {offsets = [0, 96], sizes = [1, 32], strides = [1, 1]} : vector<1x128xf32> to vector<1x32xf32>
    %cst_43 = arith.constant dense<0.000000e+00> : vector<2xf32>
    %72 = vector.multi_reduction <add>, %69, %cst_43 [1] : vector<2x32xf32> to vector<2xf32>
    %73 = vector.shape_cast %72 : vector<2xf32> to vector<2x1xf32>
    %cst_44 = arith.constant 3.200000e+01 : f32
    %74 = vector.broadcast %cst_44 : f32 to vector<2x1xf32>
    %75 = arith.divf %73, %74 : vector<2x1xf32>
    %76 = vector.broadcast %75 : vector<2x1xf32> to vector<2x32xf32>
    %77 = arith.subf %69, %76 : vector<2x32xf32>
    %78 = arith.mulf %77, %77 : vector<2x32xf32>
    %cst_45 = arith.constant dense<0.000000e+00> : vector<2xf32>
    %79 = vector.multi_reduction <add>, %78, %cst_45 [1] : vector<2x32xf32> to vector<2xf32>
    %80 = vector.shape_cast %79 : vector<2xf32> to vector<2x1xf32>
    %cst_46 = arith.constant 3.200000e+01 : f32
    %81 = vector.broadcast %cst_46 : f32 to vector<2x1xf32>
    %82 = arith.divf %80, %81 : vector<2x1xf32>
    %83 = vector.broadcast %75 : vector<2x1xf32> to vector<2x32xf32>
    %84 = arith.subf %69, %83 : vector<2x32xf32>
    %cst_47 = arith.constant 9.99999974E-6 : f32
    %85 = vector.broadcast %cst_47 : f32 to vector<2x1xf32>
    %86 = arith.addf %82, %85 : vector<2x1xf32>
    %87 = math.rsqrt %86 : vector<2x1xf32>
    %88 = vector.broadcast %87 : vector<2x1xf32> to vector<2x32xf32>
    %89 = arith.mulf %84, %88 : vector<2x32xf32>
    %90 = vector.broadcast %70 : vector<1x32xf32> to vector<2x32xf32>
    %91 = arith.mulf %89, %90 : vector<2x32xf32>
    %92 = vector.broadcast %71 : vector<1x32xf32> to vector<2x32xf32>
    %93 = arith.addf %91, %92 : vector<2x32xf32>
    %94 = arith.subf %51, %93 : vector<2x32xf32>
    %95 = vector.extract_strided_slice %2 {offsets = [4, 0], sizes = [2, 32], strides = [1, 1]} : vector<6x32xf32> to vector<2x32xf32>
    %96 = tpu.concatenate %95, %0 in 1 : vector<2x32xf32>, vector<2x32xf32> -> vector<2x64xf32>
    %c1 = arith.constant 1 : index
    %c0_48 = arith.constant 0 : index
    %c0_49 = arith.constant 0 : index
    %97 = vector.load %arg9[%c1, %c0_48, %c0_49] : memref<5x64x96xf32, #tpu.memory_space<vmem>>, vector<1x64x96xf32>
    %98 = vector.shape_cast %97 : vector<1x64x96xf32> to vector<64x96xf32>
    %cst_50 = arith.constant dense<0.000000e+00> : vector<2x96xf32>
    %99 = tpu.matmul %96, %98, %cst_50 {dimension_numbers = #tpu.dot_dimension_numbers<[1], [0], [0], [1], [0, 0, 1, 1], [], []>} : vector<2x64xf32>, vector<64x96xf32>, vector<2x96xf32> -> vector<2x96xf32>
    %c1_51 = arith.constant 1 : index
    %c0_52 = arith.constant 0 : index
    %c0_53 = arith.constant 0 : index
    %100 = vector.load %arg12[%c1_51, %c0_52, %c0_53] : memref<5x1x96xf32, #tpu.memory_space<vmem>>, vector<1x1x96xf32>
    %101 = vector.shape_cast %100 : vector<1x1x96xf32> to vector<1x96xf32>
    %102 = vector.broadcast %101 : vector<1x96xf32> to vector<2x96xf32>
    %103 = arith.addf %99, %102 : vector<2x96xf32>
    %c1_54 = arith.constant 1 : index
    %c0_55 = arith.constant 0 : index
    %c0_56 = arith.constant 0 : index
    %104 = vector.load %arg13[%c1_54, %c0_55, %c0_56] : memref<5x1x128xf32, #tpu.memory_space<vmem>>, vector<1x1x128xf32>
    %105 = vector.shape_cast %104 : vector<1x1x128xf32> to vector<1x128xf32>
    %106 = vector.extract_strided_slice %103 {offsets = [0, 0], sizes = [2, 32], strides = [1, 1]} : vector<2x96xf32> to vector<2x32xf32>
    %107 = arith.negf %106 : vector<2x32xf32>
    %108 = math.exp %107 : vector<2x32xf32>
    %cst_57 = arith.constant 1.000000e+00 : f32
    %109 = vector.broadcast %cst_57 : f32 to vector<2x32xf32>
    %110 = arith.addf %109, %108 : vector<2x32xf32>
    %111 = arith.divf %109, %110 : vector<2x32xf32>
    %cst_58 = arith.constant 1.000000e+00 : f32
    %112 = vector.broadcast %cst_58 : f32 to vector<2x32xf32>
    %113 = arith.subf %112, %111 : vector<2x32xf32>
    %114 = arith.mulf %113, %95 : vector<2x32xf32>
    %115 = vector.extract_strided_slice %105 {offsets = [0, 0], sizes = [1, 32], strides = [1, 1]} : vector<1x128xf32> to vector<1x32xf32>
    %116 = vector.extract_strided_slice %105 {offsets = [0, 32], sizes = [1, 32], strides = [1, 1]} : vector<1x128xf32> to vector<1x32xf32>
    %cst_59 = arith.constant dense<0.000000e+00> : vector<2xf32>
    %117 = vector.multi_reduction <add>, %114, %cst_59 [1] : vector<2x32xf32> to vector<2xf32>
    %118 = vector.shape_cast %117 : vector<2xf32> to vector<2x1xf32>
    %cst_60 = arith.constant 3.200000e+01 : f32
    %119 = vector.broadcast %cst_60 : f32 to vector<2x1xf32>
    %120 = arith.divf %118, %119 : vector<2x1xf32>
    %121 = vector.broadcast %120 : vector<2x1xf32> to vector<2x32xf32>
    %122 = arith.subf %114, %121 : vector<2x32xf32>
    %123 = arith.mulf %122, %122 : vector<2x32xf32>
    %cst_61 = arith.constant dense<0.000000e+00> : vector<2xf32>
    %124 = vector.multi_reduction <add>, %123, %cst_61 [1] : vector<2x32xf32> to vector<2xf32>
    %125 = vector.shape_cast %124 : vector<2xf32> to vector<2x1xf32>
    %cst_62 = arith.constant 3.200000e+01 : f32
    %126 = vector.broadcast %cst_62 : f32 to vector<2x1xf32>
    %127 = arith.divf %125, %126 : vector<2x1xf32>
    %128 = vector.broadcast %120 : vector<2x1xf32> to vector<2x32xf32>
    %129 = arith.subf %114, %128 : vector<2x32xf32>
    %cst_63 = arith.constant 9.99999974E-6 : f32
    %130 = vector.broadcast %cst_63 : f32 to vector<2x1xf32>
    %131 = arith.addf %127, %130 : vector<2x1xf32>
    %132 = math.rsqrt %131 : vector<2x1xf32>
    %133 = vector.broadcast %132 : vector<2x1xf32> to vector<2x32xf32>
    %134 = arith.mulf %129, %133 : vector<2x32xf32>
    %135 = vector.broadcast %115 : vector<1x32xf32> to vector<2x32xf32>
    %136 = arith.mulf %134, %135 : vector<2x32xf32>
    %137 = vector.broadcast %116 : vector<1x32xf32> to vector<2x32xf32>
    %138 = arith.addf %136, %137 : vector<2x32xf32>
    %c1_64 = arith.constant 1 : index
    %c0_65 = arith.constant 0 : index
    %c0_66 = arith.constant 0 : index
    %139 = vector.load %arg10[%c1_64, %c0_65, %c0_66] : memref<5x32x32xf32, #tpu.memory_space<vmem>>, vector<1x32x32xf32>
    %140 = vector.shape_cast %139 : vector<1x32x32xf32> to vector<32x32xf32>
    %cst_67 = arith.constant dense<0.000000e+00> : vector<2x32xf32>
    %141 = tpu.matmul %138, %140, %cst_67 {dimension_numbers = #tpu.dot_dimension_numbers<[1], [0], [0], [1], [0, 0, 1, 1], [], []>} : vector<2x32xf32>, vector<32x32xf32>, vector<2x32xf32> -> vector<2x32xf32>
    %142 = vector.extract_strided_slice %103 {offsets = [0, 32], sizes = [2, 32], strides = [1, 1]} : vector<2x96xf32> to vector<2x32xf32>
    %143 = arith.addf %141, %142 : vector<2x32xf32>
    %cst_68 = arith.constant 0.000000e+00 : f32
    %144 = vector.broadcast %cst_68 : f32 to vector<2x32xf32>
    %145 = arith.maximumf %143, %144 : vector<2x32xf32>
    %c1_69 = arith.constant 1 : index
    %c0_70 = arith.constant 0 : index
    %c0_71 = arith.constant 0 : index
    %146 = vector.load %arg11[%c1_69, %c0_70, %c0_71] : memref<5x32x32xf32, #tpu.memory_space<vmem>>, vector<1x32x32xf32>
    %147 = vector.shape_cast %146 : vector<1x32x32xf32> to vector<32x32xf32>
    %cst_72 = arith.constant dense<0.000000e+00> : vector<2x32xf32>
    %148 = tpu.matmul %145, %147, %cst_72 {dimension_numbers = #tpu.dot_dimension_numbers<[1], [0], [0], [1], [0, 0, 1, 1], [], []>} : vector<2x32xf32>, vector<32x32xf32>, vector<2x32xf32> -> vector<2x32xf32>
    %149 = vector.extract_strided_slice %103 {offsets = [0, 64], sizes = [2, 32], strides = [1, 1]} : vector<2x96xf32> to vector<2x32xf32>
    %150 = arith.addf %148, %149 : vector<2x32xf32>
    %151 = arith.negf %150 : vector<2x32xf32>
    %152 = math.exp %151 : vector<2x32xf32>
    %cst_73 = arith.constant 1.000000e+00 : f32
    %153 = vector.broadcast %cst_73 : f32 to vector<2x32xf32>
    %154 = arith.addf %153, %152 : vector<2x32xf32>
    %155 = arith.divf %153, %154 : vector<2x32xf32>
    %156 = arith.mulf %145, %155 : vector<2x32xf32>
    %157 = vector.extract_strided_slice %105 {offsets = [0, 64], sizes = [1, 32], strides = [1, 1]} : vector<1x128xf32> to vector<1x32xf32>
    %158 = vector.extract_strided_slice %105 {offsets = [0, 96], sizes = [1, 32], strides = [1, 1]} : vector<1x128xf32> to vector<1x32xf32>
    %cst_74 = arith.constant dense<0.000000e+00> : vector<2xf32>
    %159 = vector.multi_reduction <add>, %156, %cst_74 [1] : vector<2x32xf32> to vector<2xf32>
    %160 = vector.shape_cast %159 : vector<2xf32> to vector<2x1xf32>
    %cst_75 = arith.constant 3.200000e+01 : f32
    %161 = vector.broadcast %cst_75 : f32 to vector<2x1xf32>
    %162 = arith.divf %160, %161 : vector<2x1xf32>
    %163 = vector.broadcast %162 : vector<2x1xf32> to vector<2x32xf32>
    %164 = arith.subf %156, %163 : vector<2x32xf32>
    %165 = arith.mulf %164, %164 : vector<2x32xf32>
    %cst_76 = arith.constant dense<0.000000e+00> : vector<2xf32>
    %166 = vector.multi_reduction <add>, %165, %cst_76 [1] : vector<2x32xf32> to vector<2xf32>
    %167 = vector.shape_cast %166 : vector<2xf32> to vector<2x1xf32>
    %cst_77 = arith.constant 3.200000e+01 : f32
    %168 = vector.broadcast %cst_77 : f32 to vector<2x1xf32>
    %169 = arith.divf %167, %168 : vector<2x1xf32>
    %170 = vector.broadcast %162 : vector<2x1xf32> to vector<2x32xf32>
    %171 = arith.subf %156, %170 : vector<2x32xf32>
    %cst_78 = arith.constant 9.99999974E-6 : f32
    %172 = vector.broadcast %cst_78 : f32 to vector<2x1xf32>
    %173 = arith.addf %169, %172 : vector<2x1xf32>
    %174 = math.rsqrt %173 : vector<2x1xf32>
    %175 = vector.broadcast %174 : vector<2x1xf32> to vector<2x32xf32>
    %176 = arith.mulf %171, %175 : vector<2x32xf32>
    %177 = vector.broadcast %157 : vector<1x32xf32> to vector<2x32xf32>
    %178 = arith.mulf %176, %177 : vector<2x32xf32>
    %179 = vector.broadcast %158 : vector<1x32xf32> to vector<2x32xf32>
    %180 = arith.addf %178, %179 : vector<2x32xf32>
    %181 = arith.subf %138, %180 : vector<2x32xf32>
    %182 = tpu.concatenate %181, %94 in 1 : vector<2x32xf32>, vector<2x32xf32> -> vector<2x64xf32>
    %c0_79 = arith.constant 0 : index
    %c0_80 = arith.constant 0 : index
    %183 = vector.load %arg14[%c0_79, %c0_80] : memref<64x32xf32, #tpu.memory_space<vmem>>, vector<64x32xf32>
    %cst_81 = arith.constant dense<0.000000e+00> : vector<2x32xf32>
    %184 = tpu.matmul %182, %183, %cst_81 {dimension_numbers = #tpu.dot_dimension_numbers<[1], [0], [0], [1], [0, 0, 1, 1], [], []>} : vector<2x64xf32>, vector<64x32xf32>, vector<2x32xf32> -> vector<2x32xf32>
    %c0_82 = arith.constant 0 : index
    %c0_83 = arith.constant 0 : index
    %185 = vector.load %arg15[%c0_82, %c0_83] : memref<1x32xf32, #tpu.memory_space<vmem>>, vector<1x32xf32>
    %186 = vector.broadcast %185 : vector<1x32xf32> to vector<2x32xf32>
    %187 = arith.addf %184, %186 : vector<2x32xf32>
    %cst_84 = arith.constant 0.000000e+00 : f32
    %188 = vector.broadcast %cst_84 : f32 to vector<2x32xf32>
    %189 = arith.maximumf %187, %188 : vector<2x32xf32>
    %190 = tpu.concatenate %189, %189, %189 in 0 : vector<2x32xf32>, vector<2x32xf32>, vector<2x32xf32> -> vector<6x32xf32>
    %191 = tpu.concatenate %2, %190 in 1 : vector<6x32xf32>, vector<6x32xf32> -> vector<6x64xf32>
    %c2 = arith.constant 2 : index
    %c0_85 = arith.constant 0 : index
    %c0_86 = arith.constant 0 : index
    %192 = vector.load %arg9[%c2, %c0_85, %c0_86] : memref<5x64x96xf32, #tpu.memory_space<vmem>>, vector<1x64x96xf32>
    %193 = vector.shape_cast %192 : vector<1x64x96xf32> to vector<64x96xf32>
    %cst_87 = arith.constant dense<0.000000e+00> : vector<6x96xf32>
    %194 = tpu.matmul %191, %193, %cst_87 {dimension_numbers = #tpu.dot_dimension_numbers<[1], [0], [0], [1], [0, 0, 1, 1], [], []>} : vector<6x64xf32>, vector<64x96xf32>, vector<6x96xf32> -> vector<6x96xf32>
    %c2_88 = arith.constant 2 : index
    %c0_89 = arith.constant 0 : index
    %c0_90 = arith.constant 0 : index
    %195 = vector.load %arg12[%c2_88, %c0_89, %c0_90] : memref<5x1x96xf32, #tpu.memory_space<vmem>>, vector<1x1x96xf32>
    %196 = vector.shape_cast %195 : vector<1x1x96xf32> to vector<1x96xf32>
    %197 = vector.broadcast %196 : vector<1x96xf32> to vector<6x96xf32>
    %198 = arith.addf %194, %197 : vector<6x96xf32>
    %c2_91 = arith.constant 2 : index
    %c0_92 = arith.constant 0 : index
    %c0_93 = arith.constant 0 : index
    %199 = vector.load %arg13[%c2_91, %c0_92, %c0_93] : memref<5x1x128xf32, #tpu.memory_space<vmem>>, vector<1x1x128xf32>
    %200 = vector.shape_cast %199 : vector<1x1x128xf32> to vector<1x128xf32>
    %201 = vector.extract_strided_slice %198 {offsets = [0, 0], sizes = [6, 32], strides = [1, 1]} : vector<6x96xf32> to vector<6x32xf32>
    %202 = arith.negf %201 : vector<6x32xf32>
    %203 = math.exp %202 : vector<6x32xf32>
    %cst_94 = arith.constant 1.000000e+00 : f32
    %204 = vector.broadcast %cst_94 : f32 to vector<6x32xf32>
    %205 = arith.addf %204, %203 : vector<6x32xf32>
    %206 = arith.divf %204, %205 : vector<6x32xf32>
    %cst_95 = arith.constant 1.000000e+00 : f32
    %207 = vector.broadcast %cst_95 : f32 to vector<6x32xf32>
    %208 = arith.subf %207, %206 : vector<6x32xf32>
    %209 = arith.mulf %208, %2 : vector<6x32xf32>
    %210 = vector.extract_strided_slice %200 {offsets = [0, 0], sizes = [1, 32], strides = [1, 1]} : vector<1x128xf32> to vector<1x32xf32>
    %211 = vector.extract_strided_slice %200 {offsets = [0, 32], sizes = [1, 32], strides = [1, 1]} : vector<1x128xf32> to vector<1x32xf32>
    %cst_96 = arith.constant dense<0.000000e+00> : vector<6xf32>
    %212 = vector.multi_reduction <add>, %209, %cst_96 [1] : vector<6x32xf32> to vector<6xf32>
    %213 = vector.shape_cast %212 : vector<6xf32> to vector<6x1xf32>
    %cst_97 = arith.constant 3.200000e+01 : f32
    %214 = vector.broadcast %cst_97 : f32 to vector<6x1xf32>
    %215 = arith.divf %213, %214 : vector<6x1xf32>
    %216 = vector.broadcast %215 : vector<6x1xf32> to vector<6x32xf32>
    %217 = arith.subf %209, %216 : vector<6x32xf32>
    %218 = arith.mulf %217, %217 : vector<6x32xf32>
    %cst_98 = arith.constant dense<0.000000e+00> : vector<6xf32>
    %219 = vector.multi_reduction <add>, %218, %cst_98 [1] : vector<6x32xf32> to vector<6xf32>
    %220 = vector.shape_cast %219 : vector<6xf32> to vector<6x1xf32>
    %cst_99 = arith.constant 3.200000e+01 : f32
    %221 = vector.broadcast %cst_99 : f32 to vector<6x1xf32>
    %222 = arith.divf %220, %221 : vector<6x1xf32>
    %223 = vector.broadcast %215 : vector<6x1xf32> to vector<6x32xf32>
    %224 = arith.subf %209, %223 : vector<6x32xf32>
    %cst_100 = arith.constant 9.99999974E-6 : f32
    %225 = vector.broadcast %cst_100 : f32 to vector<6x1xf32>
    %226 = arith.addf %222, %225 : vector<6x1xf32>
    %227 = math.rsqrt %226 : vector<6x1xf32>
    %228 = vector.broadcast %227 : vector<6x1xf32> to vector<6x32xf32>
    %229 = arith.mulf %224, %228 : vector<6x32xf32>
    %230 = vector.broadcast %210 : vector<1x32xf32> to vector<6x32xf32>
    %231 = arith.mulf %229, %230 : vector<6x32xf32>
    %232 = vector.broadcast %211 : vector<1x32xf32> to vector<6x32xf32>
    %233 = arith.addf %231, %232 : vector<6x32xf32>
    %c2_101 = arith.constant 2 : index
    %c0_102 = arith.constant 0 : index
    %c0_103 = arith.constant 0 : index
    %234 = vector.load %arg10[%c2_101, %c0_102, %c0_103] : memref<5x32x32xf32, #tpu.memory_space<vmem>>, vector<1x32x32xf32>
    %235 = vector.shape_cast %234 : vector<1x32x32xf32> to vector<32x32xf32>
    %cst_104 = arith.constant dense<0.000000e+00> : vector<6x32xf32>
    %236 = tpu.matmul %233, %235, %cst_104 {dimension_numbers = #tpu.dot_dimension_numbers<[1], [0], [0], [1], [0, 0, 1, 1], [], []>} : vector<6x32xf32>, vector<32x32xf32>, vector<6x32xf32> -> vector<6x32xf32>
    %237 = vector.extract_strided_slice %198 {offsets = [0, 32], sizes = [6, 32], strides = [1, 1]} : vector<6x96xf32> to vector<6x32xf32>
    %238 = arith.addf %236, %237 : vector<6x32xf32>
    %cst_105 = arith.constant 0.000000e+00 : f32
    %239 = vector.broadcast %cst_105 : f32 to vector<6x32xf32>
    %240 = arith.maximumf %238, %239 : vector<6x32xf32>
    %c2_106 = arith.constant 2 : index
    %c0_107 = arith.constant 0 : index
    %c0_108 = arith.constant 0 : index
    %241 = vector.load %arg11[%c2_106, %c0_107, %c0_108] : memref<5x32x32xf32, #tpu.memory_space<vmem>>, vector<1x32x32xf32>
    %242 = vector.shape_cast %241 : vector<1x32x32xf32> to vector<32x32xf32>
    %cst_109 = arith.constant dense<0.000000e+00> : vector<6x32xf32>
    %243 = tpu.matmul %240, %242, %cst_109 {dimension_numbers = #tpu.dot_dimension_numbers<[1], [0], [0], [1], [0, 0, 1, 1], [], []>} : vector<6x32xf32>, vector<32x32xf32>, vector<6x32xf32> -> vector<6x32xf32>
    %244 = vector.extract_strided_slice %198 {offsets = [0, 64], sizes = [6, 32], strides = [1, 1]} : vector<6x96xf32> to vector<6x32xf32>
    %245 = arith.addf %243, %244 : vector<6x32xf32>
    %246 = arith.negf %245 : vector<6x32xf32>
    %247 = math.exp %246 : vector<6x32xf32>
    %cst_110 = arith.constant 1.000000e+00 : f32
    %248 = vector.broadcast %cst_110 : f32 to vector<6x32xf32>
    %249 = arith.addf %248, %247 : vector<6x32xf32>
    %250 = arith.divf %248, %249 : vector<6x32xf32>
    %251 = arith.mulf %240, %250 : vector<6x32xf32>
    %252 = vector.extract_strided_slice %200 {offsets = [0, 64], sizes = [1, 32], strides = [1, 1]} : vector<1x128xf32> to vector<1x32xf32>
    %253 = vector.extract_strided_slice %200 {offsets = [0, 96], sizes = [1, 32], strides = [1, 1]} : vector<1x128xf32> to vector<1x32xf32>
    %cst_111 = arith.constant dense<0.000000e+00> : vector<6xf32>
    %254 = vector.multi_reduction <add>, %251, %cst_111 [1] : vector<6x32xf32> to vector<6xf32>
    %255 = vector.shape_cast %254 : vector<6xf32> to vector<6x1xf32>
    %cst_112 = arith.constant 3.200000e+01 : f32
    %256 = vector.broadcast %cst_112 : f32 to vector<6x1xf32>
    %257 = arith.divf %255, %256 : vector<6x1xf32>
    %258 = vector.broadcast %257 : vector<6x1xf32> to vector<6x32xf32>
    %259 = arith.subf %251, %258 : vector<6x32xf32>
    %260 = arith.mulf %259, %259 : vector<6x32xf32>
    %cst_113 = arith.constant dense<0.000000e+00> : vector<6xf32>
    %261 = vector.multi_reduction <add>, %260, %cst_113 [1] : vector<6x32xf32> to vector<6xf32>
    %262 = vector.shape_cast %261 : vector<6xf32> to vector<6x1xf32>
    %cst_114 = arith.constant 3.200000e+01 : f32
    %263 = vector.broadcast %cst_114 : f32 to vector<6x1xf32>
    %264 = arith.divf %262, %263 : vector<6x1xf32>
    %265 = vector.broadcast %257 : vector<6x1xf32> to vector<6x32xf32>
    %266 = arith.subf %251, %265 : vector<6x32xf32>
    %cst_115 = arith.constant 9.99999974E-6 : f32
    %267 = vector.broadcast %cst_115 : f32 to vector<6x1xf32>
    %268 = arith.addf %264, %267 : vector<6x1xf32>
    %269 = math.rsqrt %268 : vector<6x1xf32>
    %270 = vector.broadcast %269 : vector<6x1xf32> to vector<6x32xf32>
    %271 = arith.mulf %266, %270 : vector<6x32xf32>
    %272 = vector.broadcast %252 : vector<1x32xf32> to vector<6x32xf32>
    %273 = arith.mulf %271, %272 : vector<6x32xf32>
    %274 = vector.broadcast %253 : vector<1x32xf32> to vector<6x32xf32>
    %275 = arith.addf %273, %274 : vector<6x32xf32>
    %276 = arith.subf %233, %275 : vector<6x32xf32>
    %277 = vector.extract_strided_slice %276 {offsets = [4, 0], sizes = [2, 32], strides = [1, 1]} : vector<6x32xf32> to vector<2x32xf32>
    %278 = tpu.concatenate %277, %277, %277 in 0 : vector<2x32xf32>, vector<2x32xf32>, vector<2x32xf32> -> vector<6x32xf32>
    %279 = tpu.concatenate %278, %276 in 1 : vector<6x32xf32>, vector<6x32xf32> -> vector<6x64xf32>
    %c0_116 = arith.constant 0 : index
    %c0_117 = arith.constant 0 : index
    %c0_118 = arith.constant 0 : index
    %280 = vector.load %arg16[%c0_116, %c0_117, %c0_118] : memref<2x64x32xf32, #tpu.memory_space<vmem>>, vector<1x64x32xf32>
    %281 = vector.shape_cast %280 : vector<1x64x32xf32> to vector<64x32xf32>
    %cst_119 = arith.constant dense<0.000000e+00> : vector<6x32xf32>
    %282 = tpu.matmul %279, %281, %cst_119 {dimension_numbers = #tpu.dot_dimension_numbers<[1], [0], [0], [1], [0, 0, 1, 1], [], []>} : vector<6x64xf32>, vector<64x32xf32>, vector<6x32xf32> -> vector<6x32xf32>
    %c0_120 = arith.constant 0 : index
    %c0_121 = arith.constant 0 : index
    %c0_122 = arith.constant 0 : index
    %283 = vector.load %arg17[%c0_120, %c0_121, %c0_122] : memref<2x1x32xf32, #tpu.memory_space<vmem>>, vector<1x1x32xf32>
    %284 = vector.shape_cast %283 : vector<1x1x32xf32> to vector<1x32xf32>
    %285 = vector.broadcast %284 : vector<1x32xf32> to vector<6x32xf32>
    %286 = arith.addf %282, %285 : vector<6x32xf32>
    %287 = math.tanh %286 : vector<6x32xf32>
    %c0_123 = arith.constant 0 : index
    %c0_124 = arith.constant 0 : index
    %c0_125 = arith.constant 0 : index
    %288 = vector.load %arg18[%c0_123, %c0_124, %c0_125] : memref<2x1x32xf32, #tpu.memory_space<vmem>>, vector<1x1x32xf32>
    %289 = vector.shape_cast %288 : vector<1x1x32xf32> to vector<1x32xf32>
    %290 = vector.broadcast %289 : vector<1x32xf32> to vector<6x32xf32>
    %291 = arith.mulf %287, %290 : vector<6x32xf32>
    %cst_126 = arith.constant dense<0.000000e+00> : vector<6xf32>
    %292 = vector.multi_reduction <add>, %291, %cst_126 [1] : vector<6x32xf32> to vector<6xf32>
    %293 = vector.shape_cast %292 : vector<6xf32> to vector<6x1xf32>
    %cst_127 = arith.constant 0.000000e+00 : f32
    %294 = vector.broadcast %cst_127 : f32 to vector<6x1xf32>
    %295 = vector.extract_strided_slice %6 {offsets = [0, 0], sizes = [6, 1], strides = [1, 1]} : vector<6x2xf32> to vector<6x1xf32>
    %cst_128 = arith.constant 5.000000e-01 : f32
    %296 = vector.broadcast %cst_128 : f32 to vector<6x1xf32>
    %297 = arith.cmpf ogt, %295, %296 : vector<6x1xf32>
    %cst_129 = arith.constant -1.000000e+30 : f32
    %298 = vector.broadcast %cst_129 : f32 to vector<6x1xf32>
    %299 = arith.select %297, %293, %298 : vector<6x1xi1>, vector<6x1xf32>
    %cst_130 = arith.constant dense<0xFF800000> : vector<1xf32>
    %300 = vector.multi_reduction <maximumf>, %299, %cst_130 [0] : vector<6x1xf32> to vector<1xf32>
    %301 = vector.shape_cast %300 : vector<1xf32> to vector<1x1xf32>
    %302 = vector.broadcast %301 : vector<1x1xf32> to vector<6x1xf32>
    %303 = arith.mulf %302, %295 : vector<6x1xf32>
    %304 = arith.addf %294, %303 : vector<6x1xf32>
    %305 = vector.extract_strided_slice %6 {offsets = [0, 1], sizes = [6, 1], strides = [1, 1]} : vector<6x2xf32> to vector<6x1xf32>
    %cst_131 = arith.constant 5.000000e-01 : f32
    %306 = vector.broadcast %cst_131 : f32 to vector<6x1xf32>
    %307 = arith.cmpf ogt, %305, %306 : vector<6x1xf32>
    %cst_132 = arith.constant -1.000000e+30 : f32
    %308 = vector.broadcast %cst_132 : f32 to vector<6x1xf32>
    %309 = arith.select %307, %293, %308 : vector<6x1xi1>, vector<6x1xf32>
    %cst_133 = arith.constant dense<0xFF800000> : vector<1xf32>
    %310 = vector.multi_reduction <maximumf>, %309, %cst_133 [0] : vector<6x1xf32> to vector<1xf32>
    %311 = vector.shape_cast %310 : vector<1xf32> to vector<1x1xf32>
    %312 = vector.broadcast %311 : vector<1x1xf32> to vector<6x1xf32>
    %313 = arith.mulf %312, %305 : vector<6x1xf32>
    %314 = arith.addf %304, %313 : vector<6x1xf32>
    %315 = arith.subf %293, %314 : vector<6x1xf32>
    %316 = math.exp %315 : vector<6x1xf32>
    %317 = vector.broadcast %316 : vector<6x1xf32> to vector<6x32xf32>
    %318 = arith.mulf %317, %276 : vector<6x32xf32>
    %cst_134 = arith.constant dense<0.000000e+00> : vector<2x32xf32>
    %319 = tpu.matmul %5, %318, %cst_134 {dimension_numbers = #tpu.dot_dimension_numbers<[1], [0], [0], [1], [0, 0, 1, 1], [], []>} : vector<2x6xf32>, vector<6x32xf32>, vector<2x32xf32> -> vector<2x32xf32>
    %cst_135 = arith.constant dense<0.000000e+00> : vector<2x1xf32>
    %320 = tpu.matmul %5, %316, %cst_135 {dimension_numbers = #tpu.dot_dimension_numbers<[1], [0], [0], [1], [0, 0, 1, 1], [], []>} : vector<2x6xf32>, vector<6x1xf32>, vector<2x1xf32> -> vector<2x1xf32>
    %321 = vector.broadcast %320 : vector<2x1xf32> to vector<2x32xf32>
    %322 = arith.divf %319, %321 : vector<2x32xf32>
    %323 = tpu.concatenate %322, %322, %322, %322, %322, %322, %322, %322 in 0 : vector<2x32xf32>, vector<2x32xf32>, vector<2x32xf32>, vector<2x32xf32>, vector<2x32xf32>, vector<2x32xf32>, vector<2x32xf32>, vector<2x32xf32> -> vector<16x32xf32>
    %324 = tpu.concatenate %323, %3 in 1 : vector<16x32xf32>, vector<16x32xf32> -> vector<16x64xf32>
    %c1_136 = arith.constant 1 : index
    %c0_137 = arith.constant 0 : index
    %c0_138 = arith.constant 0 : index
    %325 = vector.load %arg16[%c1_136, %c0_137, %c0_138] : memref<2x64x32xf32, #tpu.memory_space<vmem>>, vector<1x64x32xf32>
    %326 = vector.shape_cast %325 : vector<1x64x32xf32> to vector<64x32xf32>
    %cst_139 = arith.constant dense<0.000000e+00> : vector<16x32xf32>
    %327 = tpu.matmul %324, %326, %cst_139 {dimension_numbers = #tpu.dot_dimension_numbers<[1], [0], [0], [1], [0, 0, 1, 1], [], []>} : vector<16x64xf32>, vector<64x32xf32>, vector<16x32xf32> -> vector<16x32xf32>
    %c1_140 = arith.constant 1 : index
    %c0_141 = arith.constant 0 : index
    %c0_142 = arith.constant 0 : index
    %328 = vector.load %arg17[%c1_140, %c0_141, %c0_142] : memref<2x1x32xf32, #tpu.memory_space<vmem>>, vector<1x1x32xf32>
    %329 = vector.shape_cast %328 : vector<1x1x32xf32> to vector<1x32xf32>
    %330 = vector.broadcast %329 : vector<1x32xf32> to vector<16x32xf32>
    %331 = arith.addf %327, %330 : vector<16x32xf32>
    %332 = math.tanh %331 : vector<16x32xf32>
    %c1_143 = arith.constant 1 : index
    %c0_144 = arith.constant 0 : index
    %c0_145 = arith.constant 0 : index
    %333 = vector.load %arg18[%c1_143, %c0_144, %c0_145] : memref<2x1x32xf32, #tpu.memory_space<vmem>>, vector<1x1x32xf32>
    %334 = vector.shape_cast %333 : vector<1x1x32xf32> to vector<1x32xf32>
    %335 = vector.broadcast %334 : vector<1x32xf32> to vector<16x32xf32>
    %336 = arith.mulf %332, %335 : vector<16x32xf32>
    %cst_146 = arith.constant dense<0.000000e+00> : vector<16xf32>
    %337 = vector.multi_reduction <add>, %336, %cst_146 [1] : vector<16x32xf32> to vector<16xf32>
    %338 = vector.shape_cast %337 : vector<16xf32> to vector<16x1xf32>
    %cst_147 = arith.constant 5.000000e-01 : f32
    %339 = vector.broadcast %cst_147 : f32 to vector<16x1xf32>
    %340 = arith.cmpf ogt, %4, %339 : vector<16x1xf32>
    %cst_148 = arith.constant -9.99999995E+11 : f32
    %341 = vector.broadcast %cst_148 : f32 to vector<16x1xf32>
    %342 = arith.select %340, %341, %338 : vector<16x1xi1>, vector<16x1xf32>
    %cst_149 = arith.constant 0.000000e+00 : f32
    %343 = vector.broadcast %cst_149 : f32 to vector<16x1xf32>
    %344 = vector.extract_strided_slice %8 {offsets = [0, 0], sizes = [16, 1], strides = [1, 1]} : vector<16x2xf32> to vector<16x1xf32>
    %cst_150 = arith.constant 5.000000e-01 : f32
    %345 = vector.broadcast %cst_150 : f32 to vector<16x1xf32>
    %346 = arith.cmpf ogt, %344, %345 : vector<16x1xf32>
    %cst_151 = arith.constant -1.000000e+30 : f32
    %347 = vector.broadcast %cst_151 : f32 to vector<16x1xf32>
    %348 = arith.select %346, %342, %347 : vector<16x1xi1>, vector<16x1xf32>
    %cst_152 = arith.constant dense<0xFF800000> : vector<1xf32>
    %349 = vector.multi_reduction <maximumf>, %348, %cst_152 [0] : vector<16x1xf32> to vector<1xf32>
    %350 = vector.shape_cast %349 : vector<1xf32> to vector<1x1xf32>
    %351 = vector.broadcast %350 : vector<1x1xf32> to vector<16x1xf32>
    %352 = arith.mulf %351, %344 : vector<16x1xf32>
    %353 = arith.addf %343, %352 : vector<16x1xf32>
    %354 = vector.extract_strided_slice %8 {offsets = [0, 1], sizes = [16, 1], strides = [1, 1]} : vector<16x2xf32> to vector<16x1xf32>
    %cst_153 = arith.constant 5.000000e-01 : f32
    %355 = vector.broadcast %cst_153 : f32 to vector<16x1xf32>
    %356 = arith.cmpf ogt, %354, %355 : vector<16x1xf32>
    %cst_154 = arith.constant -1.000000e+30 : f32
    %357 = vector.broadcast %cst_154 : f32 to vector<16x1xf32>
    %358 = arith.select %356, %342, %357 : vector<16x1xi1>, vector<16x1xf32>
    %cst_155 = arith.constant dense<0xFF800000> : vector<1xf32>
    %359 = vector.multi_reduction <maximumf>, %358, %cst_155 [0] : vector<16x1xf32> to vector<1xf32>
    %360 = vector.shape_cast %359 : vector<1xf32> to vector<1x1xf32>
    %361 = vector.broadcast %360 : vector<1x1xf32> to vector<16x1xf32>
    %362 = arith.mulf %361, %354 : vector<16x1xf32>
    %363 = arith.addf %353, %362 : vector<16x1xf32>
    %364 = arith.subf %342, %363 : vector<16x1xf32>
    %365 = math.exp %364 : vector<16x1xf32>
    %366 = vector.broadcast %365 : vector<16x1xf32> to vector<16x32xf32>
    %367 = arith.mulf %366, %3 : vector<16x32xf32>
    %cst_156 = arith.constant dense<0.000000e+00> : vector<2x32xf32>
    %368 = tpu.matmul %7, %367, %cst_156 {dimension_numbers = #tpu.dot_dimension_numbers<[1], [0], [0], [1], [0, 0, 1, 1], [], []>} : vector<2x16xf32>, vector<16x32xf32>, vector<2x32xf32> -> vector<2x32xf32>
    %cst_157 = arith.constant dense<0.000000e+00> : vector<2x1xf32>
    %369 = tpu.matmul %7, %365, %cst_157 {dimension_numbers = #tpu.dot_dimension_numbers<[1], [0], [0], [1], [0, 0, 1, 1], [], []>} : vector<2x16xf32>, vector<16x1xf32>, vector<2x1xf32> -> vector<2x1xf32>
    %370 = vector.broadcast %369 : vector<2x1xf32> to vector<2x32xf32>
    %371 = arith.divf %368, %370 : vector<2x32xf32>
    %372 = tpu.concatenate %322, %371 in 1 : vector<2x32xf32>, vector<2x32xf32> -> vector<2x64xf32>
    %c3 = arith.constant 3 : index
    %c0_158 = arith.constant 0 : index
    %c0_159 = arith.constant 0 : index
    %373 = vector.load %arg9[%c3, %c0_158, %c0_159] : memref<5x64x96xf32, #tpu.memory_space<vmem>>, vector<1x64x96xf32>
    %374 = vector.shape_cast %373 : vector<1x64x96xf32> to vector<64x96xf32>
    %cst_160 = arith.constant dense<0.000000e+00> : vector<2x96xf32>
    %375 = tpu.matmul %372, %374, %cst_160 {dimension_numbers = #tpu.dot_dimension_numbers<[1], [0], [0], [1], [0, 0, 1, 1], [], []>} : vector<2x64xf32>, vector<64x96xf32>, vector<2x96xf32> -> vector<2x96xf32>
    %c3_161 = arith.constant 3 : index
    %c0_162 = arith.constant 0 : index
    %c0_163 = arith.constant 0 : index
    %376 = vector.load %arg12[%c3_161, %c0_162, %c0_163] : memref<5x1x96xf32, #tpu.memory_space<vmem>>, vector<1x1x96xf32>
    %377 = vector.shape_cast %376 : vector<1x1x96xf32> to vector<1x96xf32>
    %378 = vector.broadcast %377 : vector<1x96xf32> to vector<2x96xf32>
    %379 = arith.addf %375, %378 : vector<2x96xf32>
    %c3_164 = arith.constant 3 : index
    %c0_165 = arith.constant 0 : index
    %c0_166 = arith.constant 0 : index
    %380 = vector.load %arg13[%c3_164, %c0_165, %c0_166] : memref<5x1x128xf32, #tpu.memory_space<vmem>>, vector<1x1x128xf32>
    %381 = vector.shape_cast %380 : vector<1x1x128xf32> to vector<1x128xf32>
    %382 = vector.extract_strided_slice %379 {offsets = [0, 0], sizes = [2, 32], strides = [1, 1]} : vector<2x96xf32> to vector<2x32xf32>
    %383 = arith.negf %382 : vector<2x32xf32>
    %384 = math.exp %383 : vector<2x32xf32>
    %cst_167 = arith.constant 1.000000e+00 : f32
    %385 = vector.broadcast %cst_167 : f32 to vector<2x32xf32>
    %386 = arith.addf %385, %384 : vector<2x32xf32>
    %387 = arith.divf %385, %386 : vector<2x32xf32>
    %cst_168 = arith.constant 1.000000e+00 : f32
    %388 = vector.broadcast %cst_168 : f32 to vector<2x32xf32>
    %389 = arith.subf %388, %387 : vector<2x32xf32>
    %390 = arith.mulf %389, %322 : vector<2x32xf32>
    %391 = vector.extract_strided_slice %381 {offsets = [0, 0], sizes = [1, 32], strides = [1, 1]} : vector<1x128xf32> to vector<1x32xf32>
    %392 = vector.extract_strided_slice %381 {offsets = [0, 32], sizes = [1, 32], strides = [1, 1]} : vector<1x128xf32> to vector<1x32xf32>
    %cst_169 = arith.constant dense<0.000000e+00> : vector<2xf32>
    %393 = vector.multi_reduction <add>, %390, %cst_169 [1] : vector<2x32xf32> to vector<2xf32>
    %394 = vector.shape_cast %393 : vector<2xf32> to vector<2x1xf32>
    %cst_170 = arith.constant 3.200000e+01 : f32
    %395 = vector.broadcast %cst_170 : f32 to vector<2x1xf32>
    %396 = arith.divf %394, %395 : vector<2x1xf32>
    %397 = vector.broadcast %396 : vector<2x1xf32> to vector<2x32xf32>
    %398 = arith.subf %390, %397 : vector<2x32xf32>
    %399 = arith.mulf %398, %398 : vector<2x32xf32>
    %cst_171 = arith.constant dense<0.000000e+00> : vector<2xf32>
    %400 = vector.multi_reduction <add>, %399, %cst_171 [1] : vector<2x32xf32> to vector<2xf32>
    %401 = vector.shape_cast %400 : vector<2xf32> to vector<2x1xf32>
    %cst_172 = arith.constant 3.200000e+01 : f32
    %402 = vector.broadcast %cst_172 : f32 to vector<2x1xf32>
    %403 = arith.divf %401, %402 : vector<2x1xf32>
    %404 = vector.broadcast %396 : vector<2x1xf32> to vector<2x32xf32>
    %405 = arith.subf %390, %404 : vector<2x32xf32>
    %cst_173 = arith.constant 9.99999974E-6 : f32
    %406 = vector.broadcast %cst_173 : f32 to vector<2x1xf32>
    %407 = arith.addf %403, %406 : vector<2x1xf32>
    %408 = math.rsqrt %407 : vector<2x1xf32>
    %409 = vector.broadcast %408 : vector<2x1xf32> to vector<2x32xf32>
    %410 = arith.mulf %405, %409 : vector<2x32xf32>
    %411 = vector.broadcast %391 : vector<1x32xf32> to vector<2x32xf32>
    %412 = arith.mulf %410, %411 : vector<2x32xf32>
    %413 = vector.broadcast %392 : vector<1x32xf32> to vector<2x32xf32>
    %414 = arith.addf %412, %413 : vector<2x32xf32>
    %c3_174 = arith.constant 3 : index
    %c0_175 = arith.constant 0 : index
    %c0_176 = arith.constant 0 : index
    %415 = vector.load %arg10[%c3_174, %c0_175, %c0_176] : memref<5x32x32xf32, #tpu.memory_space<vmem>>, vector<1x32x32xf32>
    %416 = vector.shape_cast %415 : vector<1x32x32xf32> to vector<32x32xf32>
    %cst_177 = arith.constant dense<0.000000e+00> : vector<2x32xf32>
    %417 = tpu.matmul %414, %416, %cst_177 {dimension_numbers = #tpu.dot_dimension_numbers<[1], [0], [0], [1], [0, 0, 1, 1], [], []>} : vector<2x32xf32>, vector<32x32xf32>, vector<2x32xf32> -> vector<2x32xf32>
    %418 = vector.extract_strided_slice %379 {offsets = [0, 32], sizes = [2, 32], strides = [1, 1]} : vector<2x96xf32> to vector<2x32xf32>
    %419 = arith.addf %417, %418 : vector<2x32xf32>
    %cst_178 = arith.constant 0.000000e+00 : f32
    %420 = vector.broadcast %cst_178 : f32 to vector<2x32xf32>
    %421 = arith.maximumf %419, %420 : vector<2x32xf32>
    %c3_179 = arith.constant 3 : index
    %c0_180 = arith.constant 0 : index
    %c0_181 = arith.constant 0 : index
    %422 = vector.load %arg11[%c3_179, %c0_180, %c0_181] : memref<5x32x32xf32, #tpu.memory_space<vmem>>, vector<1x32x32xf32>
    %423 = vector.shape_cast %422 : vector<1x32x32xf32> to vector<32x32xf32>
    %cst_182 = arith.constant dense<0.000000e+00> : vector<2x32xf32>
    %424 = tpu.matmul %421, %423, %cst_182 {dimension_numbers = #tpu.dot_dimension_numbers<[1], [0], [0], [1], [0, 0, 1, 1], [], []>} : vector<2x32xf32>, vector<32x32xf32>, vector<2x32xf32> -> vector<2x32xf32>
    %425 = vector.extract_strided_slice %379 {offsets = [0, 64], sizes = [2, 32], strides = [1, 1]} : vector<2x96xf32> to vector<2x32xf32>
    %426 = arith.addf %424, %425 : vector<2x32xf32>
    %427 = arith.negf %426 : vector<2x32xf32>
    %428 = math.exp %427 : vector<2x32xf32>
    %cst_183 = arith.constant 1.000000e+00 : f32
    %429 = vector.broadcast %cst_183 : f32 to vector<2x32xf32>
    %430 = arith.addf %429, %428 : vector<2x32xf32>
    %431 = arith.divf %429, %430 : vector<2x32xf32>
    %432 = arith.mulf %421, %431 : vector<2x32xf32>
    %433 = vector.extract_strided_slice %381 {offsets = [0, 64], sizes = [1, 32], strides = [1, 1]} : vector<1x128xf32> to vector<1x32xf32>
    %434 = vector.extract_strided_slice %381 {offsets = [0, 96], sizes = [1, 32], strides = [1, 1]} : vector<1x128xf32> to vector<1x32xf32>
    %cst_184 = arith.constant dense<0.000000e+00> : vector<2xf32>
    %435 = vector.multi_reduction <add>, %432, %cst_184 [1] : vector<2x32xf32> to vector<2xf32>
    %436 = vector.shape_cast %435 : vector<2xf32> to vector<2x1xf32>
    %cst_185 = arith.constant 3.200000e+01 : f32
    %437 = vector.broadcast %cst_185 : f32 to vector<2x1xf32>
    %438 = arith.divf %436, %437 : vector<2x1xf32>
    %439 = vector.broadcast %438 : vector<2x1xf32> to vector<2x32xf32>
    %440 = arith.subf %432, %439 : vector<2x32xf32>
    %441 = arith.mulf %440, %440 : vector<2x32xf32>
    %cst_186 = arith.constant dense<0.000000e+00> : vector<2xf32>
    %442 = vector.multi_reduction <add>, %441, %cst_186 [1] : vector<2x32xf32> to vector<2xf32>
    %443 = vector.shape_cast %442 : vector<2xf32> to vector<2x1xf32>
    %cst_187 = arith.constant 3.200000e+01 : f32
    %444 = vector.broadcast %cst_187 : f32 to vector<2x1xf32>
    %445 = arith.divf %443, %444 : vector<2x1xf32>
    %446 = vector.broadcast %438 : vector<2x1xf32> to vector<2x32xf32>
    %447 = arith.subf %432, %446 : vector<2x32xf32>
    %cst_188 = arith.constant 9.99999974E-6 : f32
    %448 = vector.broadcast %cst_188 : f32 to vector<2x1xf32>
    %449 = arith.addf %445, %448 : vector<2x1xf32>
    %450 = math.rsqrt %449 : vector<2x1xf32>
    %451 = vector.broadcast %450 : vector<2x1xf32> to vector<2x32xf32>
    %452 = arith.mulf %447, %451 : vector<2x32xf32>
    %453 = vector.broadcast %433 : vector<1x32xf32> to vector<2x32xf32>
    %454 = arith.mulf %452, %453 : vector<2x32xf32>
    %455 = vector.broadcast %434 : vector<1x32xf32> to vector<2x32xf32>
    %456 = arith.addf %454, %455 : vector<2x32xf32>
    %457 = arith.subf %414, %456 : vector<2x32xf32>
    %458 = tpu.concatenate %322, %371 in 1 : vector<2x32xf32>, vector<2x32xf32> -> vector<2x64xf32>
    %c4 = arith.constant 4 : index
    %c0_189 = arith.constant 0 : index
    %c0_190 = arith.constant 0 : index
    %459 = vector.load %arg9[%c4, %c0_189, %c0_190] : memref<5x64x96xf32, #tpu.memory_space<vmem>>, vector<1x64x96xf32>
    %460 = vector.shape_cast %459 : vector<1x64x96xf32> to vector<64x96xf32>
    %cst_191 = arith.constant dense<0.000000e+00> : vector<2x96xf32>
    %461 = tpu.matmul %458, %460, %cst_191 {dimension_numbers = #tpu.dot_dimension_numbers<[1], [0], [0], [1], [0, 0, 1, 1], [], []>} : vector<2x64xf32>, vector<64x96xf32>, vector<2x96xf32> -> vector<2x96xf32>
    %c4_192 = arith.constant 4 : index
    %c0_193 = arith.constant 0 : index
    %c0_194 = arith.constant 0 : index
    %462 = vector.load %arg12[%c4_192, %c0_193, %c0_194] : memref<5x1x96xf32, #tpu.memory_space<vmem>>, vector<1x1x96xf32>
    %463 = vector.shape_cast %462 : vector<1x1x96xf32> to vector<1x96xf32>
    %464 = vector.broadcast %463 : vector<1x96xf32> to vector<2x96xf32>
    %465 = arith.addf %461, %464 : vector<2x96xf32>
    %c4_195 = arith.constant 4 : index
    %c0_196 = arith.constant 0 : index
    %c0_197 = arith.constant 0 : index
    %466 = vector.load %arg13[%c4_195, %c0_196, %c0_197] : memref<5x1x128xf32, #tpu.memory_space<vmem>>, vector<1x1x128xf32>
    %467 = vector.shape_cast %466 : vector<1x1x128xf32> to vector<1x128xf32>
    %468 = vector.extract_strided_slice %465 {offsets = [0, 0], sizes = [2, 32], strides = [1, 1]} : vector<2x96xf32> to vector<2x32xf32>
    %469 = arith.negf %468 : vector<2x32xf32>
    %470 = math.exp %469 : vector<2x32xf32>
    %cst_198 = arith.constant 1.000000e+00 : f32
    %471 = vector.broadcast %cst_198 : f32 to vector<2x32xf32>
    %472 = arith.addf %471, %470 : vector<2x32xf32>
    %473 = arith.divf %471, %472 : vector<2x32xf32>
    %cst_199 = arith.constant 1.000000e+00 : f32
    %474 = vector.broadcast %cst_199 : f32 to vector<2x32xf32>
    %475 = arith.subf %474, %473 : vector<2x32xf32>
    %476 = arith.mulf %475, %322 : vector<2x32xf32>
    %477 = vector.extract_strided_slice %467 {offsets = [0, 0], sizes = [1, 32], strides = [1, 1]} : vector<1x128xf32> to vector<1x32xf32>
    %478 = vector.extract_strided_slice %467 {offsets = [0, 32], sizes = [1, 32], strides = [1, 1]} : vector<1x128xf32> to vector<1x32xf32>
    %cst_200 = arith.constant dense<0.000000e+00> : vector<2xf32>
    %479 = vector.multi_reduction <add>, %476, %cst_200 [1] : vector<2x32xf32> to vector<2xf32>
    %480 = vector.shape_cast %479 : vector<2xf32> to vector<2x1xf32>
    %cst_201 = arith.constant 3.200000e+01 : f32
    %481 = vector.broadcast %cst_201 : f32 to vector<2x1xf32>
    %482 = arith.divf %480, %481 : vector<2x1xf32>
    %483 = vector.broadcast %482 : vector<2x1xf32> to vector<2x32xf32>
    %484 = arith.subf %476, %483 : vector<2x32xf32>
    %485 = arith.mulf %484, %484 : vector<2x32xf32>
    %cst_202 = arith.constant dense<0.000000e+00> : vector<2xf32>
    %486 = vector.multi_reduction <add>, %485, %cst_202 [1] : vector<2x32xf32> to vector<2xf32>
    %487 = vector.shape_cast %486 : vector<2xf32> to vector<2x1xf32>
    %cst_203 = arith.constant 3.200000e+01 : f32
    %488 = vector.broadcast %cst_203 : f32 to vector<2x1xf32>
    %489 = arith.divf %487, %488 : vector<2x1xf32>
    %490 = vector.broadcast %482 : vector<2x1xf32> to vector<2x32xf32>
    %491 = arith.subf %476, %490 : vector<2x32xf32>
    %cst_204 = arith.constant 9.99999974E-6 : f32
    %492 = vector.broadcast %cst_204 : f32 to vector<2x1xf32>
    %493 = arith.addf %489, %492 : vector<2x1xf32>
    %494 = math.rsqrt %493 : vector<2x1xf32>
    %495 = vector.broadcast %494 : vector<2x1xf32> to vector<2x32xf32>
    %496 = arith.mulf %491, %495 : vector<2x32xf32>
    %497 = vector.broadcast %477 : vector<1x32xf32> to vector<2x32xf32>
    %498 = arith.mulf %496, %497 : vector<2x32xf32>
    %499 = vector.broadcast %478 : vector<1x32xf32> to vector<2x32xf32>
    %500 = arith.addf %498, %499 : vector<2x32xf32>
    %c4_205 = arith.constant 4 : index
    %c0_206 = arith.constant 0 : index
    %c0_207 = arith.constant 0 : index
    %501 = vector.load %arg10[%c4_205, %c0_206, %c0_207] : memref<5x32x32xf32, #tpu.memory_space<vmem>>, vector<1x32x32xf32>
    %502 = vector.shape_cast %501 : vector<1x32x32xf32> to vector<32x32xf32>
    %cst_208 = arith.constant dense<0.000000e+00> : vector<2x32xf32>
    %503 = tpu.matmul %500, %502, %cst_208 {dimension_numbers = #tpu.dot_dimension_numbers<[1], [0], [0], [1], [0, 0, 1, 1], [], []>} : vector<2x32xf32>, vector<32x32xf32>, vector<2x32xf32> -> vector<2x32xf32>
    %504 = vector.extract_strided_slice %465 {offsets = [0, 32], sizes = [2, 32], strides = [1, 1]} : vector<2x96xf32> to vector<2x32xf32>
    %505 = arith.addf %503, %504 : vector<2x32xf32>
    %cst_209 = arith.constant 0.000000e+00 : f32
    %506 = vector.broadcast %cst_209 : f32 to vector<2x32xf32>
    %507 = arith.maximumf %505, %506 : vector<2x32xf32>
    %c4_210 = arith.constant 4 : index
    %c0_211 = arith.constant 0 : index
    %c0_212 = arith.constant 0 : index
    %508 = vector.load %arg11[%c4_210, %c0_211, %c0_212] : memref<5x32x32xf32, #tpu.memory_space<vmem>>, vector<1x32x32xf32>
    %509 = vector.shape_cast %508 : vector<1x32x32xf32> to vector<32x32xf32>
    %cst_213 = arith.constant dense<0.000000e+00> : vector<2x32xf32>
    %510 = tpu.matmul %507, %509, %cst_213 {dimension_numbers = #tpu.dot_dimension_numbers<[1], [0], [0], [1], [0, 0, 1, 1], [], []>} : vector<2x32xf32>, vector<32x32xf32>, vector<2x32xf32> -> vector<2x32xf32>
    %511 = vector.extract_strided_slice %465 {offsets = [0, 64], sizes = [2, 32], strides = [1, 1]} : vector<2x96xf32> to vector<2x32xf32>
    %512 = arith.addf %510, %511 : vector<2x32xf32>
    %513 = arith.negf %512 : vector<2x32xf32>
    %514 = math.exp %513 : vector<2x32xf32>
    %cst_214 = arith.constant 1.000000e+00 : f32
    %515 = vector.broadcast %cst_214 : f32 to vector<2x32xf32>
    %516 = arith.addf %515, %514 : vector<2x32xf32>
    %517 = arith.divf %515, %516 : vector<2x32xf32>
    %518 = arith.mulf %507, %517 : vector<2x32xf32>
    %519 = vector.extract_strided_slice %467 {offsets = [0, 64], sizes = [1, 32], strides = [1, 1]} : vector<1x128xf32> to vector<1x32xf32>
    %520 = vector.extract_strided_slice %467 {offsets = [0, 96], sizes = [1, 32], strides = [1, 1]} : vector<1x128xf32> to vector<1x32xf32>
    %cst_215 = arith.constant dense<0.000000e+00> : vector<2xf32>
    %521 = vector.multi_reduction <add>, %518, %cst_215 [1] : vector<2x32xf32> to vector<2xf32>
    %522 = vector.shape_cast %521 : vector<2xf32> to vector<2x1xf32>
    %cst_216 = arith.constant 3.200000e+01 : f32
    %523 = vector.broadcast %cst_216 : f32 to vector<2x1xf32>
    %524 = arith.divf %522, %523 : vector<2x1xf32>
    %525 = vector.broadcast %524 : vector<2x1xf32> to vector<2x32xf32>
    %526 = arith.subf %518, %525 : vector<2x32xf32>
    %527 = arith.mulf %526, %526 : vector<2x32xf32>
    %cst_217 = arith.constant dense<0.000000e+00> : vector<2xf32>
    %528 = vector.multi_reduction <add>, %527, %cst_217 [1] : vector<2x32xf32> to vector<2xf32>
    %529 = vector.shape_cast %528 : vector<2xf32> to vector<2x1xf32>
    %cst_218 = arith.constant 3.200000e+01 : f32
    %530 = vector.broadcast %cst_218 : f32 to vector<2x1xf32>
    %531 = arith.divf %529, %530 : vector<2x1xf32>
    %532 = vector.broadcast %524 : vector<2x1xf32> to vector<2x32xf32>
    %533 = arith.subf %518, %532 : vector<2x32xf32>
    %cst_219 = arith.constant 9.99999974E-6 : f32
    %534 = vector.broadcast %cst_219 : f32 to vector<2x1xf32>
    %535 = arith.addf %531, %534 : vector<2x1xf32>
    %536 = math.rsqrt %535 : vector<2x1xf32>
    %537 = vector.broadcast %536 : vector<2x1xf32> to vector<2x32xf32>
    %538 = arith.mulf %533, %537 : vector<2x32xf32>
    %539 = vector.broadcast %519 : vector<1x32xf32> to vector<2x32xf32>
    %540 = arith.mulf %538, %539 : vector<2x32xf32>
    %541 = vector.broadcast %520 : vector<1x32xf32> to vector<2x32xf32>
    %542 = arith.addf %540, %541 : vector<2x32xf32>
    %543 = arith.subf %500, %542 : vector<2x32xf32>
    %544 = tpu.concatenate %457, %543, %371, %322 in 1 : vector<2x32xf32>, vector<2x32xf32>, vector<2x32xf32>, vector<2x32xf32> -> vector<2x128xf32>
    %c0_220 = arith.constant 0 : index
    %c0_221 = arith.constant 0 : index
    %545 = vector.load %arg19[%c0_220, %c0_221] : memref<2x128xf32, #tpu.memory_space<vmem>>, vector<2x128xf32>
    tpu.vector_store %arg19[%c0_220, %c0_221], %544 {strides = array<i32>} : memref<2x128xf32, #tpu.memory_space<vmem>>, vector<2x128xf32>,
    %546 = tpu.concatenate %276, %322 in 0 : vector<6x32xf32>, vector<2x32xf32> -> vector<8x32xf32>
    %c0_222 = arith.constant 0 : index
    %c0_223 = arith.constant 0 : index
    %547 = vector.load %arg20[%c0_222, %c0_223] : memref<8x32xf32, #tpu.memory_space<vmem>>, vector<8x32xf32>
    tpu.vector_store %arg20[%c0_222, %c0_223], %546 {strides = array<i32>} : memref<8x32xf32, #tpu.memory_space<vmem>>, vector<8x32xf32>,
    return
  }
}

</mosaic_0001>

<bundles_post_ra>
// kernel: tile.34
= control target key start
LH: loop header
LB: loop body
LE: loop exit
PB: predicated region body
PF: predicated region fallthrough
CT: control target
= control target key end

     0   :  { %s7_s6 = smov 3  ;;  %s21_s9 = smov 3  ;;  %vm4_vm0 = vcmask 15360   ;;  %vm11_vm1 = vcmask 130160   ;;  %vm18_vm2 = vcmask 113760   ;;  %vm25_vm3 = vcmask 97360   ;;  %s119_s0 = inlined_call_operand.vmem [shape: f32[2,8,2], index: 0, kind: input, shape index: {}]   ;;  %s120_s1 = inlined_call_operand.vmem [shape: f32[2,16], index: 1, kind: output, shape index: {}]  }
   0x1   :  { %v61_v0 = vld [vmem:[%s119_s0 + $0x7] ss:$8 sm:%s7_s6]   ;;  %s75_s10 = smov 14   ;;  %v63_v1 = vld [vmem:[%s119_s0 + $0x5] ss:$8 sm:%s21_s9]   ;;  %s14_s13 = smov 3 }
   0x2   :  { %9 = vrot.lane.b32.xlu0 %v61_v0, %s75_s10  ;;  %s76_s14 = smov 10   ;;  %v62_v2 = vld [vmem:[%s119_s0 + $0x6] ss:$8 sm:%s14_s13]   ;;  %s28_s17 = smov 3  ;;  %vm32_vm4 = vcmask 80960   ;;  %vm39_vm5 = vcmask 64560  }
   0x3   :  { %23 = vrot.lane.b32.xlu1 %v63_v1, %s76_s14  ;;  %v64_v3 = vld [vmem:[%s119_s0 + $0x4] ss:$8 sm:%s28_s17]   ;;  %s35_s20 = smov 3  ;;  %s42_s21 = smov 3  ;;  %vm46_vm6 = vcmask 48160   ;;  %vm53_vm7 = vcmask 31760  }
   0x4   :  { %s77_s22 = smov 12   ;;  %s78_s23 = smov 8   ;;  %v65_v4 = vld [vmem:[%s119_s0 + $0x3] ss:$8 sm:%s35_s20]   ;;  %v66_v5 = vld [vmem:[%s119_s0 + $0x2] ss:$8 sm:%s42_s21]  }
   0x5   :  { %s2_s26 = smov 3  ;;  %s49_s29 = smov 3 }
   0x6   :  { %16 = vrot.lane.b32.xlu0 %v62_v2, %s77_s22  ;;  %v3_v6 = vld [vmem:[%s119_s0] ss:$8 sm:%s2_s26]   ;;  %s79_s3 = smov 6   ;;  %s80_s4 = smov 4  }
   0x7   :  { %30 = vrot.lane.b32.xlu1 %v64_v3, %s78_s23  ;;  %5 = vst.msk [vmem:[#allocation0] sm:$0x3] %vm4_vm0, %v3_v6   ;;  %v67_v7 = vld [vmem:[%s119_s0 + $0x1] ss:$8 sm:%s49_s29]   ;;  %s81_s0 = smov 2  }
   0xa   :  { %37 = vrot.lane.b32.xlu0 %v65_v4, %s79_s3 }
   0xb   :  { %44 = vrot.lane.b32.xlu1 %v66_v5, %s80_s4 }
   0xe   :  { %51 = vrot.lane.b32.xlu0 %v67_v7, %s81_s0 }
  0x74   :  { %v10_v8 = vpop.permute.xlu0 %9  }
  0x75   :  { %12 = vst.msk [vmem:[#allocation0] sm:$0x3] %vm11_vm1, %v10_v8   ;;  %v24_v9 = vpop.permute.xlu1 %23  }
  0x78   :  { %v17_v10 = vpop.permute.xlu0 %16  }
  0x79   :  { %19 = vst.msk [vmem:[#allocation0] sm:$0x3] %vm18_vm2, %v17_v10   ;;  %v31_v11 = vpop.permute.xlu1 %30  }
  0x7a   :  { %26 = vst.msk [vmem:[#allocation0] sm:$0x3] %vm25_vm3, %v24_v9  }
  0x7b   :  { %33 = vst.msk [vmem:[#allocation0] sm:$0x3] %vm32_vm4, %v31_v11  }
  0x7c   :  { %v38_v12 = vpop.permute.xlu0 %37  }
  0x7d   :  { %40 = vst.msk [vmem:[#allocation0] sm:$0x3] %vm39_vm5, %v38_v12   ;;  %v45_v13 = vpop.permute.xlu1 %44  }
  0x7e   :  { %47 = vst.msk [vmem:[#allocation0] sm:$0x3] %vm46_vm6, %v45_v13  }
  0x80   :  { %v52_v14 = vpop.permute.xlu0 %51  }
  0x81   :  { %54 = vst.msk [vmem:[#allocation0] sm:$0x3] %vm53_vm7, %v52_v14  }
  0x88   :  { %v58_v15 = vld [vmem:[#allocation0] sm:$0x3] }
  0x89   :  { %60 = vst [vmem:[%s120_s1] sm:$0x3] %v58_v15 }

// kernel: tile.29
= control target key start
LH: loop header
LB: loop body
LE: loop exit
PB: predicated region body
PF: predicated region fallthrough
CT: control target
= control target key end

     0   :  { %s10_s10 = smov 3  ;;  %vm12_vm0 = vcmask 15360   ;;  %s22_s11 = smov 3  ;;  %vm19_vm1 = vcmask 48160   ;;  %vm26_vm2 = vcmask 31760   ;;  %s58_s0 = inlined_call_operand.vmem [shape: f32[3,2,2], index: 0, kind: input, shape index: {}]   ;;  %s59_s1 = inlined_call_operand.vmem [shape: f32[6,2], index: 1, kind: output, shape index: {}]  }
   0x1   :  { %v34_v0 = vld [vmem:[%s58_s0 + $0x4] sm:$0xf]  ;;  %v8_v1 = vld [vmem:[%s58_s0] sm:$0xf]  ;;  %s15_s0 = smov 3  ;;  %s37_s12 = smov 4  }
   0x2   :  { %7 = vst [vmem:[#allocation1 + $0x8] sm:$0xf] %v34_v0  ;;  %9 = vst [vmem:[#allocation1] sm:$0xf] %v8_v1  ;;  %s38_s13 = smov 2  }
   0x9   :  { %v16_v2 = vld [vmem:[#allocation1 + $0x2] ss:$8 sm:%s15_s0]   ;;  %v11_v3 = vld [vmem:[#allocation1] ss:$8 sm:%s10_s10]   ;;  %v23_v4 = vld [vmem:[#allocation1 + $0x1] ss:$8 sm:%s22_s11]  }
   0xa   :  { %17 = vrot.lane.b32.xlu0 %v16_v2, %s37_s12  ;;  %13 = vst.msk [vmem:[#allocation0] sm:$0x3] %vm12_vm0, %v11_v3  }
   0xe   :  { %24 = vrot.lane.b32.xlu0 %v23_v4, %s38_s13 }
  0x7c   :  { %v18_v5 = vpop.permute.xlu0 %17  }
  0x7d   :  { %20 = vst.msk [vmem:[#allocation0] sm:$0x3] %vm19_vm1, %v18_v5  }
  0x80   :  { %v25_v6 = vpop.permute.xlu0 %24  }
  0x81   :  { %27 = vst.msk [vmem:[#allocation0] sm:$0x3] %vm26_vm2, %v25_v6  }
  0x88   :  { %v31_v7 = vld [vmem:[#allocation0] sm:$0x3] }
  0x89   :  { %33 = vst [vmem:[%s59_s1] sm:$0x3] %v31_v7 }

// kernel: tile.24
= control target key start
LH: loop header
LB: loop body
LE: loop exit
PB: predicated region body
PF: predicated region fallthrough
CT: control target
= control target key end

     0   :  { %s10_s10 = smov 3  ;;  %vm12_vm0 = vcmask 15360   ;;  %s22_s11 = smov 3  ;;  %vm19_vm1 = vcmask 48160   ;;  %vm26_vm2 = vcmask 31760   ;;  %s58_s0 = inlined_call_operand.vmem [shape: f32[2,3,2], index: 0, kind: input, shape index: {}]   ;;  %s59_s1 = inlined_call_operand.vmem [shape: f32[2,6], index: 1, kind: output, shape index: {}]  }
   0x1   :  { %v34_v0 = vld [vmem:[%s58_s0 + $0x4] sm:$0xf]  ;;  %v8_v1 = vld [vmem:[%s58_s0] sm:$0xf]  ;;  %s15_s0 = smov 3  ;;  %s37_s12 = smov 4  }
   0x2   :  { %7 = vst [vmem:[#allocation1 + $0x8] sm:$0xf] %v34_v0  ;;  %9 = vst [vmem:[#allocation1] sm:$0xf] %v8_v1  ;;  %s38_s13 = smov 2  }
   0x9   :  { %v16_v2 = vld [vmem:[#allocation1 + $0x2] ss:$8 sm:%s15_s0]   ;;  %v11_v3 = vld [vmem:[#allocation1] ss:$8 sm:%s10_s10]   ;;  %v23_v4 = vld [vmem:[#allocation1 + $0x1] ss:$8 sm:%s22_s11]  }
   0xa   :  { %17 = vrot.lane.b32.xlu0 %v16_v2, %s37_s12  ;;  %13 = vst.msk [vmem:[#allocation0] sm:$0x3] %vm12_vm0, %v11_v3  }
   0xe   :  { %24 = vrot.lane.b32.xlu0 %v23_v4, %s38_s13 }
  0x7c   :  { %v18_v5 = vpop.permute.xlu0 %17  }
  0x7d   :  { %20 = vst.msk [vmem:[#allocation0] sm:$0x3] %vm19_vm1, %v18_v5  }
  0x80   :  { %v25_v6 = vpop.permute.xlu0 %24  }
  0x81   :  { %27 = vst.msk [vmem:[#allocation0] sm:$0x3] %vm26_vm2, %v25_v6  }
  0x88   :  { %v31_v7 = vld [vmem:[#allocation0] sm:$0x3] }
  0x89   :  { %33 = vst [vmem:[%s59_s1] sm:$0x3] %v31_v7 }

// kernel: decoder_forward.1
= control target key start
LH: loop header
LB: loop body
LE: loop exit
PB: predicated region body
PF: predicated region fallthrough
CT: control target
= control target key end

     0   :  { %s4327_s0 = inlined_call_operand.vmem [shape: f32[2,32], index: 0, kind: input, shape index: {}]   ;;  %s4328_s1 = inlined_call_operand.vmem [shape: f32[2,32], index: 1, kind: input, shape index: {}]   ;;  %s4329_s2 = inlined_call_operand.vmem [shape: f32[6,32], index: 2, kind: input, shape index: {}]   ;;  %s4330_s3 = inlined_call_operand.hbm [shape: f32[16,32], index: 3, kind: input, shape index: {}]   ;;  %s4331_s4 = inlined_call_operand.vmem [shape: f32[16,1], index: 4, kind: input, shape index: {}]   ;;  %s4332_s5 = inlined_call_operand.vmem [shape: f32[2,6], index: 5, kind: input, shape index: {}]   ;;  %s4333_s6 = inlined_call_operand.vmem [shape: f32[6,2], index: 6, kind: input, shape index: {}]   ;;  %s4334_s7 = inlined_call_operand.vmem [shape: f32[2,16], index: 7, kind: input, shape index: {}]   ;;  %s4335_s8 = inlined_call_operand.vmem [shape: f32[16,2], index: 8, kind: input, shape index: {}]   ;;  %s4336_s9 = inlined_call_operand.vmem [shape: f32[5,64,96], index: 9, kind: input, shape index: {}]   ;;  %s4337_s10 = inlined_call_operand.vmem [shape: f32[5,32,32], index: 10, kind: input, shape index: {}]   ;;  %s4338_s11 = inlined_call_operand.hbm [shape: f32[5,32,32], index: 11, kind: input, shape index: {}]   ;;  %s4339_s12 = inlined_call_operand.hbm [shape: f32[5,1,96], index: 12, kind: input, shape index: {}]   ;;  %s4340_s13 = inlined_call_operand.hbm [shape: f32[5,1,128], index: 13, kind: input, shape index: {}]   ;;  %s4341_s14 = inlined_call_operand.vmem [shape: f32[64,32], index: 14, kind: input, shape index: {}]   ;;  %s4342_s15 = inlined_call_operand.hbm [shape: f32[1,32], index: 15, kind: input, shape index: {}]   ;;  %s4343_s16 = inlined_call_operand.vmem [shape: f32[2,64,32], index: 16, kind: input, shape index: {}]   ;;  %s4344_s17 = inlined_call_operand.vmem [shape: f32[2,1,32], index: 17, kind: input, shape index: {}]   ;;  %s4345_s18 = inlined_call_operand.hbm [shape: f32[2,1,32], index: 18, kind: input, shape index: {}]   ;;  %s4346_s19 = inlined_call_operand.vmem [shape: f32[2,128], index: 19, kind: output, shape index: {0}]   ;;  %s4347_s20 = inlined_call_operand.hbm [shape: f32[8,32], index: 20, kind: output, shape index: {1}]  }
   0x1   :  { %4352 = sst [smem:[#allocation19_spill]] %s4327_s0 }
   0x2   :  { %4353 = sst [smem:[#allocation20_spill]] %s4328_s1 }
   0x3   :  { %4354 = sst [smem:[#allocation21_spill]] %s4329_s2 }
   0x4   :  { %4355 = sst [smem:[#allocation22_spill]] %s4330_s3 }
   0x5   :  { %4356 = sst [smem:[#allocation23_spill]] %s4331_s4 }
   0x6   :  { %4357 = sst [smem:[#allocation24_spill]] %s4346_s19 }
   0x7   :  { %26 = vsyncpa [#allocation3], 0 }
   0x8   :  { %27 = vsyncpa [#allocation6], 0 }
   0x9   :  { %28 = vsyncpa [#allocation9], 0 }
   0xa   :  { %29 = vsyncpa [#allocation12], 0 }
   0xb   :  { %30 = vsyncpa [#allocation4], 0  ;;  %s3520_s1 = smov [#allocation5]   ;;  %s3356_s2 = scalar_lea.hbm %s4338_s11, 2560 }
   0xc   :  { %s68_s22 = sshll.u32 %s3520_s1, 4  ;;  %p3357_p0 = scmp.ne.s32.totalorder %s4338_s11, %s3356_s2  ;;  %s69_s22 = int_to_ptr.vmem [resolvable:$true] %s68_s22 }
   0xd   :  { %p3360_p1 = scmp.lt.u32.totalorder %s3356_s2, %s4338_s11 }
   0xf   :  { %p3362_p2 = pnand %p3360_p1, %p3357_p0 }
  0x11   :  { %3365 = shalt.err (!%p3362_p2)
}
  0x12   :  { %s3366_s28 = scalar_lea.vmem %s69_s22, 2560  ;;  %p3371_p4 = scmp.lt.s32.totalorder %s69_s22, %s69_s22 }
  0x13   :  { %p3367_p3 = scmp.ne.s32.totalorder %s69_s22, %s3366_s28  ;;  %p3372_p5 = scmp.lt.s32.totalorder %s3366_s28, %s3366_s28 }
  0x15   :  { %p3373_p6 = por %p3372_p5, %p3371_p4 }
  0x17   :  { %p3374_p7 = pnand %p3373_p6, %p3367_p3 }
  0x19   :  { %3377 = shalt.err (!%p3374_p7)
}
  0x1a   :  { %s3521_s4 = smov 128   ;;  %s3522_s29 = smov 8  }
  0x1b   :  { %74 = dma.hbm_to_vmem [thread:$0]  %s4338_s11, 2560, %s69_s22, [#allocation6], %s3521_s4, %s3521_s4, %s3522_s29  }
  0x1c   :  { %s3523_s21 = smov [#allocation8]   ;;  %s3524_s23 = smov [#allocation2]  }
  0x1d   :  { %s92_s1 = sshll.u32 %s3523_s21, 4  ;;  %s42_s24 = sshll.u32 %s3524_s23, 4  ;;  %s93_s1 = int_to_ptr.vmem [resolvable:$true] %s92_s1  ;;  %s43_s24 = int_to_ptr.vmem [resolvable:$true] %s42_s24 }
  0x1e   :  { %s3378_s3 = scalar_lea.hbm %s4340_s13, 80 }
  0x1f   :  { %p3379_p8 = scmp.ne.s32.totalorder %s4340_s13, %s3378_s3  ;;  %p3382_p9 = scmp.lt.u32.totalorder %s3378_s3, %s4340_s13 }
  0x21   :  { %p3384_p10 = pnand %p3382_p9, %p3379_p8 }
  0x23   :  { %3387 = shalt.err (!%p3384_p10)
}
  0x24   :  { %s3388_s11 = scalar_lea.vmem %s93_s1, 80  ;;  %s3392_s22 = scalar_lea.vmem %s93_s1, 96 }
  0x25   :  { %p3389_p11 = scmp.ne.s32.totalorder %s93_s1, %s3388_s11  ;;  %p3393_p12 = scmp.lt.s32.totalorder %s93_s1, %s93_s1 }
  0x26   :  { %p3394_p13 = scmp.lt.s32.totalorder %s3392_s22, %s3388_s11 }
  0x28   :  { %p3395_p0 = por %p3394_p13, %p3393_p12 }
  0x2a   :  { %p3396_p1 = pnand %p3395_p0, %p3389_p11 }
  0x2c   :  { %3399 = shalt.err (!%p3396_p1)
}
  0x2d   :  { %s4350_s30 = smov 16   ;;  %s3526_s0 = smov 1  }
  0x2e   :  { %98 = dma.hbm_to_vmem [thread:$0]  %s4340_s13, 80, %s93_s1, [#allocation9], %s4350_s30, %s4350_s30, %s3526_s0  }
  0x2f   :  { %s4358_s25 = sld [smem:[#allocation22_spill]] }
  0x35   :  { %s3400_s3 = scalar_lea.hbm %s4358_s25, 256 }
  0x36   :  { %p3401_p2 = scmp.ne.s32.totalorder %s4358_s25, %s3400_s3  ;;  %p3404_p3 = scmp.lt.u32.totalorder %s3400_s3, %s4358_s25 }
  0x38   :  { %p3406_p4 = pnand %p3404_p3, %p3401_p2 }
  0x3a   :  { %3409 = shalt.err (!%p3406_p4)
}
  0x3b   :  { %s3410_s22 = scalar_lea.vmem %s43_s24, 256  ;;  %p3415_p6 = scmp.lt.s32.totalorder %s43_s24, %s43_s24 }
  0x3c   :  { %p3411_p5 = scmp.ne.s32.totalorder %s43_s24, %s3410_s22  ;;  %p3416_p7 = scmp.lt.s32.totalorder %s3410_s22, %s3410_s22 }
  0x3e   :  { %p3417_p8 = por %p3416_p7, %p3415_p6 }
  0x40   :  { %p3418_p9 = pnand %p3417_p8, %p3411_p5 }
  0x42   :  { %3421 = shalt.err (!%p3418_p9)
}
  0x43   :  { %48 = dma.hbm_to_vmem [thread:$0]  %s4358_s25, 256, %s43_s24, [#allocation3], %s3521_s4, %s3521_s4, %s3522_s29  }
  0x44   :  { %s3527_s21 = smov [#allocation7]   ;;  %s3528_s19 = smov [#allocation10]  }
  0x45   :  { %s80_s23 = sshll.u32 %s3527_s21, 4  ;;  %s107_s2 = sshll.u32 %s3528_s19, 4  ;;  %s81_s23 = int_to_ptr.vmem [resolvable:$true] %s80_s23  ;;  %s108_s2 = int_to_ptr.vmem [resolvable:$true] %s107_s2 }
  0x46   :  { %s3422_s27 = scalar_lea.hbm %s4339_s12, 80 }
  0x47   :  { %p3423_p10 = scmp.ne.s32.totalorder %s4339_s12, %s3422_s27  ;;  %p3426_p11 = scmp.lt.u32.totalorder %s3422_s27, %s4339_s12 }
  0x49   :  { %p3428_p12 = pnand %p3426_p11, %p3423_p10 }
  0x4b   :  { %3431 = shalt.err (!%p3428_p12)
}
  0x4c   :  { %s3432_s4 = scalar_lea.vmem %s81_s23, 80  ;;  %s3436_s29 = scalar_lea.vmem %s81_s23, 96 }
  0x4d   :  { %p3433_p13 = scmp.ne.s32.totalorder %s81_s23, %s3432_s4  ;;  %p3437_p0 = scmp.lt.s32.totalorder %s81_s23, %s81_s23 }
  0x4e   :  { %p3438_p1 = scmp.lt.s32.totalorder %s3436_s29, %s3432_s4 }
  0x50   :  { %p3439_p2 = por %p3438_p1, %p3437_p0 }
  0x52   :  { %p3440_p3 = pnand %p3439_p2, %p3433_p13 }
  0x54   :  { %3443 = shalt.err (!%p3440_p3)
}
  0x55   :  { %s4359_s24 = smov 16   ;;  %s3444_s21 = scalar_lea.hbm %s4342_s15, 16 }
  0x56   :  { %86 = dma.hbm_to_vmem [thread:$0]  %s4339_s12, 80, %s81_s23, [#allocation6], %s4359_s24, %s4359_s24, %s3526_s0  }
  0x57   :  { %p3445_p4 = scmp.ne.s32.totalorder %s4342_s15, %s3444_s21  ;;  %p3448_p5 = scmp.lt.u32.totalorder %s3444_s21, %s4342_s15 }
  0x59   :  { %p3450_p6 = pnand %p3448_p5, %p3445_p4 }
  0x5b   :  { %3453 = shalt.err (!%p3450_p6)
}
  0x5c   :  { %s3454_s28 = scalar_lea.vmem %s108_s2, 16  ;;  %s3458_s11 = scalar_lea.vmem %s108_s2, 32 }
  0x5d   :  { %p3455_p7 = scmp.ne.s32.totalorder %s108_s2, %s3454_s28  ;;  %p3459_p8 = scmp.lt.s32.totalorder %s108_s2, %s108_s2 }
  0x5e   :  { %p3460_p9 = scmp.lt.s32.totalorder %s3458_s11, %s3454_s28 }
  0x60   :  { %p3461_p10 = por %p3460_p9, %p3459_p8 }
  0x62   :  { %p3462_p11 = pnand %p3461_p10, %p3455_p7 }
  0x64   :  { %3465 = shalt.err (!%p3462_p11)
}
  0x65   :  { %110 = dma.hbm_to_vmem [thread:$0]  %s4342_s15, 16, %s108_s2, [#allocation9]  }
  0x66   :  { %s3529_s22 = smov [#allocation11]   ;;  %s3466_s13 = scalar_lea.hbm %s4345_s18, 32 }
  0x67   :  { %s120_s4 = sshll.u32 %s3529_s22, 4  ;;  %p3467_p12 = scmp.ne.s32.totalorder %s4345_s18, %s3466_s13  ;;  %s121_s4 = int_to_ptr.vmem [resolvable:$true] %s120_s4 }
  0x68   :  { %p3470_p13 = scmp.lt.u32.totalorder %s3466_s13, %s4345_s18 }
  0x6a   :  { %p3472_p0 = pnand %p3470_p13, %p3467_p12 }
  0x6c   :  { %3475 = shalt.err (!%p3472_p0)
}
  0x6d   :  { %s3476_s3 = scalar_lea.vmem %s121_s4, 32  ;;  %p3481_p2 = scmp.lt.s32.totalorder %s121_s4, %s121_s4 }
  0x6e   :  { %p3477_p1 = scmp.ne.s32.totalorder %s121_s4, %s3476_s3  ;;  %p3482_p3 = scmp.lt.s32.totalorder %s3476_s3, %s3476_s3 }
  0x70   :  { %p3483_p4 = por %p3482_p3, %p3481_p2 }
  0x72   :  { %p3484_p5 = pnand %p3483_p4, %p3477_p1 }
  0x74   :  { %3487 = shalt.err (!%p3484_p5)
}
  0x75   :  { %126 = dma.hbm_to_vmem [thread:$0]  %s4345_s18, 32, %s121_s4, [#allocation12], %s4359_s24, %s4359_s24, %s3526_s0  }
  0x76   :  { %3510 = dma.done.wait [#allocation3], 256  }
  0x77   :  { %3511 = vsyncadd [#allocation3], 4294967040 }
  0x78   :  { %3512 = dma.done.wait [#allocation6], 2640  }
  0x79   :  { %3513 = vsyncadd [#allocation6], 4294964656 }
  0x7a   :  { %3514 = dma.done.wait [#allocation9], 96  }
  0x7b   :  { %3515 = vsyncadd [#allocation9], 4294967200 }
  0x7c   :  { %3516 = dma.done.wait [#allocation12], 32  }
  0x7d   :  { %3517 = vsyncadd [#allocation12], 4294967264  ;;  %v3530_v0 = vmov 0.0|0.0   ;;  %vm3531_vm0 = vmmov 0   ;;  %v3532_v1 = vmov 0.0   ;;  %s4360_s26 = sld [smem:[#allocation19_spill]] }
  0x7e   :  { %3093 = vmatprep.subr.bf16.mxu0 %v3530_v0  ;;  %3105 = vmatprep.subr.bf16.mxu1 %v3530_v0  ;;  %v163_v3 = vld [vmem:[%s4336_s9] sm:$0xff]  ;;  %v164_v4 = vld [vmem:[%s4336_s9 + $0x8] sm:$0xff]  ;;  %s3533_s23 = smov 32   ;;  %v165_v7 = vld [vmem:[%s4336_s9 + $0x10] sm:$0xff]  ;;  %s4361_s12 = sld [smem:[#allocation20_spill]]  ;;  %vm161_vm1 = vcmask 261120  }
  0x7f   :  { %2823 = vmatprep.mubr.msk.f32.mxu0 %vm3531_vm0, %v3532_v1  ;;  %2834 = vmatprep.mubr.msk.f32.mxu1 %vm3531_vm0, %v3532_v1  ;;  %v3094_v6 = vpack.c.bf16 %v164_v4, %v163_v3  ;;  %v166_v8 = vld [vmem:[%s4336_s9 + $0x18] sm:$0xff]  ;;  %v167_v10 = vld [vmem:[%s4336_s9 + $0x20] sm:$0xff]  ;;  %v168_v11 = vld [vmem:[%s4336_s9 + $0x28] sm:$0xff]  ;;  %vm178_vm2 = vcmask 523264   ;;  %s4362_s15 = sld [smem:[#allocation21_spill]]  ;;  %vm261_vm3 = vcmask 254976  }
  0x80   :  { %v3097_v9 = vpack.c.bf16 %v166_v8, %v165_v7  ;;  %v3100_v12 = vpack.c.bf16 %v168_v11, %v167_v10  ;;  %v169_v13 = vld [vmem:[%s4336_s9 + $0x30] sm:$0xff]  ;;  %v170_v14 = vld [vmem:[%s4336_s9 + $0x38] sm:$0xff]  ;;  %v2574_v16 = vld [vmem:[%s4336_s9 + $0x40] sm:$0xff]  ;;  %s3534_s27 = smov 96   ;;  %s3535_s30 = smov 64   ;;  %vm903_vm4 = vcmask 1041408  }
  0x81   :  { %3095 = vmatpush3.bf16.msra.mxu0 %v3094_v6  ;;  %v3103_v15 = vpack.c.bf16 %v170_v14, %v169_v13  ;;  %v2575_v17 = vld [vmem:[%s4336_s9 + $0x48] sm:$0xff]  ;;  %v2576_v21 = vld [vmem:[%s4336_s9 + $0x50] sm:$0xff]  ;;  %v2577_v22 = vld [vmem:[%s4336_s9 + $0x58] sm:$0xff]  ;;  %vm905_vm5 = vcmask 1043456   ;;  %vm1012_vm6 = vcmask 259072   ;;  %vm1353_vm8 = vcmask 13320  }
  0x82   :  { %3096 = vmatprep.subr.bf16.mxu0 %v3530_v0  ;;  %v3118_v19 = vpack.c.bf16 %v2575_v17, %v2574_v16  ;;  %v3121_v24 = vpack.c.bf16 %v2577_v22, %v2576_v21  ;;  %v2578_v25 = vld [vmem:[%s4336_s9 + $0x60] sm:$0xff]  ;;  %v2579_v26 = vld [vmem:[%s4336_s9 + $0x68] sm:$0xff]  ;;  %v2580_v30 = vld [vmem:[%s4336_s9 + $0x70] sm:$0xff]  ;;  %s3537_s29 = smov 127   ;;  %vm1343_vm9 = vcmask 5120   ;;  %vm1380_vm10 = vcmask 1045504  }
  0x83   :  { %v145_v2 = vld [vmem:[%s4360_s26] sm:$0x3]  ;;  %v3124_v27 = vpack.c.bf16 %v2579_v26, %v2578_v25  ;;  %v2581_v31 = vld [vmem:[%s4336_s9 + $0x78] sm:$0xff]  ;;  %v2567_v35 = vld [vmem:[#allocation7] ss:$0 sm:$0xff]  ;;  %vm1376_vm11 = vcmask 48128  }
  0x84   :  { %158 = vrot.lane.b32.xlu0 %v145_v2, %s3533_s23  ;;  %v478_v5 = vrot.slane %v145_v2, 4  ;;  %v146_v18 = vld [vmem:[%s4361_s12] sm:$0x3]  ;;  %v3127_v33 = vpack.c.bf16 %v2581_v31, %v2580_v30  ;;  %v3816_v48 = vld [vmem:[#allocation8] ss:$0 sm:$0xff]  ;;  %v288_v4 = vld [vmem:[%s4337_s10 + $0x8] sm:$0xff] }
  0x85   :  { %3098 = vmatpush3.bf16.msra.mxu0 %v3097_v9  ;;  %v3800_v28 = vld [vmem:[%s4362_s15] sm:$0x3f]  ;;  %v2582_v49 = vld [vmem:[#allocation7 + $0x1] ss:$0 sm:$0xff]  ;;  %v3824_v2 = vld [vmem:[#allocation8 + $0x1] ss:$0 sm:$0xff] }
  0x86   :  { %3099 = vmatprep.subr.bf16.mxu0 %v3530_v0  ;;  %v584_v58 = vrot.slane %v3800_v28, 4  ;;  %v287_v3 = vld [vmem:[%s4337_s10] sm:$0xff]  ;;  %v289_v6 = vld [vmem:[%s4337_s10 + $0x10] sm:$0xff]  ;;  %v290_v7 = vld [vmem:[%s4337_s10 + $0x18] sm:$0xff]  ;;  %vm1701_vm15 = vcmask 15368  }
  0x87   :  { %v3109_v8 = vpack.c.bf16 %v290_v7, %v289_v6  ;;  %v369_v22 = vld [vmem:[#allocation5] sm:$0xff]  ;;  %v371_v25 = vld [vmem:[#allocation5 + $0x10] sm:$0xff]  ;;  %v372_v26 = vld [vmem:[#allocation5 + $0x18] sm:$0xff] }
  0x88   :  { %479 = vrot.lane.b32.xlu0 %v478_v5, %s3533_s23  ;;  %v3106_v5 = vpack.c.bf16 %v288_v4, %v287_v3 }
  0x89   :  { %3101 = vmatpush3.bf16.msra.mxu0 %v3100_v12 }
  0x8a   :  { %3102 = vmatprep.subr.bf16.mxu0 %v3530_v0  ;;  %3107 = vmatpush3.bf16.msra.mxu1 %v3106_v5 }
  0x8b   :  { %3108 = vmatprep.subr.bf16.mxu1 %v3530_v0 }
  0x8c   :  { %283 = vrot.lane.b32.xlu0 %v3816_v48, %s3534_s27 }
  0x8d   :  { %3104 = vmatpush3.bf16.msra.mxu0 %v3103_v15 }
  0x8e   :  { %3117 = vmatprep.subr.bf16.mxu0 %v3530_v0  ;;  %3110 = vmatpush3.bf16.msra.mxu1 %v3109_v8 }
  0x8f   :  { %3111 = vmatprep.subr.bf16.mxu1 %v3530_v0 }
  0xf6   :  { %v159_v20 = vpop.permute.xlu0 %158 }
  0xf7   :  { %v162_v23 = vsel %vm161_vm1, %v146_v18, %v159_v20 }
  0xf8   :  { %2824 = vmatmul.mubr.msk.f32.vlgmr.msra.gmra.mrb[0].mxu0 %vm178_vm2, %v162_v23  ;;  %v370_v23 = vld [vmem:[#allocation5 + $0x8] sm:$0xff] }
  0xf9   :  { %3119 = vmatpush3.bf16.msra.mxu0 %v3118_v19  ;;  %2864 = vmatprep.mubr.msk.f32.mxu0 %vm3531_vm0, %v3532_v1 }
  0xfa   :  { %3120 = vmatprep.subr.bf16.mxu0 %v3530_v0  ;;  %v480_v29 = vpop.permute.xlu0 %479 }
  0xfb   :  { %v482_v32 = vsel %vm161_vm1, %v3800_v28, %v480_v29 }
  0xfc   :  { %v501_v34 = vrot.slane %v482_v32, 4  ;;  %v2586_v32 = vld [vmem:[%s4337_s10 + $0x20] sm:$0xff] }
  0xfd   :  { %3122 = vmatpush3.bf16.msra.mxu0 %v3121_v24  ;;  %v3112_v24 = vpack.c.bf16 %v370_v23, %v369_v22 }
  0xfe   :  { %3123 = vmatprep.subr.bf16.mxu0 %v3530_v0  ;;  %v284_v19 = vpop.permute.xlu0 %283 }
 0x101   :  { %3125 = vmatpush3.bf16.msra.mxu0 %v3124_v27  ;;  %v3115_v27 = vpack.c.bf16 %v372_v26, %v371_v25 }
 0x102   :  { %3126 = vmatprep.subr.bf16.mxu0 %v3530_v0 }
 0x105   :  { %3128 = vmatpush3.bf16.msra.mxu0 %v3127_v33  ;;  %v2587_v33 = vld [vmem:[%s4337_s10 + $0x28] sm:$0xff] }
 0x106   :  { %3141 = vmatprep.subr.bf16.mxu0 %v3530_v0 }
 0x108   :  { %2865 = vmatmul.mubr.msk.f32.vlgmr.msra.gmra.mrb[2].mxu0 %vm178_vm2, %v501_v34 }
 0x109   :  { %2905 = vmatprep.mubr.msk.f32.mxu0 %vm3531_vm0, %v3532_v1 }
 0x1cb   :  { %v248_v36 = vpop.f32.mrb[0].mxu0 }
 0x1cc   :  { %v249_v37 = vadd.f32 %v2567_v35, %v248_v36  ;;  %v2825_v38 = vpop.f32.mrb[1].mxu0 }
 0x1ce   :  { %v2569_v39 = vmul.f32 -1.442695, %v249_v37 }
 0x1d0   :  { %3280 = vpow2.f32 %v2569_v39  ;;  %v3130_v39 = vpack.c.bf16 %v2587_v33, %v2586_v32 }
 0x1da   :  { %v3281_v40 = vpop.eup %3280 }
 0x1db   :  { %v256_v41 = vadd.f32 1.0, %v3281_v40  ;;  %v570_v42 = vpop.f32.mrb[2].mxu0 }
 0x1dc   :  { %v2866_v43 = vpop.f32.mrb[3].mxu0  ;;  %v571_v50 = vadd.f32 %v2582_v49, %v570_v42  ;;  %v2588_v42 = vld [vmem:[%s4337_s10 + $0x30] sm:$0xff] }
 0x1dd   :  { %3282 = vrcp.f32 %v256_v41  ;;  %v2589_v43 = vld [vmem:[%s4337_s10 + $0x38] sm:$0xff]  ;;  %v695_v49 = vld [vmem:[#allocation5 + $0x20] sm:$0xff] }
 0x1de   :  { %v2584_v51 = vmul.f32 -1.442695, %v571_v50 }
 0x1e0   :  { %3284 = vpow2.f32 %v2584_v51 }
 0x1e7   :  { %v3283_v44 = vpop.eup %3282 }
 0x1e8   :  { %v259_v45 = vsub.f32 1.0, %v3283_v44  ;;  %v3133_v44 = vpack.c.bf16 %v2589_v43, %v2588_v42  ;;  %v812_v42 = vld [vmem:[%s4341_s14 + $0x18] sm:$0xff] }
 0x1ea   :  { %v260_v46 = vmul.f32 %v259_v45, %v146_v18  ;;  %v3285_v52 = vpop.eup %3284 }
 0x1eb   :  { %v579_v53 = vadd.f32 1.0, %v3285_v52  ;;  %v697_v52 = vld [vmem:[#allocation5 + $0x30] sm:$0xff] }
 0x1ec   :  { %v262_v47 = vsel %vm261_vm3, %v260_v46, 0.0 }
 0x1ed   :  { %263 = vadd.xlane.f32.xlu1 %v262_v47  ;;  %3286 = vrcp.f32 %v579_v53  ;;  %v698_v53 = vld [vmem:[#allocation5 + $0x38] sm:$0xff] }
 0x1f7   :  { %v3287_v54 = vpop.eup %3286 }
 0x1f8   :  { %v582_v57 = vsub.f32 1.0, %v3287_v54  ;;  %v3139_v54 = vpack.c.bf16 %v698_v53, %v697_v52 }
 0x1fa   :  { %v586_v61 = vmul.f32 %v584_v58, %v582_v57 }
 0x1fc   :  { %v587_v63 = vsel %vm261_vm3, %v586_v61, 0.0 }
 0x27a   :  { %v264_v55 = vpop.xlane.xlu1 %263 }
 0x27b   :  { %v266_v56 = vmul.f32 0.03125, %v264_v55 }
 0x27d   :  { %v267_v59 = vsub.f32 %v260_v46, %v266_v56 }
 0x27f   :  { %v268_v60 = vmul.f32 %v267_v59, %v267_v59 }
 0x281   :  { %v269_v62 = vsel %vm261_vm3, %v268_v60, 0.0 }
 0x282   :  { %270 = vadd.xlane.f32.xlu1 %v269_v62 }
 0x286   :  { %588 = vadd.xlane.f32.xlu1 %v587_v63 }
 0x297   :  { %292 = vrot.lane.b32.xlu1 %v249_v37, %s3534_s27 }
 0x29b   :  { %607 = vrot.lane.b32.xlu1 %v3824_v2, %s3534_s27 }
 0x29f   :  { %617 = vrot.lane.b32.xlu1 %v571_v50, %s3534_s27 }
 0x2a3   :  { %373 = vrot.lane.b32.xlu1 %v249_v37, %s3535_s30 }
 0x2a7   :  { %699 = vrot.lane.b32.xlu1 %v571_v50, %s3535_s30  ;;  %v696_v50 = vld [vmem:[#allocation5 + $0x28] sm:$0xff] }
 0x2a8   :  { %v3136_v51 = vpack.c.bf16 %v696_v50, %v695_v49  ;;  %v815_v49 = vld [vmem:[%s4341_s14 + $0x30] sm:$0xff]  ;;  %v816_v50 = vld [vmem:[%s4341_s14 + $0x38] sm:$0xff] }
 0x30f   :  { %v271_v9 = vpop.xlane.xlu1 %270 }
 0x310   :  { %v272_v10 = vmul.f32 0.03125, %v271_v9 }
 0x312   :  { %v273_v11 = vadd.f32 1e-05, %v272_v10 }
 0x313   :  { %v589_v12 = vpop.xlane.xlu1 %588 }
 0x314   :  { %3288 = vrsqrt.f32 %v273_v11  ;;  %v590_v13 = vmul.f32 0.03125, %v589_v12 }
 0x316   :  { %v591_v14 = vsub.f32 %v586_v61, %v590_v13 }
 0x317   :  { %v293_v35 = vpop.permute.xlu1 %292 }
 0x318   :  { %v592_v15 = vmul.f32 %v591_v14, %v591_v14 }
 0x31a   :  { %v593_v16 = vsel %vm261_vm3, %v592_v15, 0.0 }
 0x31b   :  { %594 = vadd.xlane.f32.xlu0 %v593_v16  ;;  %v608_v46 = vpop.permute.xlu1 %607 }
 0x31e   :  { %v3289_v17 = vpop.eup %3288 }
 0x31f   :  { %v275_v18 = vmul.f32 %v3289_v17, %v267_v59  ;;  %v618_v55 = vpop.permute.xlu1 %617 }
 0x321   :  { %v282_v20 = vmul.f32 %v3816_v48, %v275_v18 }
 0x323   :  { %v3847_v21 = vadd.f32 %v284_v19, %v282_v20  ;;  %v374_v56 = vpop.permute.xlu1 %373 }
 0x325   :  { %2835 = vmatmul.mubr.msk.f32.vlgmr.msra.gmra.mrb[0].mxu1 %vm161_vm1, %v3847_v21 }
 0x326   :  { %2845 = vmatprep.mubr.msk.f32.mxu1 %vm3531_vm0, %v3532_v1  ;;  %3113 = vmatpush3.bf16.msra.mxu1 %v3112_v24 }
 0x327   :  { %3114 = vmatprep.subr.bf16.mxu1 %v3530_v0 }
 0x32a   :  { %3116 = vmatpush3.bf16.msra.mxu1 %v3115_v27 }
 0x32b   :  { %3129 = vmatprep.subr.bf16.mxu1 %v3530_v0 }
 0x3a8   :  { %v595_v29 = vpop.xlane.xlu0 %594 }
 0x3a9   :  { %v596_v30 = vmul.f32 0.03125, %v595_v29 }
 0x3ab   :  { %v597_v31 = vadd.f32 1e-05, %v596_v30 }
 0x3ad   :  { %3290 = vrsqrt.f32 %v597_v31 }
 0x3b7   :  { %v3291_v34 = vpop.eup %3290 }
 0x3b8   :  { %v599_v40 = vmul.f32 %v3291_v34, %v591_v14  ;;  %v700_v14 = vpop.permute.xlu1 %699 }
 0x3ba   :  { %v606_v45 = vmul.f32 %v3824_v2, %v599_v40  ;;  %v810_v40 = vld [vmem:[%s4341_s14 + $0x8] sm:$0xff] }
 0x3bc   :  { %v3872_v47 = vadd.f32 %v608_v46, %v606_v45  ;;  %v814_v45 = vld [vmem:[%s4341_s14 + $0x28] sm:$0xff] }
 0x3f8   :  { %v364_v36 = vpop.f32.mrb[0].mxu1 }
 0x3f9   :  { %v365_v37 = vadd.f32 %v364_v36, %v293_v35  ;;  %v2836_v38 = vpop.f32.mrb[1].mxu1 }
 0x3fb   :  { %v368_v41 = vmax.f32 %v365_v37, 0.0 }
 0x3fd   :  { %2846 = vmatmul.mubr.msk.f32.vlgmr.msra.gmra.mrb[2].mxu1 %vm161_vm1, %v368_v41 }
 0x3fe   :  { %3131 = vmatpush3.bf16.msra.mxu1 %v3130_v39  ;;  %2875 = vmatprep.mubr.msk.f32.mxu1 %vm3531_vm0, %v3532_v1  ;;  %v809_v39 = vld [vmem:[%s4341_s14] sm:$0xff] }
 0x3ff   :  { %3132 = vmatprep.subr.bf16.mxu1 %v3530_v0 }
 0x402   :  { %3134 = vmatpush3.bf16.msra.mxu1 %v3133_v44  ;;  %v813_v44 = vld [vmem:[%s4341_s14 + $0x20] sm:$0xff] }
 0x403   :  { %3135 = vmatprep.subr.bf16.mxu1 %v3530_v0  ;;  %v3148_v46 = vpack.c.bf16 %v814_v45, %v813_v44  ;;  %v2610_v44 = vld [vmem:[%s4337_s10 + $0x58] sm:$0xff] }
 0x405   :  { %2876 = vmatmul.mubr.msk.f32.vlgmr.msra.gmra.mrb[4].mxu1 %vm161_vm1, %v3872_v47 }
 0x406   :  { %2886 = vmatprep.mubr.msk.f32.mxu1 %vm3531_vm0, %v3532_v1  ;;  %3137 = vmatpush3.bf16.msra.mxu1 %v3136_v51  ;;  %v3151_v51 = vpack.c.bf16 %v816_v50, %v815_v49  ;;  %v1122_v49 = vld [vmem:[#allocation5 + $0x48] sm:$0xff] }
 0x407   :  { %3138 = vmatprep.subr.bf16.mxu1 %v3530_v0 }
 0x40a   :  { %3140 = vmatpush3.bf16.msra.mxu1 %v3139_v54 }
 0x40b   :  { %3153 = vmatprep.subr.bf16.mxu1 %v3530_v0 }
 0x4d0   :  { %v445_v57 = vpop.f32.mrb[2].mxu1 }
 0x4d1   :  { %v446_v58 = vadd.f32 %v445_v57, %v374_v56  ;;  %v2847_v59 = vpop.f32.mrb[3].mxu1 }
 0x4d3   :  { %v2573_v60 = vmul.f32 -1.442695, %v446_v58 }
 0x4d5   :  { %3292 = vpow2.f32 %v2573_v60 }
 0x4d8   :  { %v689_v61 = vpop.f32.mrb[4].mxu1 }
 0x4d9   :  { %v690_v62 = vadd.f32 %v689_v61, %v618_v55  ;;  %v2877_v63 = vpop.f32.mrb[5].mxu1 }
 0x4db   :  { %v693_v3 = vmax.f32 %v690_v62, 0.0 }
 0x4dd   :  { %2887 = vmatmul.mubr.msk.f32.vlgmr.msra.gmra.mrb[6].mxu1 %vm161_vm1, %v693_v3 }
 0x4de   :  { %2924 = vmatprep.mubr.msk.f32.mxu1 %vm3531_vm0, %v3532_v1 }
 0x4df   :  { %v3293_v4 = vpop.eup %3292 }
 0x4e0   :  { %v452_v5 = vadd.f32 1.0, %v3293_v4  ;;  %v2596_v4 = vld [vmem:[%s4336_s9 + $0x88] sm:$0xff] }
 0x4e2   :  { %3294 = vrcp.f32 %v452_v5 }
 0x4ec   :  { %v3295_v6 = vpop.eup %3294 }
 0x4ed   :  { %v455_v7 = vmul.f32 %v3295_v6, %v368_v41  ;;  %v3142_v41 = vpack.c.bf16 %v810_v40, %v809_v39  ;;  %v2598_v6 = vld [vmem:[%s4336_s9 + $0x98] sm:$0xff] }
 0x4ef   :  { %v456_v8 = vsel %vm261_vm3, %v455_v7, 0.0  ;;  %3143 = vmatpush3.bf16.msra.mxu0 %v3142_v41 }
 0x4f0   :  { %457 = vadd.xlane.f32.xlu0 %v456_v8  ;;  %3144 = vmatprep.subr.bf16.mxu0 %v3530_v0  ;;  %v2599_v8 = vld [vmem:[%s4336_s9 + $0xa0] sm:$0xff] }
 0x57d   :  { %v458_v9 = vpop.xlane.xlu0 %457 }
 0x57e   :  { %v459_v10 = vmul.f32 0.03125, %v458_v9  ;;  %v2600_v9 = vld [vmem:[%s4336_s9 + $0xa8] sm:$0xff] }
 0x580   :  { %v460_v11 = vsub.f32 %v455_v7, %v459_v10  ;;  %v3160_v10 = vpack.c.bf16 %v2600_v9, %v2599_v8 }
 0x582   :  { %v461_v12 = vmul.f32 %v460_v11, %v460_v11 }
 0x584   :  { %v462_v13 = vsel %vm261_vm3, %v461_v12, 0.0  ;;  %v2602_v12 = vld [vmem:[%s4336_s9 + $0xb8] sm:$0xff] }
 0x585   :  { %463 = vadd.xlane.f32.xlu0 %v462_v13 }
 0x59b   :  { %469 = vrot.lane.b32.xlu0 %v3816_v48, %s3535_s30 }
 0x59f   :  { %473 = vrot.lane.b32.xlu0 %v3816_v48, %s3533_s23 }
 0x5b0   :  { %v771_v15 = vpop.f32.mrb[6].mxu1 }
 0x5b1   :  { %v772_v16 = vadd.f32 %v771_v15, %v700_v14  ;;  %v2888_v17 = vpop.f32.mrb[7].mxu1  ;;  %v2593_v14 = vld [vmem:[#allocation10] ss:$0 sm:$0xff] }
 0x5b3   :  { %v2592_v18 = vmul.f32 -1.442695, %v772_v16 }
 0x5b5   :  { %3296 = vpow2.f32 %v2592_v18 }
 0x5bf   :  { %v3297_v19 = vpop.eup %3296 }
 0x5c0   :  { %v778_v20 = vadd.f32 1.0, %v3297_v19 }
 0x5c2   :  { %3298 = vrcp.f32 %v778_v20 }
 0x5cc   :  { %v3299_v22 = vpop.eup %3298 }
 0x5cd   :  { %v781_v23 = vmul.f32 %v3299_v22, %v693_v3  ;;  %v2595_v3 = vld [vmem:[%s4336_s9 + $0x80] sm:$0xff] }
 0x5ce   :  { %v3154_v5 = vpack.c.bf16 %v2596_v4, %v2595_v3 }
 0x5cf   :  { %v782_v24 = vsel %vm261_vm3, %v781_v23, 0.0 }
 0x5d0   :  { %783 = vadd.xlane.f32.xlu1 %v782_v24  ;;  %3155 = vmatpush3.bf16.msra.mxu1 %v3154_v5 }
 0x5d1   :  { %3156 = vmatprep.subr.bf16.mxu1 %v3530_v0 }
 0x5e1   :  { %795 = vrot.lane.b32.xlu1 %v3824_v2, %s3535_s30 }
 0x5e5   :  { %799 = vrot.lane.b32.xlu1 %v3824_v2, %s3533_s23 }
 0x612   :  { %v464_v48 = vpop.xlane.xlu0 %463 }
 0x613   :  { %v465_v25 = vmul.f32 0.03125, %v464_v48 }
 0x615   :  { %v466_v26 = vadd.f32 1e-05, %v465_v25  ;;  %v2603_v25 = vld [vmem:[#allocation7 + $0x2] ss:$0 sm:$0xff] }
 0x616   :  { %v470_v27 = vpop.permute.xlu0 %469 }
 0x617   :  { %3300 = vrsqrt.f32 %v466_v26 }
 0x61a   :  { %v474_v31 = vpop.permute.xlu0 %473 }
 0x621   :  { %v3301_v29 = vpop.eup %3300 }
 0x622   :  { %v468_v30 = vmul.f32 %v3301_v29, %v460_v11  ;;  %v2601_v11 = vld [vmem:[%s4336_s9 + $0xb0] sm:$0xff] }
 0x623   :  { %v3163_v13 = vpack.c.bf16 %v2602_v12, %v2601_v11 }
 0x624   :  { %v472_v32 = vmul.f32 %v470_v27, %v468_v30 }
 0x626   :  { %v476_v33 = vadd.f32 %v474_v31, %v472_v32 }
 0x628   :  { %v477_v34 = vsub.f32 %v3847_v21, %v476_v33  ;;  %v811_v21 = vld [vmem:[%s4341_s14 + $0x10] sm:$0xff] }
 0x629   :  { %v3145_v43 = vpack.c.bf16 %v812_v42, %v811_v21  ;;  %v2608_v21 = vld [vmem:[%s4337_s10 + $0x48] sm:$0xff] }
 0x62a   :  { %805 = vrot.lane.b32.xlu1 %v477_v34, %s3533_s23 }
 0x62b   :  { %3146 = vmatpush3.bf16.msra.mxu0 %v3145_v43  ;;  %v2609_v43 = vld [vmem:[%s4337_s10 + $0x50] sm:$0xff] }
 0x62c   :  { %3147 = vmatprep.subr.bf16.mxu0 %v3530_v0  ;;  %v3169_v45 = vpack.c.bf16 %v2610_v44, %v2609_v43 }
 0x62f   :  { %3149 = vmatpush3.bf16.msra.mxu0 %v3148_v46  ;;  %v1121_v46 = vld [vmem:[#allocation5 + $0x40] sm:$0xff] }
 0x630   :  { %3150 = vmatprep.subr.bf16.mxu0 %v3530_v0  ;;  %v3172_v50 = vpack.c.bf16 %v1122_v49, %v1121_v46  ;;  %v2614_v46 = vld [vmem:[%s4344_s17] ss:$0 sm:$0xff] }
 0x633   :  { %3152 = vmatpush3.bf16.msra.mxu0 %v3151_v51 }
 0x634   :  { %3165 = vmatprep.subr.bf16.mxu0 %v3530_v0 }
 0x65d   :  { %v784_v35 = vpop.xlane.xlu1 %783 }
 0x65e   :  { %v785_v36 = vmul.f32 0.03125, %v784_v35 }
 0x660   :  { %v786_v37 = vsub.f32 %v781_v23, %v785_v36 }
 0x661   :  { %v796_v55 = vpop.permute.xlu1 %795 }
 0x662   :  { %v787_v38 = vmul.f32 %v786_v37, %v786_v37 }
 0x664   :  { %v788_v2 = vsel %vm261_vm3, %v787_v38, 0.0 }
 0x665   :  { %789 = vadd.xlane.f32.xlu0 %v788_v2  ;;  %v800_v58 = vpop.permute.xlu1 %799 }
 0x69c   :  { %v806_v62 = vpop.permute.xlu1 %805 }
 0x6f2   :  { %v790_v52 = vpop.xlane.xlu0 %789 }
 0x6f3   :  { %v791_v53 = vmul.f32 0.03125, %v790_v52 }
 0x6f5   :  { %v792_v54 = vadd.f32 1e-05, %v791_v53 }
 0x6f7   :  { %3302 = vrsqrt.f32 %v792_v54 }
 0x701   :  { %v3303_v56 = vpop.eup %3302 }
 0x702   :  { %v794_v57 = vmul.f32 %v3303_v56, %v786_v37  ;;  %v3969_v37 = vld [vmem:[#allocation8 + $0x2] ss:$0 sm:$0xff] }
 0x704   :  { %v798_v59 = vmul.f32 %v796_v55, %v794_v57 }
 0x706   :  { %v802_v60 = vadd.f32 %v800_v58, %v798_v59  ;;  %v1123_v59 = vld [vmem:[#allocation5 + $0x50] sm:$0xff] }
 0x708   :  { %v803_v61 = vsub.f32 %v3872_v47, %v802_v60  ;;  %v2597_v47 = vld [vmem:[%s4336_s9 + $0x90] sm:$0xff]  ;;  %v1124_v60 = vld [vmem:[#allocation5 + $0x58] sm:$0xff] }
 0x709   :  { %v3157_v7 = vpack.c.bf16 %v2598_v6, %v2597_v47 }
 0x70a   :  { %v808_v63 = vsel %vm161_vm1, %v803_v61, %v806_v62  ;;  %v3175_v61 = vpack.c.bf16 %v1124_v60, %v1123_v59 }
 0x70b   :  { %2906 = vmatmul.mubr.msk.f32.vlgmr.msra.gmra.mrb[4].mxu0 %vm178_vm2, %v808_v63  ;;  %3158 = vmatpush3.bf16.msra.mxu1 %v3157_v7 }
 0x70c   :  { %2935 = vmatprep.mubr.msk.f32.mxu0 %vm3531_vm0, %v3532_v1  ;;  %3159 = vmatprep.subr.bf16.mxu1 %v3530_v0 }
 0x70f   :  { %3161 = vmatpush3.bf16.msra.mxu1 %v3160_v10 }
 0x710   :  { %3162 = vmatprep.subr.bf16.mxu1 %v3530_v0 }
 0x713   :  { %3164 = vmatpush3.bf16.msra.mxu1 %v3163_v13 }
 0x714   :  { %3171 = vmatprep.subr.bf16.mxu1 %v3530_v0 }
 0x7de   :  { %v893_v15 = vpop.f32.mrb[4].mxu0 }
 0x7df   :  { %v894_v16 = vadd.f32 %v2593_v14, %v893_v15  ;;  %v2907_v17 = vpop.f32.mrb[5].mxu0 }
 0x7e1   :  { %v897_v18 = vmax.f32 %v894_v16, 0.0 }
 0x7e3   :  { %v899_v19 = vrot.slane %v897_v18, 6  ;;  %v901_v20 = vrot.slane %v897_v18, 4 }
 0x7e5   :  { %v904_v22 = vsel %vm903_vm4, %v897_v18, %v899_v19 }
 0x7e6   :  { %v906_v23 = vsel %vm905_vm5, %v904_v22, %v901_v20  ;;  %v1241_v20 = vld [vmem:[%s4343_s16] sm:$0xff]  ;;  %v1242_v22 = vld [vmem:[%s4343_s16 + $0x8] sm:$0xff] }
 0x7e7   :  { %908 = vrot.lane.b32.xlu1 %v906_v23, %s3533_s23  ;;  %v1243_v23 = vld [vmem:[%s4343_s16 + $0x10] sm:$0xff] }
 0x859   :  { %v909_v24 = vpop.permute.xlu1 %908 }
 0x85a   :  { %v911_v48 = vsel %vm161_vm1, %v3800_v28, %v909_v24  ;;  %v3178_v24 = vpack.c.bf16 %v1242_v22, %v1241_v20  ;;  %v152_v22 = vld [vmem:[%s4332_s5] sm:$0x3] }
 0x85b   :  { %2925 = vmatmul.mubr.msk.f32.vlgmr.msra.gmra.mrb[8].mxu1 %vm178_vm2, %v911_v48  ;;  %v1244_v48 = vld [vmem:[%s4343_s16 + $0x18] sm:$0xff] }
 0x85c   :  { %2946 = vmatprep.mubr.msk.f32.mxu1 %vm3531_vm0, %v3532_v1  ;;  %3173 = vmatpush3.bf16.msra.mxu1 %v3172_v50 }
 0x85d   :  { %3174 = vmatprep.subr.bf16.mxu1 %v3530_v0 }
 0x860   :  { %3176 = vmatpush3.bf16.msra.mxu1 %v3175_v61 }
 0x861   :  { %2968 = vmatprep.subr.mxu1 %v3532_v1 }
 0x92e   :  { %v998_v26 = vpop.f32.mrb[8].mxu1 }
 0x92f   :  { %v999_v27 = vadd.f32 %v2603_v25, %v998_v26  ;;  %v2926_v29 = vpop.f32.mrb[9].mxu1  ;;  %v3181_v25 = vpack.c.bf16 %v1244_v48, %v1243_v23  ;;  %v1245_v26 = vld [vmem:[%s4343_s16 + $0x20] sm:$0xff] }
 0x931   :  { %v2605_v30 = vmul.f32 -1.442695, %v999_v27 }
 0x933   :  { %3304 = vpow2.f32 %v2605_v30  ;;  %v1247_v30 = vld [vmem:[%s4343_s16 + $0x30] sm:$0xff] }
 0x93d   :  { %v3305_v31 = vpop.eup %3304 }
 0x93e   :  { %v1007_v32 = vadd.f32 1.0, %v3305_v31  ;;  %v1248_v31 = vld [vmem:[%s4343_s16 + $0x38] sm:$0xff] }
 0x940   :  { %3306 = vrcp.f32 %v1007_v32  ;;  %v3187_v32 = vpack.c.bf16 %v1248_v31, %v1247_v30  ;;  %v4077_v31 = vld [vmem:[#allocation2 + $0x8] sm:$0xff] }
 0x94a   :  { %v3307_v33 = vpop.eup %3306 }
 0x94b   :  { %v1010_v34 = vsub.f32 1.0, %v3307_v33 }
 0x94d   :  { %v1011_v35 = vmul.f32 %v1010_v34, %v3800_v28  ;;  %v2607_v28 = vld [vmem:[%s4337_s10 + $0x40] sm:$0xff] }
 0x94e   :  { %v3166_v42 = vpack.c.bf16 %v2608_v21, %v2607_v28 }
 0x94f   :  { %v1013_v36 = vsel %vm1012_vm6, %v1011_v35, 0.0 }
 0x950   :  { %1014 = vadd.xlane.f32.xlu0 %v1013_v36  ;;  %3167 = vmatpush3.bf16.msra.mxu0 %v3166_v42 }
 0x951   :  { %3168 = vmatprep.subr.bf16.mxu0 %v3530_v0 }
 0x954   :  { %3170 = vmatpush3.bf16.msra.mxu0 %v3169_v45 }
 0x955   :  { %3177 = vmatprep.subr.bf16.mxu0 %v3530_v0 }
 0x966   :  { %1033 = vrot.lane.b32.xlu0 %v3969_v37, %s3534_s27 }
 0x96a   :  { %1043 = vrot.lane.b32.xlu0 %v999_v27, %s3534_s27 }
 0x96e   :  { %1125 = vrot.lane.b32.xlu0 %v999_v27, %s3535_s30  ;;  %v1246_v27 = vld [vmem:[%s4343_s16 + $0x28] sm:$0xff] }
 0x96f   :  { %v3184_v29 = vpack.c.bf16 %v1246_v27, %v1245_v26  ;;  %v4067_v26 = vld [vmem:[#allocation2] sm:$0xff] }
 0x970   :  { %v2621_v27 = vld [vmem:[%s4343_s16 + $0x40] sm:$0xff] }
 0x9dd   :  { %v1015_v38 = vpop.xlane.xlu0 %1014 }
 0x9de   :  { %v1016_v2 = vmul.f32 0.03125, %v1015_v38 }
 0x9e0   :  { %v1017_v39 = vsub.f32 %v1011_v35, %v1016_v2 }
 0x9e1   :  { %v1034_v57 = vpop.permute.xlu0 %1033 }
 0x9e2   :  { %v1018_v40 = vmul.f32 %v1017_v39, %v1017_v39 }
 0x9e4   :  { %v1019_v41 = vsel %vm1012_vm6, %v1018_v40, 0.0 }
 0x9e5   :  { %1020 = vadd.xlane.f32.xlu1 %v1019_v41  ;;  %v1044_v62 = vpop.permute.xlu0 %1043 }
 0x9e9   :  { %v1126_v5 = vpop.permute.xlu0 %1125 }
 0x9f6   :  { %1221 = vrot.lane.b32.xlu1 %v3969_v37, %s3535_s30 }
 0xa72   :  { %v1021_v51 = vpop.xlane.xlu1 %1020 }
 0xa73   :  { %v1022_v52 = vmul.f32 0.03125, %v1021_v51 }
 0xa75   :  { %v1023_v53 = vadd.f32 1e-05, %v1022_v52  ;;  %v2616_v52 = vld [vmem:[#allocation11] ss:$0 sm:$0xff] }
 0xa76   :  { %v1222_v33 = vpop.permute.xlu1 %1221 }
 0xa77   :  { %3308 = vrsqrt.f32 %v1023_v53 }
 0xa81   :  { %v3309_v54 = vpop.eup %3308 }
 0xa82   :  { %v1025_v55 = vmul.f32 %v3309_v54, %v1017_v39 }
 0xa84   :  { %v1032_v56 = vmul.f32 %v3969_v37, %v1025_v55 }
 0xa86   :  { %v3994_v58 = vadd.f32 %v1034_v57, %v1032_v56  ;;  %v153_v56 = vld [vmem:[%s4333_s6] sm:$0x3f] }
 0xa87   :  { %vm1341_vm7 = vcmp.gt.f32.partialorder %v153_v56, 0.5 }
 0xa88   :  { %2936 = vmatmul.mubr.msk.f32.vlgmr.msra.gmra.mrb[6].mxu0 %vm161_vm1, %v3994_v58 }
 0xa89   :  { %2965 = vmatprep.mubr.msk.f32.mxu0 %vm3531_vm0, %v3532_v1  ;;  %3179 = vmatpush3.bf16.msra.mxu0 %v3178_v24 }
 0xa8a   :  { %3180 = vmatprep.subr.bf16.mxu0 %v3530_v0 }
 0xa8d   :  { %3182 = vmatpush3.bf16.msra.mxu0 %v3181_v25 }
 0xa8e   :  { %3183 = vmatprep.subr.bf16.mxu0 %v3530_v0 }
 0xa91   :  { %3185 = vmatpush3.bf16.msra.mxu0 %v3184_v29  ;;  %v2622_v29 = vld [vmem:[%s4343_s16 + $0x48] sm:$0xff] }
 0xa92   :  { %3186 = vmatprep.subr.bf16.mxu0 %v3530_v0  ;;  %v3189_v30 = vpack.c.bf16 %v2622_v29, %v2621_v27 }
 0xa95   :  { %3188 = vmatpush3.bf16.msra.mxu0 %v3187_v32  ;;  %v2623_v32 = vld [vmem:[%s4343_s16 + $0x50] sm:$0xff] }
 0xa96   :  { %3205 = vmatprep.subr.bf16.mxu0 %v3530_v0 }
 0xb5b   :  { %v1115_v63 = vpop.f32.mrb[6].mxu0 }
 0xb5c   :  { %v1116_v3 = vadd.f32 %v1115_v63, %v1044_v62  ;;  %v2937_v4 = vpop.f32.mrb[7].mxu0 }
 0xb5d   :  { %v3536_v4 = vmov 0  }
 0xb5e   :  { %v1119_v47 = vmax.f32 %v1116_v3, 0.0  ;;  %3278 = vset.pattern.permute.xlu0 %v3536_v4  ;;  %3279 = vset.pattern.permute.xlu1 %v3536_v4 }
 0xb60   :  { %2947 = vmatmul.mubr.msk.f32.vlgmr.msra.gmra.mrb[10].mxu1 %vm161_vm1, %v1119_v47 }
 0xb61   :  { %2970 = vmatprep.mubr.msk.f32.mxu1 %vm3531_vm0, %v3532_v1 }
 0xc33   :  { %v1197_v6 = vpop.f32.mrb[10].mxu1 }
 0xc34   :  { %v1198_v7 = vadd.f32 %v1197_v6, %v1126_v5  ;;  %v2948_v8 = vpop.f32.mrb[11].mxu1 }
 0xc36   :  { %v2613_v9 = vmul.f32 -1.442695, %v1198_v7 }
 0xc38   :  { %3310 = vpow2.f32 %v2613_v9 }
 0xc42   :  { %v3311_v10 = vpop.eup %3310 }
 0xc43   :  { %v1204_v11 = vadd.f32 1.0, %v3311_v10 }
 0xc45   :  { %3312 = vrcp.f32 %v1204_v11 }
 0xc4f   :  { %v3313_v12 = vpop.eup %3312 }
 0xc50   :  { %v1207_v13 = vmul.f32 %v3313_v12, %v1119_v47 }
 0xc52   :  { %v1208_v14 = vsel %vm1012_vm6, %v1207_v13, 0.0 }
 0xc53   :  { %1209 = vadd.xlane.f32.xlu0 %v1208_v14 }
 0xce0   :  { %v1210_v15 = vpop.xlane.xlu0 %1209 }
 0xce1   :  { %v1211_v16 = vmul.f32 0.03125, %v1210_v15 }
 0xce3   :  { %v1212_v17 = vsub.f32 %v1207_v13, %v1211_v16 }
 0xce5   :  { %v1213_v18 = vmul.f32 %v1212_v17, %v1212_v17 }
 0xce7   :  { %v1214_v19 = vsel %vm1012_vm6, %v1213_v18, 0.0 }
 0xce8   :  { %1215 = vadd.xlane.f32.xlu1 %v1214_v19 }
 0xcf9   :  { %1225 = vrot.lane.b32.xlu1 %v3969_v37, %s3533_s23 }
 0xd75   :  { %v1216_v34 = vpop.xlane.xlu1 %1215 }
 0xd76   :  { %v1217_v35 = vmul.f32 0.03125, %v1216_v34 }
 0xd78   :  { %v1218_v36 = vadd.f32 1e-05, %v1217_v35  ;;  %v2625_v35 = vld [vmem:[%s4343_s16 + $0x60] sm:$0xff] }
 0xd79   :  { %v1226_v2 = vpop.permute.xlu1 %1225 }
 0xd7a   :  { %3314 = vrsqrt.f32 %v1218_v36  ;;  %v2626_v36 = vld [vmem:[%s4343_s16 + $0x68] sm:$0xff] }
 0xd84   :  { %v3315_v37 = vpop.eup %3314 }
 0xd85   :  { %v1220_v38 = vmul.f32 %v3315_v37, %v1212_v17  ;;  %v3197_v37 = vpack.c.bf16 %v2626_v36, %v2625_v35 }
 0xd87   :  { %v1224_v39 = vmul.f32 %v1222_v33, %v1220_v38  ;;  %v2624_v33 = vld [vmem:[%s4343_s16 + $0x58] sm:$0xff]  ;;  %v2627_v38 = vld [vmem:[%s4343_s16 + $0x70] sm:$0xff] }
 0xd88   :  { %v3193_v34 = vpack.c.bf16 %v2624_v33, %v2623_v32 }
 0xd89   :  { %v1228_v40 = vadd.f32 %v1226_v2, %v1224_v39  ;;  %v2628_v2 = vld [vmem:[%s4343_s16 + $0x78] sm:$0xff] }
 0xd8a   :  { %v3201_v39 = vpack.c.bf16 %v2628_v2, %v2627_v38 }
 0xd8b   :  { %v4037_v41 = vsub.f32 %v3994_v58, %v1228_v40 }
 0xd8d   :  { %1237 = vrot.lane.b32.xlu1 %v4037_v41, %s3533_s23  ;;  %v1231_v28 = vrot.slane %v4037_v41, 4  ;;  %v1233_v21 = vrot.slane %v4037_v41, 2 }
 0xd8f   :  { %v1235_v42 = vsel %vm903_vm4, %v1231_v28, %v1233_v21 }
 0xd90   :  { %v1236_v44 = vsel %vm905_vm5, %v1235_v42, %v4037_v41 }
 0xdff   :  { %v1238_v43 = vpop.permute.xlu1 %1237 }
 0xe00   :  { %v1240_v45 = vsel %vm161_vm1, %v1236_v44, %v1238_v43 }
 0xe01   :  { %2966 = vmatmul.mubr.msk.f32.vlgmr.msra.gmra.mrb[8].mxu0 %vm178_vm2, %v1240_v45 }
 0xe02   :  { %3001 = vmatprep.mubr.msk.f32.mxu0 %vm3531_vm0, %v3532_v1 }
 0xed4   :  { %v1325_v49 = vpop.f32.mrb[8].mxu0 }
 0xed5   :  { %v1326_v50 = vadd.f32 %v2614_v46, %v1325_v49  ;;  %v2967_v51 = vpop.f32.mrb[9].mxu0 }
 0xed7   :  { %3316 = vtanh.f32 %v1326_v50 }
 0xee1   :  { %v3317_v53 = vpop.eup %3316 }
 0xee2   :  { %v1337_v54 = vmul.f32 %v3317_v53, %v2616_v52 }
 0xee4   :  { %v1338_v55 = vsel %vm1012_vm6, %v1337_v54, 0.0  ;;  %vm1741_vm6 = vcmask 130048  }
 0xee5   :  { %1339 = vadd.xlane.f32.xlu0 %v1338_v55 }
 0xf72   :  { %v1340_v57 = vpop.xlane.xlu0 %1339 }
 0xf73   :  { %v1342_v58 = vsel %vm1341_vm7, %v1340_v57, -1e+30 }
 0xf74   :  { %v1354_v59 = vsel %vm1353_vm8, %v1342_v58, -inf  ;;  %v1344_v6 = vsel %vm1343_vm9, %v1342_v58, -inf }
 0xf75   :  { %v1355_v60 = vrot.slane %v1354_v59, 4  ;;  %v1345_v7 = vrot.slane %v1344_v6, 4 }
 0xf77   :  { %v1356_v61 = vmax.f32 %v1354_v59, %v1355_v60  ;;  %v1346_v8 = vmax.f32 %v1344_v6, %v1345_v7  ;;  %v2633_v59 = vld [vmem:[#allocation11 + $0x1] ss:$0 sm:$0xff] }
 0xf79   :  { %v1357_v62 = vrot.slane %v1356_v61, 2  ;;  %v1347_v9 = vrot.slane %v1346_v8, 2 }
 0xf7b   :  { %v1358_v63 = vmax.f32 %v1356_v61, %v1357_v62  ;;  %v1348_v10 = vmax.f32 %v1346_v8, %v1347_v9 }
 0xf7d   :  { %v1359_v3 = vrot.slane %v1358_v63, 1  ;;  %v1349_v11 = vrot.slane %v1348_v10, 1 }
 0xf7f   :  { %v1360_v47 = vmax.f32 %v1358_v63, %v1359_v3  ;;  %v1350_v12 = vmax.f32 %v1348_v10, %v1349_v11  ;;  %v155_v10 = vld [vmem:[%s4335_s8] sm:$0xff] }
 0xf80   :  { %vm1673_vm14 = vcmp.gt.f32.partialorder %v155_v10, 0.5 }
 0xf81   :  { %v1361_v5 = vmul.f32 %v1360_v47, %v153_v56  ;;  %v1351_v13 = vmul.f32 %v1350_v12, %v153_v56  ;;  %v156_v12 = vld [vmem:[%s4335_s8 + $0x8] sm:$0xff] }
 0xf83   :  { %1363 = vrot.lane.b32.xlu1 %v1361_v5, %s3537_s29 }
 0xff5   :  { %v1364_v14 = vpop.permute.xlu1 %1363 }
 0xff6   :  { %v1366_v15 = vadd.f32 %v1364_v14, %v1351_v13 }
 0xff8   :  { %v1367_v16 = vsub.f32 %v1340_v57, %v1366_v15 }
 0xffa   :  { %v1368_v17 = vmul.f32 1.442695, %v1367_v16 }
 0xffc   :  { %3318 = vpow2.f32 %v1368_v17 }
0x1006   :  { %v3319_v18 = vpop.eup %3318 }
0x1007   :  { %1372 = vperm.xlu0 %3278, %v3319_v18  }
0x1086   :  { %v1373_v19 = vpop.permute.xlu0 %1372 }
0x1087   :  { %v1375_v20 = vmul.f32 %v1373_v19, %v4037_v41 }
0x1089   :  { %2969 = vmatpush3.msk.msra.mxu1 %vm1380_vm10, %v1375_v20 }
0x108a   :  { %2971 = vmatmul.mubr.msk.f32.vlgmr.msra.gmra.mrb[12].mxu1 %vm1376_vm11, %v152_v22  ;;  %2973 = vmatprep.subr.mxu1 %v3532_v1 }
0x108b   :  { %2974 = vmatpush3.msk.msra.mxu1 %vm1380_vm10, %v3319_v18  ;;  %2975 = vmatprep.mubr.msk.f32.mxu1 %vm3531_vm0, %v3532_v1 }
0x108c   :  { %3190 = vmatprep.subr.bf16.mxu1 %v3189_v30 }
0x108e   :  { %2976 = vmatmul.mubr.msk.f32.vlgmr.msra.gmra.mrb[14].mxu1 %vm1376_vm11, %v152_v22 }
0x108f   :  { %3192 = vmatpush3.bf16.msra.mxu1 %v3189_v30 }
0x1090   :  { %3194 = vmatprep.subr.bf16.mxu1 %v3193_v34 }
0x1093   :  { %3196 = vmatpush3.bf16.msra.mxu1 %v3193_v34 }
0x1094   :  { %3198 = vmatprep.subr.bf16.mxu1 %v3197_v37 }
0x1097   :  { %3200 = vmatpush3.bf16.msra.mxu1 %v3197_v37 }
0x1098   :  { %3202 = vmatprep.subr.bf16.mxu1 %v3201_v39 }
0x109b   :  { %3204 = vmatpush3.bf16.msra.mxu1 %v3201_v39 }
0x109c   :  { %3223 = vmatprep.subr.bf16.mxu1 %v3530_v0 }
0x115d   :  { %v1450_v23 = vpop.f32.mrb[12].mxu1 }
0x115e   :  { %v2972_v24 = vpop.f32.mrb[13].mxu1 }
0x1161   :  { %v1522_v48 = vpop.f32.mrb[14].mxu1 }
0x1162   :  { %1528 = vperm.xlu1 %3279, %v1522_v48   ;;  %v2977_v25 = vpop.f32.mrb[15].mxu1 }
0x1166   :  { %1545 = vrot.lane.b32.xlu1 %v4067_v26, %s3533_s23 }
0x116a   :  { %1547 = vrot.lane.b32.xlu1 %v4077_v31, %s3533_s23 }
0x11e1   :  { %v1529_v40 = vpop.permute.xlu1 %1528 }
0x11e2   :  { %3320 = vrcp.f32 %v1529_v40 }
0x11e5   :  { %v1546_v28 = vpop.permute.xlu1 %1545 }
0x11e9   :  { %v1548_v49 = vpop.permute.xlu1 %1547 }
0x11ec   :  { %v3321_v21 = vpop.eup %3320 }
0x11ed   :  { %v4100_v42 = vmul.f32 %v3321_v21, %v1450_v23 }
0x11ef   :  { %v1534_v43 = vrot.slane %v4100_v42, 6  ;;  %v1536_v44 = vrot.slane %v4100_v42, 4  ;;  %v1538_v45 = vrot.slane %v4100_v42, 2 }
0x11f1   :  { %v1540_v46 = vsel %vm903_vm4, %v4100_v42, %v1534_v43  ;;  %v2543_v50 = vsel %vm1380_vm10, %v4037_v41, %v1538_v45  ;;  %v2630_v41 = vld [vmem:[%s4344_s17 + $0x1] ss:$0 sm:$0xff]  ;;  %s4363_s17 = sld [smem:[#allocation23_spill]]  ;;  %vm1674_vm4 = vcmp.gt.f32.partialorder %v156_v12, 0.5 }
0x11f2   :  { %v1541_v51 = vsel %vm905_vm5, %v1540_v46, %v1536_v44  ;;  %2544 = vst.msk [vmem:[#allocation13] sm:$0xff] %vm161_vm1, %v2543_v50  ;;  %vm1677_vm5 = vcmask 7168  }
0x11f3   :  { %v1542_v52 = vsel %vm1380_vm10, %v1541_v51, %v1538_v45 }
0x11f4   :  { %v1551_v53 = vsel %vm161_vm1, %v1542_v52, %v1546_v28  ;;  %v1552_v54 = vsel %vm161_vm1, %v1542_v52, %v1548_v49 }
0x11f5   :  { %2994 = vmatprep.mubr.msk.f32.mxu1 %vm178_vm2, %v1551_v53 }
0x11f6   :  { %2995 = vmatmul.mubr.msk.f32.vlgmr.msra.gmra.mrb[16].mxu1 %vm178_vm2, %v1552_v54 }
0x11f7   :  { %3038 = vmatprep.mubr.msk.f32.mxu1 %vm3531_vm0, %v3532_v1  ;;  %v150_v47 = vld [vmem:[%s4363_s17] sm:$0xff]  ;;  %v151_v5 = vld [vmem:[%s4363_s17 + $0x8] sm:$0xff] }
0x11f8   :  { %vm1669_vm12 = vcmp.gt.f32.partialorder %v150_v47, 0.5  ;;  %vm1670_vm13 = vcmp.gt.f32.partialorder %v151_v5, 0.5  ;;  %v2639_v47 = vld [vmem:[%s4336_s9 + $0xd8] sm:$0xff] }
0x12c9   :  { %v2996_v55 = vpop.f32.mrb[16].mxu1 }
0x12ca   :  { %v1648_v56 = vadd.f32 %v2996_v55, %v2630_v41  ;;  %v1642_v57 = vpop.f32.mrb[17].mxu1 }
0x12cb   :  { %v1643_v58 = vadd.f32 %v2630_v41, %v1642_v57 }
0x12cc   :  { %3322 = vtanh.f32 %v1648_v56 }
0x12cd   :  { %3324 = vtanh.f32 %v1643_v58 }
0x12d6   :  { %v3323_v60 = vpop.eup %3322 }
0x12d7   :  { %v3325_v61 = vpop.eup %3324  ;;  %v1662_v62 = vmul.f32 %v3323_v60, %v2633_v59 }
0x12d8   :  { %v1661_v63 = vmul.f32 %v3325_v61, %v2633_v59  ;;  %v154_v59 = vld [vmem:[%s4334_s7] sm:$0x3] }
0x12d9   :  { %v1666_v3 = vsel %vm161_vm1, %v1662_v62, 0.0  ;;  %v2636_v62 = vld [vmem:[%s4336_s9 + $0xc0] sm:$0xff] }
0x12da   :  { %1667 = vadd.xlane.f32.xlu0 %v1666_v3  ;;  %v1663_v4 = vsel %vm161_vm1, %v1661_v63, 0.0  ;;  %v2637_v63 = vld [vmem:[%s4336_s9 + $0xc8] sm:$0xff]  ;;  %v2638_v3 = vld [vmem:[%s4336_s9 + $0xd0] sm:$0xff] }
0x12db   :  { %1664 = vadd.xlane.f32.xlu1 %v1663_v4  ;;  %v3212_v4 = vpack.c.bf16 %v2637_v63, %v2636_v62  ;;  %v3215_v5 = vpack.c.bf16 %v2639_v47, %v2638_v3  ;;  %v2650_v62 = vld [vmem:[%s4337_s10 + $0x70] sm:$0xff]  ;;  %v2651_v63 = vld [vmem:[%s4337_s10 + $0x78] sm:$0xff] }
0x12dc   :  { %v3227_v3 = vpack.c.bf16 %v2651_v63, %v2650_v62 }
0x1367   :  { %v1668_v8 = vpop.xlane.xlu0 %1667 }
0x1368   :  { %v1665_v6 = vpop.xlane.xlu1 %1664  ;;  %v1672_v9 = vsel %vm1670_vm13, -1e+12, %v1668_v8 }
0x1369   :  { %v1671_v7 = vsel %vm1669_vm12, -1e+12, %v1665_v6  ;;  %v1676_v30 = vsel %vm1674_vm4, %v1672_v9, -1e+30  ;;  %v2640_v6 = vld [vmem:[%s4336_s9 + $0xe0] sm:$0xff] }
0x136a   :  { %1693 = vrot.lane.b32.xlu1 %v1671_v7, %s3526_s0  ;;  %v1675_v29 = vsel %vm1673_vm14, %v1671_v7, -1e+30  ;;  %v1679_v33 = vsel %vm1677_vm5, %v1676_v30, -inf }
0x136b   :  { %v1678_v32 = vsel %vm1677_vm5, %v1675_v29, -inf  ;;  %v2662_v29 = vld [vmem:[%s4336_s9 + $0x138] sm:$0xff] }
0x136c   :  { %v1680_v34 = vmax.f32 %v1678_v32, %v1679_v33  ;;  %v2644_v32 = vld [vmem:[#allocation7 + $0x3] ss:$0 sm:$0xff] }
0x136e   :  { %1695 = vrot.lane.b32.xlu1 %v1672_v9, %s3526_s0  ;;  %v1681_v35 = vrot.slane %v1680_v34, 4 }
0x1370   :  { %v1682_v36 = vmax.f32 %v1680_v34, %v1681_v35 }
0x1372   :  { %v1683_v37 = vrot.slane %v1682_v36, 2 }
0x1374   :  { %v1684_v38 = vmax.f32 %v1682_v36, %v1683_v37 }
0x1376   :  { %v1685_v2 = vrot.slane %v1684_v38, 1 }
0x1378   :  { %v1686_v39 = vmax.f32 %v1684_v38, %v1685_v2 }
0x137a   :  { %v1688_v40 = vmul.f32 %v1686_v39, %v156_v12  ;;  %v1687_v28 = vmul.f32 %v1686_v39, %v155_v10 }
0x13dc   :  { %v1694_v11 = vpop.permute.xlu1 %1693 }
0x13dd   :  { %v1699_v13 = vsel %vm1673_vm14, %v1694_v11, -1e+30 }
0x13de   :  { %v1702_v16 = vsel %vm1701_vm15, %v1699_v13, -inf }
0x13e0   :  { %v1696_v14 = vpop.permute.xlu1 %1695 }
0x13e1   :  { %v1700_v15 = vsel %vm1674_vm4, %v1696_v14, -1e+30 }
0x13e2   :  { %v1703_v17 = vsel %vm1701_vm15, %v1700_v15, -inf  ;;  %v2655_v15 = vld [vmem:[%s4336_s9 + $0x100] sm:$0xff] }
0x13e3   :  { %v1704_v18 = vmax.f32 %v1702_v16, %v1703_v17  ;;  %v2656_v16 = vld [vmem:[%s4336_s9 + $0x108] sm:$0xff] }
0x13e4   :  { %v3236_v17 = vpack.c.bf16 %v2656_v16, %v2655_v15 }
0x13e5   :  { %v1705_v19 = vrot.slane %v1704_v18, 4 }
0x13e7   :  { %v1706_v20 = vmax.f32 %v1704_v18, %v1705_v19  ;;  %v2657_v19 = vld [vmem:[%s4336_s9 + $0x110] sm:$0xff] }
0x13e9   :  { %v1707_v22 = vrot.slane %v1706_v20, 2 }
0x13eb   :  { %v1708_v23 = vmax.f32 %v1706_v20, %v1707_v22  ;;  %v2658_v20 = vld [vmem:[%s4336_s9 + $0x118] sm:$0xff] }
0x13ed   :  { %v1709_v24 = vrot.slane %v1708_v23, 1 }
0x13ef   :  { %v1710_v48 = vmax.f32 %v1708_v23, %v1709_v24  ;;  %v3239_v23 = vpack.c.bf16 %v2658_v20, %v2657_v19  ;;  %v2659_v24 = vld [vmem:[%s4336_s9 + $0x120] sm:$0xff] }
0x13f0   :  { %v2107_v20 = vld [vmem:[#allocation5 + $0x70] sm:$0xff] }
0x13f1   :  { %v1712_v25 = vmul.f32 %v1710_v48, %v156_v12  ;;  %v1711_v27 = vmul.f32 %v1710_v48, %v155_v10  ;;  %v2643_v10 = vld [vmem:[%s4336_s9 + $0xf8] sm:$0xff]  ;;  %v2660_v48 = vld [vmem:[%s4336_s9 + $0x128] sm:$0xff] }
0x13f3   :  { %1717 = vrot.lane.b32.xlu0 %v1712_v25, %s3537_s29  ;;  %1715 = vrot.lane.b32.xlu1 %v1711_v27, %s3537_s29  ;;  %v3242_v25 = vpack.c.bf16 %v2660_v48, %v2659_v24  ;;  %v2661_v27 = vld [vmem:[%s4336_s9 + $0x130] sm:$0xff] }
0x13f4   :  { %v3245_v30 = vpack.c.bf16 %v2662_v29, %v2661_v27  ;;  %v2667_v27 = vld [vmem:[%s4337_s10 + $0x80] sm:$0xff]  ;;  %v2668_v29 = vld [vmem:[%s4337_s10 + $0x88] sm:$0xff] }
0x1465   :  { %v1718_v21 = vpop.permute.xlu0 %1717  ;;  %v1716_v43 = vpop.permute.xlu1 %1715 }
0x1466   :  { %v1722_v44 = vadd.f32 %v1718_v21, %v1688_v40  ;;  %v1721_v45 = vadd.f32 %v1716_v43, %v1687_v28 }
0x1468   :  { %v1724_v46 = vsub.f32 %v1672_v9, %v1722_v44  ;;  %v1723_v49 = vsub.f32 %v1671_v7, %v1721_v45  ;;  %v2641_v7 = vld [vmem:[%s4336_s9 + $0xe8] sm:$0xff]  ;;  %v2642_v9 = vld [vmem:[%s4336_s9 + $0xf0] sm:$0xff]  ;;  %v4224_v44 = vld [vmem:[#allocation8 + $0x3] ss:$0 sm:$0xff] }
0x1469   :  { %v3218_v8 = vpack.c.bf16 %v2641_v7, %v2640_v6  ;;  %v3221_v11 = vpack.c.bf16 %v2643_v10, %v2642_v9  ;;  %v4228_v45 = vld [vmem:[#allocation8 + $0x4] ss:$0 sm:$0xff] }
0x146a   :  { %v1727_v50 = vmul.f32 1.442695, %v1724_v46  ;;  %v1725_v51 = vmul.f32 1.442695, %v1723_v49  ;;  %v2663_v46 = vld [vmem:[#allocation7 + $0x4] ss:$0 sm:$0xff] }
0x146c   :  { %3326 = vpow2.f32 %v1727_v50 }
0x146d   :  { %3328 = vpow2.f32 %v1725_v51 }
0x1476   :  { %v3327_v52 = vpop.eup %3326 }
0x1477   :  { %v3329_v53 = vpop.eup %3328 }
0x1478   :  { %1731 = vperm.xlu1 %3279, %v3329_v53   ;;  %v3209_v54 = vpack.c.bf16 %v3327_v52, %v3329_v53 }
0x147c   :  { %1736 = vperm.xlu1 %3279, %v3327_v52  }
0x14f7   :  { %v1732_v41 = vpop.permute.xlu1 %1731 }
0x14f8   :  { %v1739_v56 = vmul.f32 %v1732_v41, %v4067_v26 }
0x14fb   :  { %v1737_v55 = vpop.permute.xlu1 %1736 }
0x14fc   :  { %v1740_v57 = vmul.f32 %v1737_v55, %v4077_v31 }
0x14fe   :  { %v3206_v58 = vpack.c.bf16 %v1740_v57, %v1739_v56 }
0x1500   :  { %3207 = vmatpush3.bf16.msra.mxu0 %v3206_v58 }
0x1501   :  { %3208 = vmatprep.subr.bf16.mxu0 %v3530_v0 }
0x1503   :  { %3002 = vmatmul.mubr.msk.f32.vlgmr.msra.gmra.mrb[10].mxu0 %vm1741_vm6, %v154_v59 }
0x1504   :  { %3210 = vmatpush3.bf16.msra.mxu0 %v3209_v54  ;;  %3008 = vmatprep.mubr.msk.f32.mxu0 %vm3531_vm0, %v3532_v1 }
0x1505   :  { %3211 = vmatprep.subr.bf16.mxu0 %v3530_v0 }
0x1507   :  { %3009 = vmatmul.mubr.msk.f32.vlgmr.msra.gmra.mrb[12].mxu0 %vm1741_vm6, %v154_v59 }
0x1508   :  { %3027 = vmatprep.mubr.msk.f32.mxu0 %vm3531_vm0, %v3532_v1  ;;  %3213 = vmatpush3.bf16.msra.mxu0 %v3212_v4 }
0x1509   :  { %3214 = vmatprep.subr.bf16.mxu0 %v3530_v0 }
0x150c   :  { %3216 = vmatpush3.bf16.msra.mxu0 %v3215_v5 }
0x150d   :  { %3217 = vmatprep.subr.bf16.mxu0 %v3530_v0 }
0x1510   :  { %3219 = vmatpush3.bf16.msra.mxu0 %v3218_v8 }
0x1511   :  { %3220 = vmatprep.subr.bf16.mxu0 %v3530_v0 }
0x1514   :  { %3222 = vmatpush3.bf16.msra.mxu0 %v3221_v11 }
0x1515   :  { %3235 = vmatprep.subr.bf16.mxu0 %v3530_v0 }
0x15d6   :  { %v1811_v26 = vpop.f32.mrb[10].mxu0 }
0x15d7   :  { %v3003_v31 = vpop.f32.mrb[11].mxu0 }
0x15d8   :  { %v2648_v31 = vld [vmem:[%s4337_s10 + $0x60] sm:$0xff] }
0x15da   :  { %v1881_v60 = vpop.f32.mrb[12].mxu0 }
0x15db   :  { %1887 = vperm.xlu1 %3279, %v1881_v60   ;;  %v3010_v61 = vpop.f32.mrb[13].mxu0  ;;  %v2649_v60 = vld [vmem:[%s4337_s10 + $0x68] sm:$0xff] }
0x15dc   :  { %v3224_v61 = vpack.c.bf16 %v2649_v60, %v2648_v31 }
0x15de   :  { %3225 = vmatpush3.bf16.msra.mxu1 %v3224_v61 }
0x15df   :  { %3226 = vmatprep.subr.bf16.mxu1 %v3530_v0 }
0x15e2   :  { %3228 = vmatpush3.bf16.msra.mxu1 %v3227_v3 }
0x15e3   :  { %3229 = vmatprep.subr.bf16.mxu1 %v3530_v0 }
0x165a   :  { %v1888_v12 = vpop.permute.xlu1 %1887 }
0x165b   :  { %3330 = vrcp.f32 %v1888_v12 }
0x1665   :  { %v3331_v13 = vpop.eup %3330 }
0x1666   :  { %v4182_v14 = vmul.f32 %v3331_v13, %v1811_v26 }
0x1668   :  { %1893 = vrot.lane.b32.xlu1 %v4182_v14, %s3533_s23 }
0x16da   :  { %v1894_v18 = vpop.permute.xlu1 %1893 }
0x16db   :  { %v1896_v22 = vsel %vm161_vm1, %v4100_v42, %v1894_v18  ;;  %v2106_v18 = vld [vmem:[#allocation5 + $0x68] sm:$0xff] }
0x16dc   :  { %3028 = vmatmul.mubr.msk.f32.vlgmr.msra.gmra.mrb[14].mxu0 %vm178_vm2, %v1896_v22 }
0x16dd   :  { %3237 = vmatpush3.bf16.msra.mxu0 %v3236_v17  ;;  %3068 = vmatprep.mubr.msk.f32.mxu0 %vm3531_vm0, %v3532_v1  ;;  %v2105_v17 = vld [vmem:[#allocation5 + $0x60] sm:$0xff] }
0x16de   :  { %3238 = vmatprep.subr.bf16.mxu0 %v3530_v0  ;;  %v3230_v19 = vpack.c.bf16 %v2106_v18, %v2105_v17 }
0x16e1   :  { %3240 = vmatpush3.bf16.msra.mxu0 %v3239_v23 }
0x16e2   :  { %3241 = vmatprep.subr.bf16.mxu0 %v3530_v0 }
0x16e5   :  { %3243 = vmatpush3.bf16.msra.mxu0 %v3242_v25 }
0x16e6   :  { %3244 = vmatprep.subr.bf16.mxu0 %v3530_v0 }
0x16e9   :  { %3246 = vmatpush3.bf16.msra.mxu0 %v3245_v30 }
0x16ec   :  { %3069 = vmatmul.mubr.msk.f32.vlgmr.msra.gmra.mrb[16].mxu0 %vm178_vm2, %v1896_v22  ;;  %v2108_v22 = vld [vmem:[#allocation5 + $0x78] sm:$0xff] }
0x16ed   :  { %v3233_v23 = vpack.c.bf16 %v2108_v22, %v2107_v20 }
0x17af   :  { %v1983_v33 = vpop.f32.mrb[14].mxu0 }
0x17b0   :  { %v4219_v34 = vadd.f32 %v2644_v32, %v1983_v33  ;;  %v3029_v35 = vpop.f32.mrb[15].mxu0 }
0x17b2   :  { %v2646_v36 = vmul.f32 -1.442695, %v4219_v34 }
0x17b4   :  { %3332 = vpow2.f32 %v2646_v36  ;;  %v3248_v36 = vpack.c.bf16 %v2668_v29, %v2667_v27 }
0x17be   :  { %v3333_v37 = vpop.eup %3332 }
0x17bf   :  { %v2297_v38 = vpop.f32.mrb[16].mxu0  ;;  %v1992_v2 = vadd.f32 1.0, %v3333_v37 }
0x17c0   :  { %v3070_v39 = vpop.f32.mrb[17].mxu0  ;;  %v2298_v49 = vadd.f32 %v2663_v46, %v2297_v38  ;;  %v2419_v46 = vld [vmem:[#allocation5 + $0x80] sm:$0xff] }
0x17c1   :  { %3334 = vrcp.f32 %v1992_v2  ;;  %v2669_v2 = vld [vmem:[%s4337_s10 + $0x90] sm:$0xff]  ;;  %v2670_v39 = vld [vmem:[%s4337_s10 + $0x98] sm:$0xff]  ;;  %s3538_s10 = smov [#allocation13]  }
0x17c2   :  { %v2665_v50 = vmul.f32 -1.442695, %v2298_v49  ;;  %s2553_s3 = sshll.u32 %s3538_s10, 4  ;;  %s2554_s3 = int_to_ptr.vmem [resolvable:$true] %s2553_s3 }
0x17c3   :  { %s3488_s8 = scalar_lea.vmem %s2554_s3, 128  ;;  %p3493_p7 = scmp.lt.s32.totalorder %s2554_s3, %s2554_s3 }
0x17c4   :  { %3336 = vpow2.f32 %v2665_v50  ;;  %p3489_p6 = scmp.ne.s32.totalorder %s2554_s3, %s3488_s8  ;;  %p3494_p8 = scmp.lt.s32.totalorder %s3488_s8, %s3488_s8 }
0x17c6   :  { %p3495_p9 = por %p3494_p8, %p3493_p7 }
0x17c8   :  { %p3496_p10 = pnand %p3495_p9, %p3489_p6 }
0x17cb   :  { %v3335_v40 = vpop.eup %3334 }
0x17cc   :  { %v1995_v28 = vsub.f32 1.0, %v3335_v40  ;;  %v3251_v40 = vpack.c.bf16 %v2670_v39, %v2669_v2 }
0x17ce   :  { %v1996_v21 = vmul.f32 %v1995_v28, %v4100_v42  ;;  %v3337_v51 = vpop.eup %3336 }
0x17cf   :  { %v2306_v52 = vadd.f32 1.0, %v3337_v51  ;;  %v2421_v51 = vld [vmem:[#allocation5 + $0x90] sm:$0xff] }
0x17d0   :  { %v1997_v43 = vsel %vm261_vm3, %v1996_v21, 0.0 }
0x17d1   :  { %1998 = vadd.xlane.f32.xlu1 %v1997_v43  ;;  %3338 = vrcp.f32 %v2306_v52  ;;  %v2422_v52 = vld [vmem:[#allocation5 + $0x98] sm:$0xff] }
0x17db   :  { %v3339_v53 = vpop.eup %3338 }
0x17dc   :  { %v2309_v56 = vsub.f32 1.0, %v3339_v53  ;;  %v3257_v53 = vpack.c.bf16 %v2422_v52, %v2421_v51 }
0x17de   :  { %v2310_v59 = vmul.f32 %v2309_v56, %v4100_v42 }
0x17e0   :  { %v2311_v26 = vsel %vm261_vm3, %v2310_v59, 0.0 }
0x17e2   :  { %2017 = vrot.lane.b32.xlu1 %v4224_v44, %s3534_s27 }
0x17e6   :  { %2331 = vrot.lane.b32.xlu1 %v4228_v45, %s3534_s27 }
0x17ea   :  { %2341 = vrot.lane.b32.xlu1 %v2298_v49, %s3534_s27 }
0x17ee   :  { %2423 = vrot.lane.b32.xlu1 %v2298_v49, %s3535_s30  ;;  %v2420_v49 = vld [vmem:[#allocation5 + $0x88] sm:$0xff] }
0x17ef   :  { %v3254_v50 = vpack.c.bf16 %v2420_v49, %v2419_v46 }
0x17f2   :  { %2109 = vrot.lane.b32.xlu1 %v4219_v34, %s3535_s30 }
0x185e   :  { %v1999_v54 = vpop.xlane.xlu1 %1998 }
0x185f   :  { %v2000_v41 = vmul.f32 0.03125, %v1999_v54 }
0x1861   :  { %v2001_v55 = vsub.f32 %v1996_v21, %v2000_v41 }
0x1862   :  { %v2018_v15 = vpop.permute.xlu1 %2017 }
0x1863   :  { %v2002_v57 = vmul.f32 %v2001_v55, %v2001_v55 }
0x1865   :  { %v2003_v58 = vsel %vm261_vm3, %v2002_v57, 0.0 }
0x1866   :  { %2004 = vadd.xlane.f32.xlu0 %v2003_v58  ;;  %v2332_v21 = vpop.permute.xlu1 %2331 }
0x186a   :  { %2312 = vadd.xlane.f32.xlu0 %v2311_v26  ;;  %v2342_v54 = vpop.permute.xlu1 %2341 }
0x186e   :  { %v2424_v41 = vpop.permute.xlu1 %2423 }
0x18f3   :  { %v2005_v4 = vpop.xlane.xlu0 %2004 }
0x18f4   :  { %v2006_v47 = vmul.f32 0.03125, %v2005_v4 }
0x18f6   :  { %v2007_v5 = vadd.f32 1e-05, %v2006_v47 }
0x18f7   :  { %v2313_v6 = vpop.xlane.xlu0 %2312 }
0x18f8   :  { %3340 = vrsqrt.f32 %v2007_v5  ;;  %v2314_v7 = vmul.f32 0.03125, %v2313_v6 }
0x18fa   :  { %v2315_v8 = vsub.f32 %v2310_v59, %v2314_v7 }
0x18fc   :  { %v2316_v9 = vmul.f32 %v2315_v8, %v2315_v8 }
0x18fe   :  { %v2317_v10 = vsel %vm261_vm3, %v2316_v9, 0.0 }
0x18ff   :  { %2318 = vadd.xlane.f32.xlu0 %v2317_v10 }
0x1902   :  { %v3341_v11 = vpop.eup %3340 }
0x1903   :  { %v2009_v12 = vmul.f32 %v3341_v11, %v2001_v55  ;;  %v2110_v55 = vpop.permute.xlu1 %2109 }
0x1905   :  { %v2016_v13 = vmul.f32 %v4224_v44, %v2009_v12 }
0x1907   :  { %v4255_v16 = vadd.f32 %v2018_v15, %v2016_v13 }
0x1909   :  { %3039 = vmatmul.mubr.msk.f32.vlgmr.msra.gmra.mrb[18].mxu1 %vm161_vm1, %v4255_v16 }
0x190a   :  { %3049 = vmatprep.mubr.msk.f32.mxu1 %vm3531_vm0, %v3532_v1  ;;  %3231 = vmatpush3.bf16.msra.mxu1 %v3230_v19 }
0x190b   :  { %3232 = vmatprep.subr.bf16.mxu1 %v3530_v0 }
0x190e   :  { %3234 = vmatpush3.bf16.msra.mxu1 %v3233_v23 }
0x190f   :  { %3247 = vmatprep.subr.bf16.mxu1 %v3530_v0 }
0x1915   :  { %2027 = vrot.lane.b32.xlu0 %v4219_v34, %s3534_s27 }
0x198c   :  { %v2319_v24 = vpop.xlane.xlu0 %2318 }
0x198d   :  { %v2320_v48 = vmul.f32 0.03125, %v2319_v24 }
0x198f   :  { %v2321_v25 = vadd.f32 1e-05, %v2320_v48 }
0x1990   :  { %v2028_v32 = vpop.permute.xlu0 %2027 }
0x1991   :  { %3342 = vrsqrt.f32 %v2321_v25 }
0x199b   :  { %v3343_v30 = vpop.eup %3342 }
0x199c   :  { %v2323_v37 = vmul.f32 %v3343_v30, %v2315_v8 }
0x199e   :  { %v2330_v28 = vmul.f32 %v4228_v45, %v2323_v37 }
0x19a0   :  { %v4282_v43 = vadd.f32 %v2332_v21, %v2330_v28 }
0x19dc   :  { %v2099_v33 = vpop.f32.mrb[18].mxu1 }
0x19dd   :  { %v2100_v34 = vadd.f32 %v2099_v33, %v2028_v32  ;;  %v3040_v35 = vpop.f32.mrb[19].mxu1 }
0x19df   :  { %v2103_v38 = vmax.f32 %v2100_v34, 0.0 }
0x19e1   :  { %3050 = vmatmul.mubr.msk.f32.vlgmr.msra.gmra.mrb[20].mxu1 %vm161_vm1, %v2103_v38 }
0x19e2   :  { %3249 = vmatpush3.bf16.msra.mxu1 %v3248_v36  ;;  %3079 = vmatprep.mubr.msk.f32.mxu1 %vm3531_vm0, %v3532_v1 }
0x19e3   :  { %3250 = vmatprep.subr.bf16.mxu1 %v3530_v0 }
0x19e6   :  { %3252 = vmatpush3.bf16.msra.mxu1 %v3251_v40 }
0x19e7   :  { %3253 = vmatprep.subr.bf16.mxu1 %v3530_v0 }
0x19e9   :  { %3080 = vmatmul.mubr.msk.f32.vlgmr.msra.gmra.mrb[22].mxu1 %vm161_vm1, %v4282_v43 }
0x19ea   :  { %3090 = vmatprep.mubr.msk.f32.mxu1 %vm3531_vm0, %v3532_v1  ;;  %3255 = vmatpush3.bf16.msra.mxu1 %v3254_v50 }
0x19eb   :  { %3256 = vmatprep.subr.bf16.mxu1 %v3530_v0 }
0x19ee   :  { %3258 = vmatpush3.bf16.msra.mxu1 %v3257_v53 }
0x1ab4   :  { %v2181_v56 = vpop.f32.mrb[20].mxu1 }
0x1ab5   :  { %v2182_v57 = vadd.f32 %v2181_v56, %v2110_v55  ;;  %v3051_v58 = vpop.f32.mrb[21].mxu1 }
0x1ab7   :  { %v2654_v59 = vmul.f32 -1.442695, %v2182_v57 }
0x1ab9   :  { %3344 = vpow2.f32 %v2654_v59 }
0x1abc   :  { %v2413_v26 = vpop.f32.mrb[22].mxu1 }
0x1abd   :  { %v2414_v1 = vadd.f32 %v2413_v26, %v2342_v54  ;;  %v3081_v31 = vpop.f32.mrb[23].mxu1 }
0x1abf   :  { %v2417_v60 = vmax.f32 %v2414_v1, 0.0 }
0x1ac1   :  { %3091 = vmatmul.mubr.msk.f32.vlgmr.msra.gmra.mrb[24].mxu1 %vm161_vm1, %v2417_v60 }
0x1ac3   :  { %v3345_v61 = vpop.eup %3344 }
0x1ac4   :  { %v2188_v0 = vadd.f32 1.0, %v3345_v61 }
0x1ac6   :  { %3346 = vrcp.f32 %v2188_v0 }
0x1ad0   :  { %v3347_v62 = vpop.eup %3346 }
0x1ad1   :  { %v2191_v63 = vmul.f32 %v3347_v62, %v2103_v38 }
0x1ad3   :  { %v2192_v3 = vsel %vm261_vm3, %v2191_v63, 0.0 }
0x1ad4   :  { %2193 = vadd.xlane.f32.xlu1 %v2192_v3 }
0x1ae5   :  { %2523 = vrot.lane.b32.xlu1 %v4228_v45, %s3533_s23 }
0x1b61   :  { %v2194_v4 = vpop.xlane.xlu1 %2193 }
0x1b62   :  { %v2195_v47 = vmul.f32 0.03125, %v2194_v4 }
0x1b64   :  { %v2196_v5 = vsub.f32 %v2191_v63, %v2195_v47 }
0x1b66   :  { %v2197_v6 = vmul.f32 %v2196_v5, %v2196_v5 }
0x1b68   :  { %v2198_v7 = vsel %vm261_vm3, %v2197_v6, 0.0 }
0x1b69   :  { %2199 = vadd.xlane.f32.xlu1 %v2198_v7 }
0x1b94   :  { %v2495_v8 = vpop.f32.mrb[24].mxu1 }
0x1b95   :  { %v2496_v9 = vadd.f32 %v2495_v8, %v2424_v41  ;;  %v3092_v10 = vpop.f32.mrb[25].mxu1 }
0x1b97   :  { %v2673_v11 = vmul.f32 -1.442695, %v2496_v9 }
0x1b99   :  { %3348 = vpow2.f32 %v2673_v11 }
0x1ba3   :  { %v3349_v12 = vpop.eup %3348 }
0x1ba4   :  { %v2502_v13 = vadd.f32 1.0, %v3349_v12 }
0x1ba6   :  { %3350 = vrcp.f32 %v2502_v13 }
0x1bb0   :  { %v3351_v15 = vpop.eup %3350 }
0x1bb1   :  { %v2505_v17 = vmul.f32 %v3351_v15, %v2417_v60 }
0x1bb3   :  { %v2506_v18 = vsel %vm261_vm3, %v2505_v17, 0.0 }
0x1bb4   :  { %2507 = vadd.xlane.f32.xlu0 %v2506_v18 }
0x1c41   :  { %v2508_v19 = vpop.xlane.xlu0 %2507 }
0x1c42   :  { %v2509_v20 = vmul.f32 0.03125, %v2508_v19 }
0x1c44   :  { %v2510_v22 = vsub.f32 %v2505_v17, %v2509_v20 }
0x1c46   :  { %v2511_v23 = vmul.f32 %v2510_v22, %v2510_v22 }
0x1c48   :  { %v2512_v24 = vsel %vm261_vm3, %v2511_v23, 0.0 }
0x1c49   :  { %2513 = vadd.xlane.f32.xlu0 %v2512_v24 }
0x1c5f   :  { %2519 = vrot.lane.b32.xlu0 %v4228_v45, %s3535_s30 }
0x1c63   :  { %2205 = vrot.lane.b32.xlu0 %v4224_v44, %s3535_s30 }
0x1c67   :  { %2209 = vrot.lane.b32.xlu0 %v4224_v44, %s3533_s23 }
0x1c6b   :  { %2532 = vrot.lane.b32.xlu0 %v4182_v14, %s3535_s30 }
0x1cd6   :  { %v2514_v48 = vpop.xlane.xlu0 %2513 }
0x1cd7   :  { %v2515_v25 = vmul.f32 0.03125, %v2514_v48 }
0x1cd9   :  { %v2516_v27 = vadd.f32 1e-05, %v2515_v25 }
0x1cdb   :  { %3352 = vrsqrt.f32 %v2516_v27 }
0x1ce5   :  { %v3353_v29 = vpop.eup %3352 }
0x1ce6   :  { %v2518_v30 = vmul.f32 %v3353_v29, %v2510_v22 }
0x1ce7   :  { %3499 = shalt.err (!%p3496_p10)
}
0x1ce8   :  { %s3500_s30 = scalar_lea.hbm %s4347_s20, 128 }
0x1ce9   :  { %p3501_p11 = scmp.ne.s32.totalorder %s4347_s20, %s3500_s30  ;;  %p3504_p12 = scmp.lt.u32.totalorder %s3500_s30, %s4347_s20 }
0x1ceb   :  { %p3506_p13 = pnand %p3504_p12, %p3501_p11 }
0x1ced   :  { %3509 = shalt.err (!%p3506_p13)
}
0x1cee   :  { %2556 = dma.vmem_to_hbm [thread:$0]  %s2554_s3, 128, %s4347_s20, [#allocation4]   ;;  %v2520_v14 = vpop.permute.xlu0 %2519  ;;  %v2524_v45 = vpop.permute.xlu1 %2523  ;;  %vm2540_vm0 = vcmask 785408  }
0x1cef   :  { %v2522_v44 = vmul.f32 %v2520_v14, %v2518_v30 }
0x1cf1   :  { %v2526_v32 = vadd.f32 %v2524_v45, %v2522_v44 }
0x1cf2   :  { %v2200_v34 = vpop.xlane.xlu1 %2199  ;;  %v2206_v37 = vpop.permute.xlu0 %2205 }
0x1cf3   :  { %v2527_v33 = vsub.f32 %v4282_v43, %v2526_v32  ;;  %v2201_v35 = vmul.f32 0.03125, %v2200_v34 }
0x1cf5   :  { %2529 = vrot.lane.b32.xlu0 %v2527_v33, %s3533_s23  ;;  %v2202_v36 = vadd.f32 1e-05, %v2201_v35 }
0x1cf6   :  { %v2210_v2 = vpop.permute.xlu0 %2209 }
0x1cf7   :  { %3354 = vrsqrt.f32 %v2202_v36 }
0x1cf9   :  { %2535 = vrot.lane.b32.xlu0 %v4100_v42, %s3534_s27  ;;  %s4364_s27 = sld [smem:[#allocation24_spill]] }
0x1cfa   :  { %v2533_v21 = vpop.permute.xlu0 %2532 }
0x1d01   :  { %v3355_v38 = vpop.eup %3354 }
0x1d02   :  { %v2204_v39 = vmul.f32 %v3355_v38, %v2196_v5 }
0x1d04   :  { %v2208_v40 = vmul.f32 %v2206_v37, %v2204_v39 }
0x1d06   :  { %v2212_v28 = vadd.f32 %v2210_v2, %v2208_v40 }
0x1d08   :  { %v2213_v46 = vsub.f32 %v4255_v16, %v2212_v28 }
0x1d67   :  { %v2530_v49 = vpop.permute.xlu0 %2529 }
0x1d68   :  { %v2538_v43 = vsel %vm161_vm1, %v2213_v46, %v2530_v49 }
0x1d69   :  { %v2539_v50 = vsel %vm178_vm2, %v2538_v43, %v2533_v21 }
0x1d6b   :  { %v2536_v42 = vpop.permute.xlu0 %2535 }
0x1d6c   :  { %v2541_v51 = vsel %vm2540_vm0, %v2539_v50, %v2536_v42 }
0x1d6d   :  { %2542 = vst [vmem:[%s4364_s27] sm:$0x3] %v2541_v51 }
0x1d6e   :  { %3518 = dma.done.wait [#allocation4], 128  }
0x1d6f   :  { %3519 = vsyncadd [#allocation4], 4294967168 }
0x1d70   :  { %2562 = vsyncpa [#allocation3], 1 }
0x1d71   :  { %2563 = vsyncpa [#allocation6], 1 }
0x1d72   :  { %2564 = vsyncpa [#allocation9], 1 }
0x1d73   :  { %2565 = vsyncpa [#allocation12], 1 }
0x1d74   :  { %2566 = vsyncpa [#allocation4], 1 }

</bundles_post_ra>
